<compile_context>
chip_gen: v7x
topology: tpu7x:2x2x1
jax: 0.10.0
libtpu: 0.0.40
codegen_flags: <defaults>
</compile_context>

<pallas_src>
import functools

import jax
import jax.numpy as jnp
import numpy as np
from jax import lax
from jax.experimental import pallas as pl
from jax.experimental.pallas import tpu as pltpu


# ---------------------------------------------------------------------------
# Chip-aware knobs.
# ---------------------------------------------------------------------------
def _device_kind() -> str:
    try:
        return jax.devices()[0].device_kind.lower()
    except Exception:
        return ""


def _vmem_limit_bytes() -> int:
    kind = _device_kind()
    if "v7" in kind or "7x" in kind:
        return 48 << 20           # v7x: 64 MiB per TC -> leave headroom
    if "v5" in kind or "v6" in kind:
        return 96 << 20           # 128 MiB physical VMEM
    return 64 << 20               # unknown: be conservative


def _default_tm() -> int:
    kind = _device_kind()
    if "v7" in kind or "7x" in kind:
        return 512                # roofline crossover ~310 FLOP/B, smaller VMEM
    if "v6" in kind:
        return 768                # needs ~680 FLOP/B of weight reuse for MXU-bound
    return 512                    # v5e / unknown


# ---------------------------------------------------------------------------
# Kernel 1: router  (logits = x @ Wr, softmax over experts), token-tiled.
# ---------------------------------------------------------------------------
def _router_kernel(x_ref, wr_ref, probs_ref):
    logits = jnp.dot(x_ref[...], wr_ref[...], preferred_element_type=jnp.float32)
    m = jnp.max(logits, axis=-1, keepdims=True)
    p = jnp.exp(logits - m)
    probs_ref[...] = p / jnp.sum(p, axis=-1, keepdims=True)


def router_softmax(x_tok, w_router, *, tm):
    T, D = x_tok.shape
    E = w_router.shape[1]
    return pl.pallas_call(
        _router_kernel,
        out_shape=jax.ShapeDtypeStruct((T, E), jnp.float32),
        grid_spec=pltpu.PrefetchScalarGridSpec(
            num_scalar_prefetch=0,
            grid=(T // tm,),
            in_specs=[
                pl.BlockSpec((tm, D), lambda t: (t, 0)),
                pl.BlockSpec((D, E), lambda t: (0, 0)),   # router weights resident
            ],
            out_specs=pl.BlockSpec((tm, E), lambda t: (t, 0)),
        ),
        compiler_params=pltpu.CompilerParams(
            dimension_semantics=("parallel",),
            vmem_limit_bytes=_vmem_limit_bytes(),
        ),
    )(x_tok, w_router)


# ---------------------------------------------------------------------------
# Kernel 2: expert MLPs + gated combine.
#   grid = (token_tiles, experts, hidden_tiles); experts & hidden are reductions
#   into a per-token-tile f32 accumulator. Scalar-prefetch routing metadata:
#     flags[t*E+e]  : any token in tile t routed to expert e
#     eff_e/eff_h[s]: forward-filled (expert, h-chunk) block indices so skipped
#                     steps repeat the previously fetched weight block (DMA elided).
# ---------------------------------------------------------------------------
def _moe_expert_kernel(flags_ref, eff_e_ref, eff_h_ref,
                       x_ref, g_ref, w1_ref, w2_ref, o_ref, acc_ref):
    t = pl.program_id(0)
    e = pl.program_id(1)
    h = pl.program_id(2)
    n_e = pl.num_programs(1)
    n_h = pl.num_programs(2)

    @pl.when((e == 0) & (h == 0))
    def _():
        acc_ref[...] = jnp.zeros_like(acc_ref)

    @pl.when(flags_ref[t * n_e + e] > 0)
    def _():
        x = x_ref[...]                                             # (tm, D) bf16
        # gelu(x @ W1_e[:, h-chunk]) in f32, immediately packed to bf16 so the
        # live intermediate between the two matmuls stays (tm, th) bf16.
        hid = jax.nn.gelu(
            jnp.dot(x, w1_ref[0], preferred_element_type=jnp.float32)
        ).astype(jnp.bfloat16)                                     # (tm, th)
        y = jnp.dot(hid, w2_ref[0], preferred_element_type=jnp.float32)  # (tm, D)
        g_tile = g_ref[...]                                        # (tm, E) f32
        sel = lax.broadcasted_iota(jnp.int32, g_tile.shape, 1) == e
        g_col = jnp.sum(jnp.where(sel, g_tile, 0.0), axis=-1, keepdims=True)
        acc_ref[...] += g_col * y

    @pl.when((e == n_e - 1) & (h == n_h - 1))
    def _():
        o_ref[...] = acc_ref[...].astype(o_ref.dtype)


def moe_experts(flags, eff_e, eff_h, x_tok, gates, w1, w2, *, tm, th):
    T, D = x_tok.shape
    E, _, H = w1.shape
    ht = H // th

    def x_map(t, e, h, f, ee, eh):
        return (t, 0)

    def g_map(t, e, h, f, ee, eh):
        return (t, 0)

    def o_map(t, e, h, f, ee, eh):
        return (t, 0)

    def w1_map(t, e, h, f, ee, eh):
        s = (t * E + e) * ht + h
        return (ee[s], 0, eh[s])

    def w2_map(t, e, h, f, ee, eh):
        s = (t * E + e) * ht + h
        return (ee[s], eh[s], 0)

    return pl.pallas_call(
        _moe_expert_kernel,
        out_shape=jax.ShapeDtypeStruct((T, D), jnp.bfloat16),   # bf16 writeback
        grid_spec=pltpu.PrefetchScalarGridSpec(
            num_scalar_prefetch=3,
            grid=(T // tm, E, ht),
            in_specs=[
                pl.BlockSpec((tm, D), x_map),       # x tile
                pl.BlockSpec((tm, E), g_map),       # gates, lane-dense, resident
                pl.BlockSpec((1, D, th), w1_map),   # W1_e h-chunk (data-dep)
                pl.BlockSpec((1, th, D), w2_map),   # W2_e h-chunk (data-dep)
            ],
            out_specs=pl.BlockSpec((tm, D), o_map),
            scratch_shapes=[pltpu.VMEM((tm, D), jnp.float32)],
        ),
        compiler_params=pltpu.CompilerParams(
            dimension_semantics=("parallel", "arbitrary", "arbitrary"),
            vmem_limit_bytes=_vmem_limit_bytes(),
        ),
    )(flags, eff_e, eff_h, x_tok, gates, w1, w2)


# ---------------------------------------------------------------------------
# Full MoE forward (wrapper == MoE.forward)
# ---------------------------------------------------------------------------
def _topk_gates(probs, top_k):
    T, E = probs.shape
    vals, idx = jax.lax.top_k(probs, top_k)                          # (T, k)
    return jnp.sum(
        jax.nn.one_hot(idx, E, dtype=jnp.float32) * vals[..., None], axis=1
    )                                                                # (T, E)


@functools.partial(jax.jit, static_argnames=("top_k", "tm", "th"))
def moe_forward_with_aux(x, w_router, w1, w2, *, top_k=2, tm=None, th=None):
    B, S, D = x.shape
    E = w_router.shape[1]
    H = w1.shape[-1]
    T = B * S

    if tm is None:
        tm = _default_tm()
    if th is None or th > H or (H % th) != 0:
        th = H
    ht = H // th

    n_tiles = (T + tm - 1) // tm
    T_pad = n_tiles * tm
    pad = T_pad - T

    x_tok = x.reshape(T, D)
    if pad:
        x_tok = jnp.pad(x_tok, ((0, pad), (0, 0)))

    xb = x_tok.astype(jnp.bfloat16)
    wrb = w_router.astype(jnp.bfloat16)
    w1b = w1.astype(jnp.bfloat16)
    w2b = w2.astype(jnp.bfloat16)

    # --- router (Pallas) + top-k gating (glue) ---
    probs = router_softmax(xb, wrb, tm=tm)                           # (T_pad, E) f32
    gates = _topk_gates(probs, top_k)                                # (T_pad, E) f32

    # Zero padded-token gates so fully/partially padded tail tiles don't
    # activate every expert (the skip flags then cover them for free).
    if pad:
        row_ids = jnp.arange(T_pad, dtype=jnp.int32)[:, None]
        gates = jnp.where(row_ids < T, gates, 0.0)

    # --- routing metadata for the expert kernel ---
    tile_active = gates.reshape(n_tiles, tm, E).max(axis=1) > 0.0
    flags = tile_active.astype(jnp.int32).reshape(-1)                # (n_tiles*E,)

    n_steps = n_tiles * E * ht
    step_ids = jnp.arange(n_steps, dtype=jnp.int32)
    active = jnp.repeat(flags, ht) > 0                               # (n_steps,)
    last_active = jnp.maximum(
        lax.cummax(jnp.where(active, step_ids, -1), axis=0), 0
    )
    eff_e = ((last_active // ht) % E).astype(jnp.int32)              # (n_steps,)
    eff_h = (last_active % ht).astype(jnp.int32)                     # (n_steps,)

    # --- expert MLPs + combine (Pallas, bf16 writeback) ---
    out_pad = moe_experts(flags, eff_e, eff_h, xb, gates, w1b, w2b, tm=tm, th=th)
    out = out_pad[:T].reshape(B, S, D)
    if out.dtype != x.dtype:
        out = out.astype(x.dtype)
    return out, probs[:T], gates[:T]


def moe_forward(x, w_router, w1, w2, *, top_k=2, tm=None, th=None):
    out, _, _ = moe_forward_with_aux(x, w_router, w1, w2, top_k=top_k, tm=tm, th=th)
    return out


# ---------------------------------------------------------------------------
# Pure-JAX references for correctness checking.
# ---------------------------------------------------------------------------
def router_reference(x_tok, w_router):
    logits = jnp.dot(x_tok.astype(jnp.bfloat16), w_router.astype(jnp.bfloat16),
                     preferred_element_type=jnp.float32)
    return jax.nn.softmax(logits, axis=-1)


def experts_reference(x_tok, gates, w1, w2):
    xb = x_tok.astype(jnp.bfloat16)
    h = jnp.einsum("td,edh->eth", xb, w1.astype(jnp.bfloat16),
                   preferred_element_type=jnp.float32)
    h = jax.nn.gelu(h)
    y = jnp.einsum("eth,ehd->etd", h.astype(jnp.bfloat16), w2.astype(jnp.bfloat16),
                   preferred_element_type=jnp.float32)
    return jnp.einsum("te,etd->td", gates, y)


if __name__ == "__main__":
    # Small but MXU-aligned config: batch=2, seq=250 (exercises token padding),
    # d_model=128, hidden=256, experts=4, top_k=2.
    # tm=256 -> 2 token tiles; th=128 -> 2 hidden chunks per expert.
    B, S, D, H, E, K = 2, 250, 128, 256, 4, 2

    key = jax.random.PRNGKey(0)
    kx, kr, k1, k2 = jax.random.split(key, 4)

    x = jax.random.normal(kx, (B, S, D), dtype=jnp.float32)
    w_router = jax.random.normal(kr, (D, E), dtype=jnp.float32) * 0.1
    w1 = jax.random.normal(k1, (E, D, H), dtype=jnp.float32) * (1.0 / np.sqrt(D))
    w2 = jax.random.normal(k2, (E, H, D), dtype=jnp.float32) * (1.0 / np.sqrt(H))

    out, probs, gates = jax.block_until_ready(
        moe_forward_with_aux(x, w_router, w1, w2, top_k=K, tm=256, th=128)
    )

    x_tok = x.reshape(B * S, D)

    # Check 1: router kernel vs pure-JAX softmax(x @ Wr).
    probs_ref = router_reference(x_tok, w_router)
    np.testing.assert_allclose(np.asarray(probs), np.asarray(probs_ref),
                               rtol=2e-2, atol=2e-2)

    # Check 2: expert kernel (gated combine) vs dense pure-JAX reference, using
    # the same gates so top-k tie-breaking cannot cause spurious mismatches.
    out_ref = experts_reference(x_tok, gates, w1, w2).reshape(B, S, D)
    np.testing.assert_allclose(np.asarray(out), np.asarray(out_ref),
                               rtol=2e-2, atol=2e-2)

    print("KERNEL_OK")
</pallas_src>

<mosaic_0001>
module attributes {stable_mosaic.version = 11 : i64} {
  func.func @_router_kernel(%arg0: i32, %arg1: memref<256x128xbf16, #tpu.memory_space<vmem>>, %arg2: memref<128x4xbf16, #tpu.memory_space<vmem>>, %arg3: memref<256x4xf32, #tpu.memory_space<vmem>>) attributes {dimension_semantics = [#tpu.dimension_semantics<parallel>], iteration_bounds = array<i64: 2>, scalar_prefetch = 0 : i64, scratch_operands = 0 : i64, tpu.core_type = #tpu.core_type<tc>, window_params = [{transform_indices = @transform_0, window_bounds = array<i64: 256, 128>}, {pipeline_mode = #tpu.pipeline_mode<synchronous>, transform_indices = @transform_1, window_bounds = array<i64: 128, 4>}, {transform_indices = @transform_2, window_bounds = array<i64: 256, 4>}]} {
    %c0 = arith.constant 0 : index
    %c0_0 = arith.constant 0 : index
    %0 = vector.load %arg1[%c0, %c0_0] : memref<256x128xbf16, #tpu.memory_space<vmem>>, vector<256x128xbf16>
    %c0_1 = arith.constant 0 : index
    %c0_2 = arith.constant 0 : index
    %1 = vector.load %arg2[%c0_1, %c0_2] : memref<128x4xbf16, #tpu.memory_space<vmem>>, vector<128x4xbf16>
    %cst = arith.constant dense<0.000000e+00> : vector<256x4xf32>
    %2 = tpu.matmul %0, %1, %cst {dimension_numbers = #tpu.dot_dimension_numbers<[1], [0], [0], [1], [0, 0, 1, 1], [], []>} : vector<256x128xbf16>, vector<128x4xbf16>, vector<256x4xf32> -> vector<256x4xf32>
    %cst_3 = arith.constant dense<0xFF800000> : vector<256xf32>
    %3 = vector.multi_reduction <maximumf>, %2, %cst_3 [1] : vector<256x4xf32> to vector<256xf32>
    %4 = vector.shape_cast %3 : vector<256xf32> to vector<256x1xf32>
    %5 = vector.broadcast %4 : vector<256x1xf32> to vector<256x4xf32>
    %6 = arith.subf %2, %5 : vector<256x4xf32>
    %7 = math.exp %6 : vector<256x4xf32>
    %cst_4 = arith.constant dense<0.000000e+00> : vector<256xf32>
    %8 = vector.multi_reduction <add>, %7, %cst_4 [1] : vector<256x4xf32> to vector<256xf32>
    %9 = vector.shape_cast %8 : vector<256xf32> to vector<256x1xf32>
    %10 = vector.broadcast %9 : vector<256x1xf32> to vector<256x4xf32>
    %11 = arith.divf %7, %10 : vector<256x4xf32>
    %c0_5 = arith.constant 0 : index
    %c0_6 = arith.constant 0 : index
    %12 = vector.load %arg3[%c0_5, %c0_6] : memref<256x4xf32, #tpu.memory_space<vmem>>, vector<256x4xf32>
    tpu.vector_store %arg3[%c0_5, %c0_6], %11 {strides = array<i32>} : memref<256x4xf32, #tpu.memory_space<vmem>>, vector<256x4xf32>,
    return
  }
  func.func @transform_0(%arg0: i32) -> (i32, i32) {
    %c0_i32 = arith.constant 0 : i32
    %c0_i32_0 = arith.constant 0 : i32
    return %arg0, %c0_i32 : i32, i32
  }
  func.func @transform_1(%arg0: i32) -> (i32, i32) {
    %c0_i32 = arith.constant 0 : i32
    %c0_i32_0 = arith.constant 0 : i32
    %c0_i32_1 = arith.constant 0 : i32
    return %c0_i32, %c0_i32_0 : i32, i32
  }
  func.func @transform_2(%arg0: i32) -> (i32, i32) {
    %c0_i32 = arith.constant 0 : i32
    %c0_i32_0 = arith.constant 0 : i32
    return %arg0, %c0_i32 : i32, i32
  }
}

module attributes {stable_mosaic.version = 11 : i64} {
  func.func @_moe_expert_kernel(%arg0: i32, %arg1: i32, %arg2: i32, %arg3: memref<8xi32, #tpu.memory_space<smem>>, %arg4: memref<16xi32, #tpu.memory_space<smem>>, %arg5: memref<16xi32, #tpu.memory_space<smem>>, %arg6: memref<256x128xbf16, #tpu.memory_space<vmem>>, %arg7: memref<256x4xf32, #tpu.memory_space<vmem>>, %arg8: memref<1x128x128xbf16, #tpu.memory_space<vmem>>, %arg9: memref<1x128x128xbf16, #tpu.memory_space<vmem>>, %arg10: memref<256x128xbf16, #tpu.memory_space<vmem>>, %arg11: memref<256x128xf32, #tpu.memory_space<vmem>>) attributes {dimension_semantics = [#tpu.dimension_semantics<parallel>, #tpu.dimension_semantics<arbitrary>, #tpu.dimension_semantics<arbitrary>], iteration_bounds = array<i64: 2, 4, 2>, scalar_prefetch = 3 : i64, scratch_operands = 1 : i64, tpu.core_type = #tpu.core_type<tc>, window_params = [{transform_indices = @transform_0, window_bounds = array<i64: 256, 128>}, {transform_indices = @transform_1, window_bounds = array<i64: 256, 4>}, {transform_indices = @transform_2, window_bounds = array<i64: 1, 128, 128>}, {transform_indices = @transform_3, window_bounds = array<i64: 1, 128, 128>}, {transform_indices = @transform_4, window_bounds = array<i64: 256, 128>}]} {
    %c0_i32 = arith.constant 0 : i32
    %0 = arith.cmpi eq, %arg1, %c0_i32 : i32
    %c0_i32_0 = arith.constant 0 : i32
    %1 = arith.cmpi eq, %arg2, %c0_i32_0 : i32
    %2 = arith.andi %0, %1 : i1
    %3 = arith.extui %2 : i1 to i32
    %c0_i32_1 = arith.constant 0 : i32
    %4 = arith.cmpi ne, %3, %c0_i32_1 : i32
    scf.if %4 {
      %cst = arith.constant 0.000000e+00 : f32
      %17 = vector.broadcast %cst : f32 to vector<256x128xf32>
      %c0 = arith.constant 0 : index
      %c0_5 = arith.constant 0 : index
      %18 = vector.load %arg11[%c0, %c0_5] : memref<256x128xf32, #tpu.memory_space<vmem>>, vector<256x128xf32>
      tpu.vector_store %arg11[%c0, %c0_5], %17 {strides = array<i32>} : memref<256x128xf32, #tpu.memory_space<vmem>>, vector<256x128xf32>,
    } else {
    }
    %c4_i32 = arith.constant 4 : i32
    %5 = arith.muli %arg0, %c4_i32 : i32
    %6 = arith.addi %5, %arg1 : i32
    %7 = arith.index_cast %6 : i32 to index
    %8 = memref.load %arg3[%7] : memref<8xi32, #tpu.memory_space<smem>>
    %c0_i32_2 = arith.constant 0 : i32
    %9 = arith.cmpi sgt, %8, %c0_i32_2 : i32
    %10 = arith.extui %9 : i1 to i32
    %c0_i32_3 = arith.constant 0 : i32
    %11 = arith.cmpi ne, %10, %c0_i32_3 : i32
    scf.if %11 {
      %c0 = arith.constant 0 : index
      %c0_5 = arith.constant 0 : index
      %17 = vector.load %arg6[%c0, %c0_5] : memref<256x128xbf16, #tpu.memory_space<vmem>>, vector<256x128xbf16>
      %c0_6 = arith.constant 0 : index
      %c0_7 = arith.constant 0 : index
      %c0_8 = arith.constant 0 : index
      %18 = vector.load %arg8[%c0_6, %c0_7, %c0_8] : memref<1x128x128xbf16, #tpu.memory_space<vmem>>, vector<1x128x128xbf16>
      %19 = vector.shape_cast %18 : vector<1x128x128xbf16> to vector<128x128xbf16>
      %cst = arith.constant dense<0.000000e+00> : vector<256x128xf32>
      %20 = tpu.matmul %17, %19, %cst {dimension_numbers = #tpu.dot_dimension_numbers<[1], [0], [0], [1], [0, 0, 1, 1], [], []>} : vector<256x128xbf16>, vector<128x128xbf16>, vector<256x128xf32> -> vector<256x128xf32>
      %21 = arith.mulf %20, %20 : vector<256x128xf32>
      %22 = arith.mulf %20, %21 : vector<256x128xf32>
      %cst_9 = arith.constant 4.471500e-02 : f32
      %23 = vector.broadcast %cst_9 : f32 to vector<256x128xf32>
      %24 = arith.mulf %23, %22 : vector<256x128xf32>
      %25 = arith.addf %20, %24 : vector<256x128xf32>
      %cst_10 = arith.constant 0.797884583 : f32
      %26 = vector.broadcast %cst_10 : f32 to vector<256x128xf32>
      %27 = arith.mulf %26, %25 : vector<256x128xf32>
      %28 = math.tanh %27 : vector<256x128xf32>
      %cst_11 = arith.constant 1.000000e+00 : f32
      %29 = vector.broadcast %cst_11 : f32 to vector<256x128xf32>
      %30 = arith.addf %29, %28 : vector<256x128xf32>
      %cst_12 = arith.constant 5.000000e-01 : f32
      %31 = vector.broadcast %cst_12 : f32 to vector<256x128xf32>
      %32 = arith.mulf %31, %30 : vector<256x128xf32>
      %33 = arith.mulf %20, %32 : vector<256x128xf32>
      %34 = arith.truncf %33 : vector<256x128xf32> to vector<256x128xbf16>
      %c0_13 = arith.constant 0 : index
      %c0_14 = arith.constant 0 : index
      %c0_15 = arith.constant 0 : index
      %35 = vector.load %arg9[%c0_13, %c0_14, %c0_15] : memref<1x128x128xbf16, #tpu.memory_space<vmem>>, vector<1x128x128xbf16>
      %36 = vector.shape_cast %35 : vector<1x128x128xbf16> to vector<128x128xbf16>
      %cst_16 = arith.constant dense<0.000000e+00> : vector<256x128xf32>
      %37 = tpu.matmul %34, %36, %cst_16 {dimension_numbers = #tpu.dot_dimension_numbers<[1], [0], [0], [1], [0, 0, 1, 1], [], []>} : vector<256x128xbf16>, vector<128x128xbf16>, vector<256x128xf32> -> vector<256x128xf32>
      %c0_17 = arith.constant 0 : index
      %c0_18 = arith.constant 0 : index
      %38 = vector.load %arg7[%c0_17, %c0_18] : memref<256x4xf32, #tpu.memory_space<vmem>>, vector<256x4xf32>
      %39 = tpu.iota {dimensions = array<i32: 1>} : vector<256x4xi32>
      %40 = vector.broadcast %arg1 : i32 to vector<256x4xi32>
      %41 = arith.cmpi eq, %39, %40 : vector<256x4xi32>
      %cst_19 = arith.constant 0.000000e+00 : f32
      %42 = vector.broadcast %cst_19 : f32 to vector<256x4xf32>
      %43 = arith.select %41, %38, %42 : vector<256x4xi1>, vector<256x4xf32>
      %cst_20 = arith.constant dense<0.000000e+00> : vector<256xf32>
      %44 = vector.multi_reduction <add>, %43, %cst_20 [1] : vector<256x4xf32> to vector<256xf32>
      %45 = vector.shape_cast %44 : vector<256xf32> to vector<256x1xf32>
      %c0_21 = arith.constant 0 : index
      %c0_22 = arith.constant 0 : index
      %46 = vector.load %arg11[%c0_21, %c0_22] : memref<256x128xf32, #tpu.memory_space<vmem>>, vector<256x128xf32>
      %47 = vector.broadcast %45 : vector<256x1xf32> to vector<256x128xf32>
      %48 = arith.mulf %47, %37 : vector<256x128xf32>
      %49 = arith.addf %46, %48 : vector<256x128xf32>
      %c0_23 = arith.constant 0 : index
      %c0_24 = arith.constant 0 : index
      %50 = vector.load %arg11[%c0_23, %c0_24] : memref<256x128xf32, #tpu.memory_space<vmem>>, vector<256x128xf32>
      tpu.vector_store %arg11[%c0_23, %c0_24], %49 {strides = array<i32>} : memref<256x128xf32, #tpu.memory_space<vmem>>, vector<256x128xf32>,
    } else {
    }
    %c3_i32 = arith.constant 3 : i32
    %12 = arith.cmpi eq, %arg1, %c3_i32 : i32
    %c1_i32 = arith.constant 1 : i32
    %13 = arith.cmpi eq, %arg2, %c1_i32 : i32
    %14 = arith.andi %12, %13 : i1
    %15 = arith.extui %14 : i1 to i32
    %c0_i32_4 = arith.constant 0 : i32
    %16 = arith.cmpi ne, %15, %c0_i32_4 : i32
    scf.if %16 {
      %c0 = arith.constant 0 : index
      %c0_5 = arith.constant 0 : index
      %17 = vector.load %arg11[%c0, %c0_5] : memref<256x128xf32, #tpu.memory_space<vmem>>, vector<256x128xf32>
      %18 = arith.truncf %17 : vector<256x128xf32> to vector<256x128xbf16>
      %c0_6 = arith.constant 0 : index
      %c0_7 = arith.constant 0 : index
      %19 = vector.load %arg10[%c0_6, %c0_7] : memref<256x128xbf16, #tpu.memory_space<vmem>>, vector<256x128xbf16>
      tpu.vector_store %arg10[%c0_6, %c0_7], %18 {strides = array<i32>} : memref<256x128xbf16, #tpu.memory_space<vmem>>, vector<256x128xbf16>,
    } else {
    }
    return
  }
  func.func @transform_0(%arg0: i32, %arg1: i32, %arg2: i32, %arg3: memref<8xi32, #tpu.memory_space<smem>>, %arg4: memref<16xi32, #tpu.memory_space<smem>>, %arg5: memref<16xi32, #tpu.memory_space<smem>>) -> (i32, i32) {
    %c0_i32 = arith.constant 0 : i32
    %c0_i32_0 = arith.constant 0 : i32
    return %arg0, %c0_i32 : i32, i32
  }
  func.func @transform_1(%arg0: i32, %arg1: i32, %arg2: i32, %arg3: memref<8xi32, #tpu.memory_space<smem>>, %arg4: memref<16xi32, #tpu.memory_space<smem>>, %arg5: memref<16xi32, #tpu.memory_space<smem>>) -> (i32, i32) {
    %c0_i32 = arith.constant 0 : i32
    %c0_i32_0 = arith.constant 0 : i32
    return %arg0, %c0_i32 : i32, i32
  }
  func.func @transform_2(%arg0: i32, %arg1: i32, %arg2: i32, %arg3: memref<8xi32, #tpu.memory_space<smem>>, %arg4: memref<16xi32, #tpu.memory_space<smem>>, %arg5: memref<16xi32, #tpu.memory_space<smem>>) -> (i32, i32, i32) {
    %c4_i32 = arith.constant 4 : i32
    %0 = arith.muli %arg0, %c4_i32 : i32
    %1 = arith.addi %0, %arg1 : i32
    %c2_i32 = arith.constant 2 : i32
    %2 = arith.muli %1, %c2_i32 : i32
    %3 = arith.addi %2, %arg2 : i32
    %4 = arith.index_cast %3 : i32 to index
    %5 = memref.load %arg4[%4] : memref<16xi32, #tpu.memory_space<smem>>
    %6 = arith.index_cast %3 : i32 to index
    %7 = memref.load %arg5[%6] : memref<16xi32, #tpu.memory_space<smem>>
    %c0_i32 = arith.constant 0 : i32
    %c0_i32_0 = arith.constant 0 : i32
    return %5, %c0_i32, %7 : i32, i32, i32
  }
  func.func @transform_3(%arg0: i32, %arg1: i32, %arg2: i32, %arg3: memref<8xi32, #tpu.memory_space<smem>>, %arg4: memref<16xi32, #tpu.memory_space<smem>>, %arg5: memref<16xi32, #tpu.memory_space<smem>>) -> (i32, i32, i32) {
    %c4_i32 = arith.constant 4 : i32
    %0 = arith.muli %arg0, %c4_i32 : i32
    %1 = arith.addi %0, %arg1 : i32
    %c2_i32 = arith.constant 2 : i32
    %2 = arith.muli %1, %c2_i32 : i32
    %3 = arith.addi %2, %arg2 : i32
    %4 = arith.index_cast %3 : i32 to index
    %5 = memref.load %arg4[%4] : memref<16xi32, #tpu.memory_space<smem>>
    %6 = arith.index_cast %3 : i32 to index
    %7 = memref.load %arg5[%6] : memref<16xi32, #tpu.memory_space<smem>>
    %c0_i32 = arith.constant 0 : i32
    %c0_i32_0 = arith.constant 0 : i32
    return %5, %7, %c0_i32 : i32, i32, i32
  }
  func.func @transform_4(%arg0: i32, %arg1: i32, %arg2: i32, %arg3: memref<8xi32, #tpu.memory_space<smem>>, %arg4: memref<16xi32, #tpu.memory_space<smem>>, %arg5: memref<16xi32, #tpu.memory_space<smem>>) -> (i32, i32) {
    %c0_i32 = arith.constant 0 : i32
    %c0_i32_0 = arith.constant 0 : i32
    return %arg0, %c0_i32 : i32, i32
  }
}

</mosaic_0001>

<bundles_post_ra>
// kernel: moe_forward_with_aux.2
= control target key start
LH: loop header
LB: loop body
LE: loop exit
PB: predicated region body
PF: predicated region fallthrough
CT: control target
= control target key end

     0   :  { %7 = vsyncpa [#allocation3], 0  ;;  %s2123_s0 = inlined_call_operand.hbm [shape: bf16[512,128], index: 0, kind: input, shape index: {}]   ;;  %s2124_s1 = inlined_call_operand.hbm [shape: bf16[128,4], index: 1, kind: input, shape index: {}]   ;;  %s2125_s2 = inlined_call_operand.hbm [shape: f32[512,4], index: 2, kind: output, shape index: {}]  }
   0x1   :  { %9 = vsyncpa [#allocation3 + $0x1], 0 }
   0x2   :  { %10 = vsyncpa [#allocation6], 0 }
   0x3   :  { %11 = vsyncpa [#allocation4], 0 }
   0x4   :  { %13 = vsyncpa [#allocation4 + $0x1], 0  ;;  %s1510_s9 = smov 0   ;;  %s1512_s10 = smov 0  }
   0x5   :  { %s1514_s11 = smov 0   ;;  %s1516_s12 = smov 0  }
   0x6 LB: > { %s1531_s13 = sadd.s32 4294967295, %s1486_s12   ;;  %s1015_s14 = sadd.s32 4294967294, %s1486_s12   ;;  %s1486_s12 = sphi %s1516_s12, %s2145_s12   ;;  %s1482_s11 = sphi %s1514_s11, %s2144_s11   ;;  %s1478_s10 = sphi %s1512_s10, %s2143_s10   ;;  %s1474_s9 = sphi %s1510_s9, %s2142_s9  }
   0x7   : > { %p39_p0 = scmp.ne.s32.totalorder %s1478_s10, %s1474_s9  ;;  %p2126_p1 = scmp.eq.s32.totalorder %s1531_s13, 0 }
   0x8   : > { %p90_p3 = scmp.eq.s32.totalorder %s1015_s14, 1  ;;  %p1016_p5 = scmp.ge.s32.totalorder %s1486_s12, 1 }
   0x9   : > { %p1540_p4 = por %p2126_p1, %p39_p0  ;;  %p97_p7 = scmp.lt.s32.totalorder %s1486_s12, 3 }
   0xa   : > { %p1545_p6 = por %p90_p3, %p39_p0  ;;  %s1488_s18 = smov [#allocation5]  }
   0xb   : > { %s2129_s15 = scalar_select %p1540_p4, 1, 0 }
   0xc   : > { %s2130_s16 = scalar_select %p1545_p6, 1, 0 }
   0xd   : > { %p1550_p8 = pnand %p1016_p5, %p97_p7  ;;  %s109_s19 = sshll.u32 %s1488_s18, 4  ;;  %s1554_s19 = int_to_ptr.vmem [resolvable:$true] %s109_s19 }
   0xe   : > { %s1566_s21 = sadd.s32 1, %s1486_s12   ;;  %s26_s22 = sadd.s32 1, %s1482_s11 }
   0xf   : > { %s2131_s17 = scalar_select %p1550_p8, 1, 0 }
  0x10   : > { %p1153_p9 = pneg %p1550_p8  ;;  %s23_s23 = ssub.s32 %s1486_s12, %s1566_s21 }
  0x11   : > { %s1358_s26 = scalar_lea.hbm %s2124_s1, 1024 }
  0x12   : > { %p1561_p11 = pnand %p1153_p9, %p2126_p1  ;;  %p1359_p12 = scmp.ne.s32.totalorder %s2124_s1, %s1358_s26 }
  0x13   : > { %p1365_p5 = scmp.lt.u32.totalorder %s1358_s26, %s2124_s1 }
  0x14   : > { %p1360_p13 = pneg %p1561_p11 }
  0x16   : > { %p1361_p0 = pnand %p1360_p13, %p1359_p12 }
  0x18   : > { %p1362_p3 = pneg %p1361_p0 }
  0x1a   : > { %p1367_p7 = pnand %p1365_p5, %p1362_p3 }
  0x1c   : > { %1370 = shalt.err (!%p1367_p7)
}
  0x1d   : > { %s1371_s3 = scalar_lea.vmem %s1554_s19, 1024  ;;  %p1379_p2 = scmp.lt.s32.totalorder %s1554_s19, %s1554_s19 }
  0x1e   : > { %p1372_p9 = scmp.ne.s32.totalorder %s1554_s19, %s1371_s3  ;;  %p1380_p6 = scmp.lt.s32.totalorder %s1371_s3, %s1371_s3 }
  0x20   : > { %p1374_p10 = pnand %p1372_p9, %p1360_p13  ;;  %p1381_p4 = por %p1380_p6, %p1379_p2 }
  0x22   : > { %p1375_p1 = pneg %p1374_p10 }
  0x24   : > { %p1382_p8 = pnand %p1381_p4, %p1375_p1 }
  0x26   : > { %1385 = shalt.err (!%p1382_p8)
}
  0x27   : > { %s1489_s4 = smov 64   ;;  %s1490_s5 = smov 4  }
  0x28   : > { %1156 = dma.hbm_to_vmem [thread:$0]  (!%p1561_p11), %s2124_s1, 1024, %s1554_s19, [#allocation6], %s1489_s4, %s1489_s4, %s1490_s5  }
  0x29   : > { %p24_p1 = scmp.eq.s32.totalorder %s23_s23, 0  ;;  %p33_p2 = scmp.ne.s32.totalorder %s1482_s11, %s1478_s10 }
  0x2a   : > { %p34_p4 = scmp.eq.s32.totalorder %s1486_s12, 0  ;;  %p1166_p6 = scmp.lt.s32.totalorder %s1486_s12, 2 }
  0x2b   : > { %s1600_s8 = scalar_select %p24_p1, %s1482_s11, %s26_s22  }
  0x2c   : > { %p35_p8 = por %p34_p4, %p33_p2  ;;  %p2133_p10 = scmp.eq.s32.totalorder %s1531_s13, 1 }
  0x2d   : > { %s123_s18 = sand.u32 1, %s1482_s11   ;;  %s1055_s20 = sshll.u32 %s1486_s12, 11 }
  0x2e   : > { %p1604_p12 = por %p2133_p10, %p33_p2  ;;  %s1019_s24 = sshll.u32 %s123_s18, 7 }
  0x2f   : > { %s1613_s27 = scalar_lea.hbm %s2123_s0, %s1055_s20  ;;  %s127_s19 = scalar_lea.vmem [#allocation2], %s1019_s24 }
  0x30   : > { %s134_s22 = sshll.u32 %s127_s19, 4  ;;  %p1615_p11 = pnand %p1166_p6, %p35_p8  ;;  %s1619_s22 = int_to_ptr.vmem [resolvable:$true] %s134_s22 }
  0x31   : > { %s1621_s28 = scalar_lea.sflag [#allocation3], %s123_s18  ;;  %s1386_s29 = scalar_lea.hbm %s1613_s27, 2048 }
  0x32   : > { %p1387_p13 = scmp.ne.s32.totalorder %s1613_s27, %s1386_s29  ;;  %p1388_p0 = pneg %p1615_p11 }
  0x33   : > { %s1391_s6 = scalar_lea.hbm %s2123_s0, 4096  ;;  %p1392_p7 = scmp.lt.u32.totalorder %s1613_s27, %s2123_s0 }
  0x34   : > { %p1389_p3 = pnand %p1388_p0, %p1387_p13  ;;  %p1393_p9 = scmp.lt.u32.totalorder %s1391_s6, %s1386_s29 }
  0x35   : > { %p1395_p2 = scmp.lt.u32.totalorder %s1386_s29, %s1613_s27 }
  0x36   : > { %p1390_p5 = pneg %p1389_p3  ;;  %p1394_p1 = por %p1393_p9, %p1392_p7 }
  0x38   : > { %p1396_p4 = por %p1395_p2, %p1394_p1 }
  0x3a   : > { %p1397_p6 = pnand %p1396_p4, %p1390_p5 }
  0x3c   : > { %1400 = shalt.err (!%p1397_p6)
}
  0x3d   : > { %s1401_s18 = scalar_lea.vmem %s1619_s22, 2048  ;;  %s1491_s24 = smov [#allocation2]  }
  0x3e   : > { %p1402_p8 = scmp.ne.s32.totalorder %s1619_s22, %s1401_s18  ;;  %s1406_s25 = sshll.u32 %s1491_s24, 4  ;;  %s1407_s25 = int_to_ptr.vmem [resolvable:$false] %s1406_s25 }
  0x3f   : > { %s1408_s26 = scalar_lea.vmem %s1407_s25, 4096  ;;  %p1409_p3 = scmp.lt.s32.totalorder %s1619_s22, %s1407_s25 }
  0x40   : > { %p1404_p10 = pnand %p1402_p8, %p1388_p0  ;;  %p1410_p7 = scmp.lt.s32.totalorder %s1408_s26, %s1401_s18 }
  0x42   : > { %p1405_p13 = pneg %p1404_p10  ;;  %p1411_p9 = por %p1410_p7, %p1409_p3 }
  0x44   : > { %p1412_p1 = pnand %p1411_p9, %p1405_p13 }
  0x46   : > { %1415 = shalt.err (!%p1412_p1)
}
  0x47   : > { %1160 = dma.hbm_to_vmem [thread:$0]  (!%p1615_p11), %s1613_s27, 2048, %s1619_s22, %s1621_s28, %s1489_s4, %s1489_s4, %s1490_s5  }
  0x48   : > { %p2136_p0 = scmp.ne.s32.totalorder %s2131_s17, 0 }
  0x49   : > { %s1655_s19 = sand.u32 (!%p2136_p0), 1, %s1478_s10   ;;  %p2137_p5 = scmp.ne.s32.totalorder (!%p2136_p0), %s2129_s15, 0 }
  0x4a   : > { %146 = sbr.rel (%p2136_p0) target bundleno = 724 (0x2d4), region = 28  ;;  %s1023_s29 = sshll.u32 (!%p2136_p0), %s1655_s19, 7 }
  0x4b   : > { %s149_s30 = scalar_lea.sflag (!%p2136_p0), [#allocation3], %s1655_s19  ;;  %s1659_s3 = scalar_lea.vmem (!%p2136_p0), [#allocation2], %s1023_s29 }
  0x51   : > { %1461 = dma.done.wait (%p2137_p5), %s149_s30, 2048  }
  0x52   : > { %1463 = vsyncadd (%p2137_p5), %s149_s30, 4294965248  ;;  %p2138_p11 = scmp.eq.s32.totalorder %s1531_s13, 0 }
  0x54   : > { %1465 = dma.done.wait (%p2138_p11), [#allocation6], 1024   ;;  %p2139_p2 = pmov %p2138_p11 }
  0x55   : > { %v1206_v0 = vld [vmem:[#allocation5] sm:$0xff]   ;;  %v1207_v1 = vld [vmem:[#allocation5 + $0x8] sm:$0xff]   ;;  %v1208_v2 = vld [vmem:[#allocation5 + $0x10] sm:$0xff]   ;;  %vm533_vm0 = vcmask 31744   ;;  %s1025_s15 = sshll.u32 %s1655_s19, 8  ;;  %s1056_s4 = sshll.u32 %s1531_s13, 12 }
  0x56   : > { %1467 = vsyncadd (%p2139_p2), [#allocation6], 4294966272  ;;  %1081 = vmatprep.subr.bf16.mxu0 %v1206_v0  ;;  %1129 = vmatprep.subr.bf16.mxu1 %v1206_v0  ;;  %v1209_v3 = vld [vmem:[#allocation5 + $0x18] sm:$0xff]   ;;  %v1214_v4 = vld [vmem:[%s1659_s3] sm:$0xff]   ;;  %s1975_s17 = scalar_lea.vmem [#allocation7], %s1025_s15  ;;  %s2074_s23 = scalar_lea.hbm %s2125_s2, %s1056_s4 }
  0x57   : > { %1082 = vmatpush3.bf16.msra.mxu0 %v1206_v0  ;;  %1137 = vmatpush3.bf16.msra.mxu1 %v1206_v0  ;;  %v1215_v5 = vld [vmem:[%s1659_s3 + $0x40] sm:$0xff]   ;;  %v1211_v7 = vld [vmem:[#allocation5 + $0x28] sm:$0xff]   ;;  %v1212_v8 = vld [vmem:[#allocation5 + $0x30] sm:$0xff]   ;;  %s932_s5 = sshll.u32 %s1975_s17, 4  ;;  %s919_s13 = scalar_lea.sflag [#allocation4], %s1655_s19  ;;  %s2076_s5 = int_to_ptr.vmem [resolvable:$true] %s932_s5 }
  0x58   : > { %1083 = vmatprep.subr.bf16.mxu0 %v1207_v1  ;;  %1130 = vmatprep.subr.bf16.mxu1 %v1207_v1  ;;  %v1210_v6 = vld [vmem:[#allocation5 + $0x20] sm:$0xff]   ;;  %v1213_v9 = vld [vmem:[#allocation5 + $0x38] sm:$0xff]   ;;  %v1216_v10 = vld [vmem:[%s1659_s3 + $0x8] sm:$0xff]   ;;  %s1416_s28 = scalar_lea.vmem %s2076_s5, 4096  ;;  %s1492_s6 = smov [#allocation7]  }
  0x59   : > { %1097 = vmatprep.mubr.bf16.mxu0 %v1214_v4  ;;  %1113 = vmatprep.mubr.bf16.mxu1 %v1215_v5  ;;  %v1217_v11 = vld [vmem:[%s1659_s3 + $0x48] sm:$0xff]   ;;  %v1218_v12 = vld [vmem:[%s1659_s3 + $0x10] sm:$0xff]   ;;  %v1219_v14 = vld [vmem:[%s1659_s3 + $0x18] sm:$0xff]   ;;  %p1417_p4 = scmp.ne.s32.totalorder %s2076_s5, %s1416_s28  ;;  %s1420_s7 = sshll.u32 %s1492_s6, 4  ;;  %s1421_s7 = int_to_ptr.vmem [resolvable:$false] %s1420_s7 }
  0x5a   : > { %v1220_v13 = vld [vmem:[%s1659_s3 + $0x50] sm:$0xff]   ;;  %v1221_v15 = vld [vmem:[%s1659_s3 + $0x58] sm:$0xff]   ;;  %v1222_v16 = vld [vmem:[%s1659_s3 + $0x20] sm:$0xff]   ;;  %s1422_s20 = scalar_lea.vmem %s1421_s7, 8192  ;;  %p1423_p10 = scmp.lt.s32.totalorder %s2076_s5, %s1421_s7 }
  0x5b   : > { %1084 = vmatpush3.bf16.msra.mxu0 %v1207_v1  ;;  %1138 = vmatpush3.bf16.msra.mxu1 %v1207_v1  ;;  %v1224_v17 = vld [vmem:[%s1659_s3 + $0x60] sm:$0xff]   ;;  %v1223_v18 = vld [vmem:[%s1659_s3 + $0x28] sm:$0xff]   ;;  %v1226_v20 = vld [vmem:[%s1659_s3 + $0x30] sm:$0xff]   ;;  %p1418_p6 = pnand %p1417_p4, %p1604_p12  ;;  %p1424_p13 = scmp.lt.s32.totalorder %s1422_s20, %s1416_s28 }
  0x5c   : > { %1085 = vmatprep.subr.bf16.mxu0 %v1208_v2  ;;  %1131 = vmatprep.subr.bf16.mxu1 %v1208_v2  ;;  %v1225_v19 = vld [vmem:[%s1659_s3 + $0x68] sm:$0xff]   ;;  %v1228_v21 = vld [vmem:[%s1659_s3 + $0x70] sm:$0xff]   ;;  %v1227_v22 = vld [vmem:[%s1659_s3 + $0x38] sm:$0xff]  }
  0x5d   : > { %v1229_v23 = vld [vmem:[%s1659_s3 + $0x78] sm:$0xff]   ;;  %p1419_p8 = pneg %p1418_p6  ;;  %p1425_p3 = por %p1424_p13, %p1423_p10 }
  0x5f   : > { %1086 = vmatpush3.bf16.msra.mxu0 %v1208_v2  ;;  %1139 = vmatpush3.bf16.msra.mxu1 %v1208_v2  ;;  %p1426_p7 = pnand %p1425_p3, %p1419_p8 }
  0x60   : > { %1087 = vmatprep.subr.bf16.mxu0 %v1209_v3  ;;  %1132 = vmatprep.subr.bf16.mxu1 %v1209_v3 }
  0x63   : > { %1088 = vmatpush3.bf16.msra.mxu0 %v1209_v3  ;;  %1140 = vmatpush3.bf16.msra.mxu1 %v1209_v3 }
  0x64   : > { %1089 = vmatprep.subr.bf16.mxu0 %v1210_v6  ;;  %1133 = vmatprep.subr.bf16.mxu1 %v1210_v6 }
  0x67   : > { %1090 = vmatpush3.bf16.msra.mxu0 %v1210_v6  ;;  %1141 = vmatpush3.bf16.msra.mxu1 %v1210_v6 }
  0x68   : > { %1091 = vmatprep.subr.bf16.mxu0 %v1211_v7  ;;  %1134 = vmatprep.subr.bf16.mxu1 %v1211_v7 }
  0x6b   : > { %1092 = vmatpush3.bf16.msra.mxu0 %v1211_v7  ;;  %1142 = vmatpush3.bf16.msra.mxu1 %v1211_v7 }
  0x6c   : > { %1093 = vmatprep.subr.bf16.mxu0 %v1212_v8  ;;  %1135 = vmatprep.subr.bf16.mxu1 %v1212_v8 }
  0x6f   : > { %1094 = vmatpush3.bf16.msra.mxu0 %v1212_v8  ;;  %1143 = vmatpush3.bf16.msra.mxu1 %v1212_v8 }
  0x70   : > { %1095 = vmatprep.subr.bf16.mxu0 %v1213_v9  ;;  %1136 = vmatprep.subr.bf16.mxu1 %v1213_v9 }
  0x73   : > { %1096 = vmatpush3.bf16.msra.mxu0 %v1213_v9  ;;  %1144 = vmatpush3.bf16.msra.mxu1 %v1213_v9 }
  0x76   : > { %1098 = vmatmul.mubr.bf16.vlgmr.msra.gmra.mrb[0].mxu0 %v1216_v10  ;;  %1114 = vmatmul.mubr.bf16.vlgmr.msra.gmra.mrb[0].mxu1 %v1217_v11 }
  0x77   : > { %1101 = vmatprep.mubr.bf16.mxu0 %v1218_v12  ;;  %1117 = vmatprep.mubr.bf16.mxu1 %v1220_v13 }
  0x7e   : > { %1102 = vmatmul.mubr.bf16.gmra.mrb[4].mxu0 %v1219_v14  ;;  %1118 = vmatmul.mubr.bf16.gmra.mrb[4].mxu1 %v1221_v15 }
  0x7f   : > { %1105 = vmatprep.mubr.bf16.mxu0 %v1222_v16  ;;  %1121 = vmatprep.mubr.bf16.mxu1 %v1224_v17 }
  0x86   : > { %1106 = vmatmul.mubr.bf16.gmra.mrb[8].mxu0 %v1223_v18  ;;  %1122 = vmatmul.mubr.bf16.gmra.mrb[8].mxu1 %v1225_v19 }
  0x87   : > { %1109 = vmatprep.mubr.bf16.mxu0 %v1226_v20  ;;  %1125 = vmatprep.mubr.bf16.mxu1 %v1228_v21 }
  0x8e   : > { %1110 = vmatmul.mubr.bf16.gmra.mrb[12].mxu0 %v1227_v22  ;;  %1126 = vmatmul.mubr.bf16.gmra.mrb[12].mxu1 %v1229_v23 }
 0x149   : > { %v1685_v24 = vpop.f32.mrb[0].mxu0  ;;  %v1687_v25 = vpop.f32.mrb[0].mxu1 }
 0x14a   : > { %v1689_v26 = vpop.f32.mrb[1].mxu0  ;;  %v1691_v27 = vpop.f32.mrb[1].mxu1  ;;  %v588_v28 = vsel %vm533_vm0, %v1687_v25, -inf  ;;  %v540_v29 = vsel %vm533_vm0, %v1685_v24, -inf }
 0x14b   : > { %589 = vmax.xlane.f32.xlu0 %v588_v28  ;;  %v1697_v30 = vpop.f32.mrb[2].mxu1  ;;  %541 = vmax.xlane.f32.xlu1 %v540_v29  ;;  %v1699_v31 = vpop.f32.mrb[2].mxu0  ;;  %v534_v34 = vsel %vm533_vm0, %v1689_v26, -inf  ;;  %v582_v38 = vsel %vm533_vm0, %v1691_v27, -inf }
 0x14c   : > { %v1701_v32 = vpop.f32.mrb[3].mxu0  ;;  %v1703_v33 = vpop.f32.mrb[3].mxu1  ;;  %v543_v35 = vsel %vm533_vm0, %v1699_v31, -inf  ;;  %v591_v39 = vsel %vm533_vm0, %v1697_v30, -inf }
 0x14d   : > { %v585_v46 = vsel %vm533_vm0, %v1703_v33, -inf  ;;  %v537_v47 = vsel %vm533_vm0, %v1701_v32, -inf }
 0x14f   : > { %535 = vmax.xlane.f32.xlu0 %v534_v34  ;;  %544 = vmax.xlane.f32.xlu1 %v543_v35 }
 0x151   : > { %v1709_v36 = vpop.f32.mrb[4].mxu0  ;;  %v1711_v37 = vpop.f32.mrb[4].mxu1 }
 0x152   : > { %v1717_v40 = vpop.f32.mrb[5].mxu0  ;;  %v1719_v41 = vpop.f32.mrb[5].mxu1  ;;  %v552_v48 = vsel %vm533_vm0, %v1709_v36, -inf  ;;  %v600_v56 = vsel %vm533_vm0, %v1711_v37, -inf }
 0x153   : > { %583 = vmax.xlane.f32.xlu0 %v582_v38  ;;  %592 = vmax.xlane.f32.xlu1 %v591_v39  ;;  %v1721_v42 = vpop.f32.mrb[6].mxu0  ;;  %v1723_v43 = vpop.f32.mrb[6].mxu1  ;;  %v546_v62 = vsel %vm533_vm0, %v1717_v40, -inf  ;;  %v594_v6 = vsel %vm533_vm0, %v1719_v41, -inf }
 0x154   : > { %v1725_v44 = vpop.f32.mrb[7].mxu0  ;;  %v1727_v45 = vpop.f32.mrb[7].mxu1  ;;  %v555_v49 = vsel %vm533_vm0, %v1721_v42, -inf  ;;  %v603_v57 = vsel %vm533_vm0, %v1723_v43, -inf }
 0x155   : > { %v549_v63 = vsel %vm533_vm0, %v1725_v44, -inf  ;;  %v597_v7 = vsel %vm533_vm0, %v1727_v45, -inf }
 0x157   : > { %586 = vmax.xlane.f32.xlu1 %v585_v46  ;;  %538 = vmax.xlane.f32.xlu0 %v537_v47 }
 0x159   : > { %v1737_v50 = vpop.f32.mrb[8].mxu0  ;;  %v1739_v51 = vpop.f32.mrb[8].mxu1 }
 0x15a   : > { %v1741_v52 = vpop.f32.mrb[9].mxu0  ;;  %v1743_v53 = vpop.f32.mrb[9].mxu1  ;;  %v564_v8 = vsel %vm533_vm0, %v1737_v50, -inf  ;;  %v612_v10 = vsel %vm533_vm0, %v1739_v51, -inf }
 0x15b   : > { %553 = vmax.xlane.f32.xlu0 %v552_v48  ;;  %556 = vmax.xlane.f32.xlu1 %v555_v49  ;;  %v1745_v54 = vpop.f32.mrb[10].mxu0  ;;  %v1747_v55 = vpop.f32.mrb[10].mxu1  ;;  %v558_v12 = vsel %vm533_vm0, %v1741_v52, -inf  ;;  %v606_v14 = vsel %vm533_vm0, %v1743_v53, -inf }
 0x15c   : > { %v1753_v58 = vpop.f32.mrb[11].mxu0  ;;  %v1755_v59 = vpop.f32.mrb[11].mxu1  ;;  %v567_v9 = vsel %vm533_vm0, %v1745_v54, -inf  ;;  %v615_v11 = vsel %vm533_vm0, %v1747_v55, -inf }
 0x15d   : > { %v561_v13 = vsel %vm533_vm0, %v1753_v58, -inf  ;;  %v609_v15 = vsel %vm533_vm0, %v1755_v59, -inf }
 0x15f   : > { %601 = vmax.xlane.f32.xlu0 %v600_v56  ;;  %604 = vmax.xlane.f32.xlu1 %v603_v57 }
 0x161   : > { %v1757_v60 = vpop.f32.mrb[12].mxu0  ;;  %v1759_v61 = vpop.f32.mrb[12].mxu1 }
 0x162   : > { %v1765_v0 = vpop.f32.mrb[13].mxu0  ;;  %v1767_v1 = vpop.f32.mrb[13].mxu1  ;;  %v576_v16 = vsel %vm533_vm0, %v1757_v60, -inf  ;;  %v624_v22 = vsel %vm533_vm0, %v1759_v61, -inf }
 0x163   : > { %547 = vmax.xlane.f32.xlu0 %v546_v62  ;;  %550 = vmax.xlane.f32.xlu1 %v549_v63  ;;  %v1769_v2 = vpop.f32.mrb[14].mxu0  ;;  %v1771_v3 = vpop.f32.mrb[14].mxu1  ;;  %v570_v18 = vsel %vm533_vm0, %v1765_v0, -inf  ;;  %v618_v20 = vsel %vm533_vm0, %v1767_v1, -inf }
 0x164   : > { %v1773_v4 = vpop.f32.mrb[15].mxu0  ;;  %v1775_v5 = vpop.f32.mrb[15].mxu1  ;;  %v579_v17 = vsel %vm533_vm0, %v1769_v2, -inf  ;;  %v627_v23 = vsel %vm533_vm0, %v1771_v3, -inf }
 0x165   : > { %v573_v19 = vsel %vm533_vm0, %v1773_v4, -inf  ;;  %v621_v21 = vsel %vm533_vm0, %v1775_v5, -inf }
 0x167   : > { %595 = vmax.xlane.f32.xlu0 %v594_v6  ;;  %598 = vmax.xlane.f32.xlu1 %v597_v7 }
 0x16b   : > { %565 = vmax.xlane.f32.xlu0 %v564_v8  ;;  %568 = vmax.xlane.f32.xlu1 %v567_v9 }
 0x16f   : > { %613 = vmax.xlane.f32.xlu0 %v612_v10  ;;  %616 = vmax.xlane.f32.xlu1 %v615_v11 }
 0x173   : > { %559 = vmax.xlane.f32.xlu0 %v558_v12  ;;  %562 = vmax.xlane.f32.xlu1 %v561_v13 }
 0x177   : > { %607 = vmax.xlane.f32.xlu0 %v606_v14  ;;  %610 = vmax.xlane.f32.xlu1 %v609_v15 }
 0x17b   : > { %577 = vmax.xlane.f32.xlu0 %v576_v16  ;;  %580 = vmax.xlane.f32.xlu1 %v579_v17 }
 0x17f   : > { %571 = vmax.xlane.f32.xlu0 %v570_v18  ;;  %574 = vmax.xlane.f32.xlu1 %v573_v19 }
 0x183   : > { %619 = vmax.xlane.f32.xlu0 %v618_v20  ;;  %622 = vmax.xlane.f32.xlu1 %v621_v21 }
 0x187   : > { %625 = vmax.xlane.f32.xlu0 %v624_v22  ;;  %628 = vmax.xlane.f32.xlu1 %v627_v23 }
 0x1d8   : > { %v590_v28 = vpop.xlane.xlu0 %589  ;;  %v542_v29 = vpop.xlane.xlu1 %541 }
 0x1d9   : > { %v648_v34 = vsub.f32 %v1687_v25, %v590_v28  ;;  %v632_v35 = vsub.f32 %v1685_v24, %v542_v29 }
 0x1db   : > { %v698_v38 = vmul.f32 1.442695, %v648_v34  ;;  %v666_v39 = vmul.f32 1.442695, %v632_v35 }
 0x1dc   : > { %v536_v46 = vpop.xlane.xlu0 %535  ;;  %v545_v47 = vpop.xlane.xlu1 %544 }
 0x1dd   : > { %v630_v48 = vsub.f32 %v1689_v26, %v536_v46  ;;  %v633_v49 = vsub.f32 %v1699_v31, %v545_v47  ;;  %1230 = vpow2.f32 %v666_v39 }
 0x1de   : > { %1232 = vpow2.f32 %v698_v38 }
 0x1df   : > { %v662_v56 = vmul.f32 1.442695, %v630_v48  ;;  %v668_v57 = vmul.f32 1.442695, %v633_v49 }
 0x1e0   : > { %v584_v62 = vpop.xlane.xlu0 %583  ;;  %v593_v63 = vpop.xlane.xlu1 %592 }
 0x1e1   : > { %v646_v6 = vsub.f32 %v1691_v27, %v584_v62  ;;  %v649_v25 = vsub.f32 %v1697_v30, %v593_v63  ;;  %1234 = vpow2.f32 %v668_v57 }
 0x1e2   : > { %1236 = vpow2.f32 %v662_v56 }
 0x1e3   : > { %v694_v24 = vmul.f32 1.442695, %v646_v6  ;;  %v700_v7 = vmul.f32 1.442695, %v649_v25 }
 0x1e4   : > { %v587_v8 = vpop.xlane.xlu1 %586  ;;  %v539_v9 = vpop.xlane.xlu0 %538 }
 0x1e5   : > { %v647_v26 = vsub.f32 %v1703_v33, %v587_v8  ;;  %v631_v31 = vsub.f32 %v1701_v32, %v539_v9  ;;  %1238 = vpow2.f32 %v700_v7 }
 0x1e6   : > { %1240 = vpow2.f32 %v694_v24 }
 0x1e7   : > { %v664_v10 = vmul.f32 1.442695, %v631_v31  ;;  %v1821_v11 = vpop.eup %1230  ;;  %v696_v12 = vmul.f32 1.442695, %v647_v26 }
 0x1e8   : > { %v554_v13 = vpop.xlane.xlu0 %553  ;;  %v557_v27 = vpop.xlane.xlu1 %556  ;;  %v732_v16 = vsel %vm533_vm0, %v1821_v11, 0.0 }
 0x1e9   : > { %v1823_v14 = vpop.eup %1232  ;;  %v636_v30 = vsub.f32 %v1709_v36, %v554_v13  ;;  %v637_v15 = vsub.f32 %v1721_v42, %v557_v27  ;;  %1242 = vpow2.f32 %v664_v10  ;;  %733 = vadd.xlane.f32.xlu0 %v732_v16 }
 0x1ea   : > { %1244 = vpow2.f32 %v696_v12  ;;  %v780_v20 = vsel %vm533_vm0, %v1823_v14, 0.0 }
 0x1eb   : > { %v674_v32 = vmul.f32 1.442695, %v636_v30  ;;  %v1829_v33 = vpop.eup %1234  ;;  %v676_v17 = vmul.f32 1.442695, %v637_v15 }
 0x1ec   : > { %v602_v18 = vpop.xlane.xlu0 %601  ;;  %v605_v19 = vpop.xlane.xlu1 %604  ;;  %v735_v22 = vsel %vm533_vm0, %v1829_v33, 0.0 }
 0x1ed   : > { %v1833_v21 = vpop.eup %1236  ;;  %1246 = vpow2.f32 %v674_v32  ;;  %v652_v36 = vsub.f32 %v1711_v37, %v602_v18  ;;  %v653_v42 = vsub.f32 %v1723_v43, %v605_v19  ;;  %781 = vadd.xlane.f32.xlu0 %v780_v20  ;;  %736 = vadd.xlane.f32.xlu1 %v735_v22 }
 0x1ee   : > { %1248 = vpow2.f32 %v676_v17  ;;  %v726_v38 = vsel %vm533_vm0, %v1833_v21, 0.0 }
 0x1ef   : > { %v706_v23 = vmul.f32 1.442695, %v652_v36  ;;  %v1839_v28 = vpop.eup %1238  ;;  %v708_v29 = vmul.f32 1.442695, %v653_v42 }
 0x1f0   : > { %v548_v34 = vpop.xlane.xlu0 %547  ;;  %v551_v35 = vpop.xlane.xlu1 %550  ;;  %v783_v46 = vsel %vm533_vm0, %v1839_v28, 0.0 }
 0x1f1   : > { %v1843_v39 = vpop.eup %1240  ;;  %1250 = vpow2.f32 %v706_v23  ;;  %v634_v37 = vsub.f32 %v1717_v40, %v548_v34  ;;  %v635_v43 = vsub.f32 %v1725_v44, %v551_v35  ;;  %727 = vadd.xlane.f32.xlu0 %v726_v38  ;;  %784 = vadd.xlane.f32.xlu1 %v783_v46 }
 0x1f2   : > { %1252 = vpow2.f32 %v708_v29  ;;  %v774_v62 = vsel %vm533_vm0, %v1843_v39, 0.0 }
 0x1f3   : > { %v670_v47 = vmul.f32 1.442695, %v634_v37  ;;  %v1849_v48 = vpop.eup %1242  ;;  %v672_v49 = vmul.f32 1.442695, %v635_v43 }
 0x1f4   : > { %v596_v56 = vpop.xlane.xlu0 %595  ;;  %v599_v57 = vpop.xlane.xlu1 %598  ;;  %v729_v63 = vsel %vm533_vm0, %v1849_v48, 0.0 }
 0x1f5   : > { %1254 = vpow2.f32 %v670_v47  ;;  %v650_v40 = vsub.f32 %v1719_v41, %v596_v56  ;;  %v651_v44 = vsub.f32 %v1727_v45, %v599_v57  ;;  %v1857_v6 = vpop.eup %1244  ;;  %775 = vadd.xlane.f32.xlu0 %v774_v62  ;;  %730 = vadd.xlane.f32.xlu1 %v729_v63 }
 0x1f6   : > { %1256 = vpow2.f32 %v672_v49  ;;  %v777_v31 = vsel %vm533_vm0, %v1857_v6, 0.0 }
 0x1f7   : > { %v1859_v25 = vpop.eup %1246  ;;  %v702_v24 = vmul.f32 1.442695, %v650_v40  ;;  %v704_v7 = vmul.f32 1.442695, %v651_v44 }
 0x1f8   : > { %v566_v8 = vpop.xlane.xlu0 %565  ;;  %v569_v9 = vpop.xlane.xlu1 %568  ;;  %v744_v26 = vsel %vm533_vm0, %v1859_v25, 0.0 }
 0x1f9   : > { %1258 = vpow2.f32 %v702_v24  ;;  %v640_v41 = vsub.f32 %v1737_v50, %v566_v8  ;;  %v641_v45 = vsub.f32 %v1745_v54, %v569_v9  ;;  %v1867_v10 = vpop.eup %1248  ;;  %745 = vadd.xlane.f32.xlu0 %v744_v26  ;;  %778 = vadd.xlane.f32.xlu1 %v777_v31 }
 0x1fa   : > { %1260 = vpow2.f32 %v704_v7  ;;  %v747_v32 = vsel %vm533_vm0, %v1867_v10, 0.0 }
 0x1fb   : > { %v1869_v12 = vpop.eup %1250  ;;  %v682_v13 = vmul.f32 1.442695, %v640_v41  ;;  %v684_v27 = vmul.f32 1.442695, %v641_v45 }
 0x1fc   : > { %v614_v30 = vpop.xlane.xlu0 %613  ;;  %v617_v15 = vpop.xlane.xlu1 %616  ;;  %v792_v16 = vsel %vm533_vm0, %v1869_v12, 0.0 }
 0x1fd   : > { %1262 = vpow2.f32 %v682_v13  ;;  %v656_v50 = vsub.f32 %v1739_v51, %v614_v30  ;;  %v657_v54 = vsub.f32 %v1747_v55, %v617_v15  ;;  %v1877_v17 = vpop.eup %1252  ;;  %793 = vadd.xlane.f32.xlu0 %v792_v16  ;;  %748 = vadd.xlane.f32.xlu1 %v747_v32 }
 0x1fe   : > { %1264 = vpow2.f32 %v684_v27  ;;  %v795_v23 = vsel %vm533_vm0, %v1877_v17, 0.0 }
 0x1ff   : > { %v1879_v18 = vpop.eup %1254  ;;  %v714_v19 = vmul.f32 1.442695, %v656_v50  ;;  %v716_v20 = vmul.f32 1.442695, %v657_v54 }
 0x200   : > { %v560_v36 = vpop.xlane.xlu0 %559  ;;  %v563_v42 = vpop.xlane.xlu1 %562  ;;  %v738_v22 = vsel %vm533_vm0, %v1879_v18, 0.0 }
 0x201   : > { %1266 = vpow2.f32 %v714_v19  ;;  %v638_v51 = vsub.f32 %v1741_v52, %v560_v36  ;;  %v639_v55 = vsub.f32 %v1753_v58, %v563_v42  ;;  %v1887_v29 = vpop.eup %1256  ;;  %739 = vadd.xlane.f32.xlu0 %v738_v22  ;;  %796 = vadd.xlane.f32.xlu1 %v795_v23 }
 0x202   : > { %1268 = vpow2.f32 %v716_v20  ;;  %v741_v47 = vsel %vm533_vm0, %v1887_v29, 0.0 }
 0x203   : > { %v1889_v34 = vpop.eup %1258  ;;  %v678_v35 = vmul.f32 1.442695, %v638_v51  ;;  %v680_v38 = vmul.f32 1.442695, %v639_v55 }
 0x204   : > { %v608_v37 = vpop.xlane.xlu0 %607  ;;  %v611_v43 = vpop.xlane.xlu1 %610  ;;  %v786_v46 = vsel %vm533_vm0, %v1889_v34, 0.0 }
 0x205   : > { %1270 = vpow2.f32 %v678_v35  ;;  %v654_v52 = vsub.f32 %v1743_v53, %v608_v37  ;;  %v655_v58 = vsub.f32 %v1755_v59, %v611_v43  ;;  %v1897_v49 = vpop.eup %1260  ;;  %787 = vadd.xlane.f32.xlu0 %v786_v46  ;;  %742 = vadd.xlane.f32.xlu1 %v741_v47 }
 0x206   : > { %1272 = vpow2.f32 %v680_v38  ;;  %v789_v24 = vsel %vm533_vm0, %v1897_v49, 0.0 }
 0x207   : > { %v1899_v56 = vpop.eup %1262  ;;  %v710_v57 = vmul.f32 1.442695, %v654_v52  ;;  %v712_v62 = vmul.f32 1.442695, %v655_v58 }
 0x208   : > { %v578_v40 = vpop.xlane.xlu0 %577  ;;  %v581_v44 = vpop.xlane.xlu1 %580  ;;  %v756_v63 = vsel %vm533_vm0, %v1899_v56, 0.0 }
 0x209   : > { %1274 = vpow2.f32 %v710_v57  ;;  %v644_v53 = vsub.f32 %v1757_v60, %v578_v40  ;;  %v645_v59 = vsub.f32 %v1769_v2, %v581_v44  ;;  %v1907_v7 = vpop.eup %1264  ;;  %757 = vadd.xlane.f32.xlu0 %v756_v63  ;;  %790 = vadd.xlane.f32.xlu1 %v789_v24 }
 0x20a   : > { %1276 = vpow2.f32 %v712_v62  ;;  %v759_v13 = vsel %vm533_vm0, %v1907_v7, 0.0 }
 0x20b   : > { %v1909_v8 = vpop.eup %1266  ;;  %v690_v9 = vmul.f32 1.442695, %v644_v53  ;;  %v692_v26 = vmul.f32 1.442695, %v645_v59 }
 0x20c   : > { %v572_v41 = vpop.xlane.xlu0 %571  ;;  %v575_v45 = vpop.xlane.xlu1 %574  ;;  %v804_v31 = vsel %vm533_vm0, %v1909_v8, 0.0 }
 0x20d   : > { %1278 = vpow2.f32 %v690_v9  ;;  %v642_v60 = vsub.f32 %v1765_v0, %v572_v41  ;;  %v643_v2 = vsub.f32 %v1773_v4, %v575_v45  ;;  %v1917_v27 = vpop.eup %1268  ;;  %805 = vadd.xlane.f32.xlu0 %v804_v31  ;;  %760 = vadd.xlane.f32.xlu1 %v759_v13 }
 0x20e   : > { %1280 = vpow2.f32 %v692_v26  ;;  %v807_v19 = vsel %vm533_vm0, %v1917_v27, 0.0 }
 0x20f   : > { %v1919_v30 = vpop.eup %1270  ;;  %v686_v15 = vmul.f32 1.442695, %v642_v60  ;;  %v688_v16 = vmul.f32 1.442695, %v643_v2 }
 0x210   : > { %v620_v50 = vpop.xlane.xlu0 %619  ;;  %v623_v54 = vpop.xlane.xlu1 %622  ;;  %v750_v32 = vsel %vm533_vm0, %v1919_v30, 0.0 }
 0x211   : > { %1282 = vpow2.f32 %v686_v15  ;;  %v658_v0 = vsub.f32 %v1767_v1, %v620_v50  ;;  %v659_v4 = vsub.f32 %v1775_v5, %v623_v54  ;;  %v1927_v20 = vpop.eup %1272  ;;  %751 = vadd.xlane.f32.xlu0 %v750_v32  ;;  %808 = vadd.xlane.f32.xlu1 %v807_v19 }
 0x212   : > { %1284 = vpow2.f32 %v688_v16  ;;  %v753_v35 = vsel %vm533_vm0, %v1927_v20, 0.0 }
 0x213   : > { %v1929_v36 = vpop.eup %1274  ;;  %v718_v42 = vmul.f32 1.442695, %v658_v0  ;;  %v720_v22 = vmul.f32 1.442695, %v659_v4 }
 0x214   : > { %v626_v51 = vpop.xlane.xlu0 %625  ;;  %v629_v55 = vpop.xlane.xlu1 %628  ;;  %v798_v23 = vsel %vm533_vm0, %v1929_v36, 0.0 }
 0x215   : > { %1286 = vpow2.f32 %v718_v42  ;;  %v660_v1 = vsub.f32 %v1759_v61, %v626_v51  ;;  %v661_v5 = vsub.f32 %v1771_v3, %v629_v55  ;;  %v1937_v38 = vpop.eup %1276  ;;  %799 = vadd.xlane.f32.xlu0 %v798_v23  ;;  %754 = vadd.xlane.f32.xlu1 %v753_v35 }
 0x216   : > { %1288 = vpow2.f32 %v720_v22  ;;  %v801_v61 = vsel %vm533_vm0, %v1937_v38, 0.0 }
 0x217   : > { %v1939_v37 = vpop.eup %1278  ;;  %v722_v43 = vmul.f32 1.442695, %v660_v1  ;;  %v724_v46 = vmul.f32 1.442695, %v661_v5 }
 0x218   : > { %v768_v52 = vsel %vm533_vm0, %v1939_v37, 0.0  ;;  %v1945_v3 = vpop.eup %1280 }
 0x219   : > { %1290 = vpow2.f32 %v722_v43  ;;  %769 = vadd.xlane.f32.xlu0 %v768_v52  ;;  %802 = vadd.xlane.f32.xlu1 %v801_v61  ;;  %v771_v57 = vsel %vm533_vm0, %v1945_v3, 0.0 }
 0x21a   : > { %1292 = vpow2.f32 %v724_v46 }
 0x21b   : > { %v1947_v58 = vpop.eup %1282 }
 0x21c   : > { %v762_v47 = vsel %vm533_vm0, %v1947_v58, 0.0  ;;  %v1953_v62 = vpop.eup %1284 }
 0x21d   : > { %763 = vadd.xlane.f32.xlu0 %v762_v47  ;;  %772 = vadd.xlane.f32.xlu1 %v771_v57  ;;  %v765_v63 = vsel %vm533_vm0, %v1953_v62, 0.0 }
 0x21f   : > { %v1955_v40 = vpop.eup %1286 }
 0x220   : > { %v810_v44 = vsel %vm533_vm0, %v1955_v40, 0.0  ;;  %v1961_v53 = vpop.eup %1288 }
 0x221   : > { %811 = vadd.xlane.f32.xlu0 %v810_v44  ;;  %766 = vadd.xlane.f32.xlu1 %v765_v63  ;;  %v813_v9 = vsel %vm533_vm0, %v1961_v53, 0.0 }
 0x223   : > { %v1963_v59 = vpop.eup %1290 }
 0x224   : > { %v816_v24 = vsel %vm533_vm0, %v1963_v59, 0.0  ;;  %v1969_v26 = vpop.eup %1292 }
 0x225   : > { %817 = vadd.xlane.f32.xlu0 %v816_v24  ;;  %814 = vadd.xlane.f32.xlu1 %v813_v9  ;;  %v819_v41 = vsel %vm533_vm0, %v1969_v26, 0.0 }
 0x229   : > { %820 = vadd.xlane.f32.xlu1 %v819_v41 }
 0x276   : > { %v734_v45 = vpop.xlane.xlu0 %733 }
 0x277   : > { %1294 = vrcp.f32 %v734_v45 }
 0x27a   : > { %v782_v31 = vpop.xlane.xlu0 %781  ;;  %v737_v60 = vpop.xlane.xlu1 %736 }
 0x27b   : > { %1296 = vrcp.f32 %v782_v31 }
 0x27c   : > { %1298 = vrcp.f32 %v737_v60 }
 0x27e   : > { %v728_v2 = vpop.xlane.xlu0 %727  ;;  %v785_v13 = vpop.xlane.xlu1 %784 }
 0x27f   : > { %1300 = vrcp.f32 %v728_v2 }
 0x280   : > { %1302 = vrcp.f32 %v785_v13 }
 0x281   : > { %v1295_v15 = vpop.eup %1294 }
 0x282   : > { %v827_v16 = vmul.f32 %v1295_v15, %v1821_v11  ;;  %v776_v50 = vpop.xlane.xlu0 %775  ;;  %v731_v54 = vpop.xlane.xlu1 %730 }
 0x283   : > { %1304 = vrcp.f32 %v776_v50 }
 0x284   : > { %888 = vst.msk [vmem:[%s1975_s17 + $0x10] sm:$0xff] %vm533_vm0, %v827_v16  ;;  %1306 = vrcp.f32 %v731_v54 }
 0x285   : > { %v1297_v32 = vpop.eup %1296 }
 0x286   : > { %v1299_v0 = vpop.eup %1298  ;;  %v859_v4 = vmul.f32 %v1297_v32, %v1823_v14  ;;  %v746_v19 = vpop.xlane.xlu0 %745 }
 0x287   : > { %v779_v42 = vpop.xlane.xlu1 %778  ;;  %v829_v11 = vmul.f32 %v1299_v0, %v1829_v33  ;;  %1308 = vrcp.f32 %v746_v19 }
 0x288   : > { %904 = vst.msk [vmem:[%s1975_s17 + $0x90] sm:$0xff] %vm533_vm0, %v859_v4  ;;  %1310 = vrcp.f32 %v779_v42 }
 0x289   : > { %v1301_v22 = vpop.eup %1300  ;;  %889 = vst.msk [vmem:[%s1975_s17 + $0x18] sm:$0xff] %vm533_vm0, %v829_v11 }
 0x28a   : > { %v1303_v51 = vpop.eup %1302  ;;  %v823_v55 = vmul.f32 %v1301_v22, %v1833_v21  ;;  %v794_v23 = vpop.xlane.xlu0 %793 }
 0x28b   : > { %v749_v1 = vpop.xlane.xlu1 %748  ;;  %v861_v14 = vmul.f32 %v1303_v51, %v1839_v28  ;;  %1312 = vrcp.f32 %v794_v23 }
 0x28c   : > { %886 = vst.msk [vmem:[%s1975_s17] sm:$0xff] %vm533_vm0, %v823_v55  ;;  %1314 = vrcp.f32 %v749_v1 }
 0x28d   : > { %v1305_v33 = vpop.eup %1304  ;;  %905 = vst.msk [vmem:[%s1975_s17 + $0x98] sm:$0xff] %vm533_vm0, %v861_v14 }
 0x28e   : > { %v1307_v5 = vpop.eup %1306  ;;  %v855_v35 = vmul.f32 %v1305_v33, %v1843_v39  ;;  %v740_v43 = vpop.xlane.xlu0 %739 }
 0x28f   : > { %v797_v46 = vpop.xlane.xlu1 %796  ;;  %v825_v21 = vmul.f32 %v1307_v5, %v1849_v48  ;;  %1316 = vrcp.f32 %v740_v43 }
 0x290   : > { %902 = vst.msk [vmem:[%s1975_s17 + $0x80] sm:$0xff] %vm533_vm0, %v855_v35  ;;  %1318 = vrcp.f32 %v797_v46 }
 0x291   : > { %v1309_v28 = vpop.eup %1308  ;;  %887 = vst.msk [vmem:[%s1975_s17 + $0x8] sm:$0xff] %vm533_vm0, %v825_v21 }
 0x292   : > { %v1311_v52 = vpop.eup %1310  ;;  %v835_v61 = vmul.f32 %v1309_v28, %v1859_v25  ;;  %v788_v47 = vpop.xlane.xlu0 %787 }
 0x293   : > { %v743_v57 = vpop.xlane.xlu1 %742  ;;  %v857_v39 = vmul.f32 %v1311_v52, %v1857_v6  ;;  %1320 = vrcp.f32 %v788_v47 }
 0x294   : > { %892 = vst.msk [vmem:[%s1975_s17 + $0x30] sm:$0xff] %vm533_vm0, %v835_v61  ;;  %1322 = vrcp.f32 %v743_v57 }
 0x295   : > { %v1313_v48 = vpop.eup %1312  ;;  %903 = vst.msk [vmem:[%s1975_s17 + $0x88] sm:$0xff] %vm533_vm0, %v857_v39 }
 0x296   : > { %v1315_v44 = vpop.eup %1314  ;;  %v867_v63 = vmul.f32 %v1313_v48, %v1869_v12  ;;  %v758_v24 = vpop.xlane.xlu0 %757 }
 0x297   : > { %v791_v9 = vpop.xlane.xlu1 %790  ;;  %v837_v25 = vmul.f32 %v1315_v44, %v1867_v10  ;;  %1324 = vrcp.f32 %v758_v24 }
 0x298   : > { %908 = vst.msk [vmem:[%s1975_s17 + $0xb0] sm:$0xff] %vm533_vm0, %v867_v63  ;;  %1326 = vrcp.f32 %v791_v9 }
 0x299   : > { %v1317_v6 = vpop.eup %1316  ;;  %893 = vst.msk [vmem:[%s1975_s17 + $0x38] sm:$0xff] %vm533_vm0, %v837_v25 }
 0x29a   : > { %v1319_v41 = vpop.eup %1318  ;;  %v831_v45 = vmul.f32 %v1317_v6, %v1879_v18  ;;  %v806_v31 = vpop.xlane.xlu0 %805 }
 0x29b   : > { %v761_v60 = vpop.xlane.xlu1 %760  ;;  %v869_v12 = vmul.f32 %v1319_v41, %v1877_v17  ;;  %1328 = vrcp.f32 %v806_v31 }
 0x29c   : > { %890 = vst.msk [vmem:[%s1975_s17 + $0x20] sm:$0xff] %vm533_vm0, %v831_v45  ;;  %1330 = vrcp.f32 %v761_v60 }
 0x29d   : > { %v1321_v10 = vpop.eup %1320  ;;  %909 = vst.msk [vmem:[%s1975_s17 + $0xb8] sm:$0xff] %vm533_vm0, %v869_v12 }
 0x29e   : > { %v1323_v2 = vpop.eup %1322  ;;  %v863_v13 = vmul.f32 %v1321_v10, %v1889_v34  ;;  %v752_v15 = vpop.xlane.xlu0 %751 }
 0x29f   : > { %v809_v16 = vpop.xlane.xlu1 %808  ;;  %v833_v18 = vmul.f32 %v1323_v2, %v1887_v29  ;;  %1332 = vrcp.f32 %v752_v15 }
 0x2a0   : > { %906 = vst.msk [vmem:[%s1975_s17 + $0xa0] sm:$0xff] %vm533_vm0, %v863_v13  ;;  %1334 = vrcp.f32 %v809_v16 }
 0x2a1   : > { %v1325_v17 = vpop.eup %1324  ;;  %891 = vst.msk [vmem:[%s1975_s17 + $0x28] sm:$0xff] %vm533_vm0, %v833_v18 }
 0x2a2   : > { %v1327_v50 = vpop.eup %1326  ;;  %v843_v54 = vmul.f32 %v1325_v17, %v1899_v56  ;;  %v800_v32 = vpop.xlane.xlu0 %799 }
 0x2a3   : > { %v755_v0 = vpop.xlane.xlu1 %754  ;;  %v865_v34 = vmul.f32 %v1327_v50, %v1897_v49  ;;  %1336 = vrcp.f32 %v800_v32 }
 0x2a4   : > { %896 = vst.msk [vmem:[%s1975_s17 + $0x50] sm:$0xff] %vm533_vm0, %v843_v54  ;;  %1338 = vrcp.f32 %v755_v0 }
 0x2a5   : > { %v1329_v29 = vpop.eup %1328  ;;  %907 = vst.msk [vmem:[%s1975_s17 + $0xa8] sm:$0xff] %vm533_vm0, %v865_v34 }
 0x2a6   : > { %v1331_v4 = vpop.eup %1330  ;;  %v875_v19 = vmul.f32 %v1329_v29, %v1909_v8  ;;  %v770_v42 = vpop.xlane.xlu0 %769 }
 0x2a7   : > { %v803_v11 = vpop.xlane.xlu1 %802  ;;  %v845_v56 = vmul.f32 %v1331_v4, %v1907_v7  ;;  %1340 = vrcp.f32 %v770_v42 }
 0x2a8   : > { %912 = vst.msk [vmem:[%s1975_s17 + $0xd0] sm:$0xff] %vm533_vm0, %v875_v19  ;;  %1342 = vrcp.f32 %v803_v11 }
 0x2a9   : > { %v1333_v49 = vpop.eup %1332  ;;  %897 = vst.msk [vmem:[%s1975_s17 + $0x58] sm:$0xff] %vm533_vm0, %v845_v56 }
 0x2aa   : > { %v1335_v22 = vpop.eup %1334  ;;  %v839_v51 = vmul.f32 %v1333_v49, %v1919_v30  ;;  %v764_v55 = vpop.xlane.xlu0 %763 }
 0x2ab   : > { %v773_v23 = vpop.xlane.xlu1 %772  ;;  %v877_v8 = vmul.f32 %v1335_v22, %v1917_v27  ;;  %1344 = vrcp.f32 %v764_v55 }
 0x2ac   : > { %894 = vst.msk [vmem:[%s1975_s17 + $0x40] sm:$0xff] %vm533_vm0, %v839_v51  ;;  %1346 = vrcp.f32 %v773_v23 }
 0x2ad   : > { %v1337_v7 = vpop.eup %1336  ;;  %913 = vst.msk [vmem:[%s1975_s17 + $0xd8] sm:$0xff] %vm533_vm0, %v877_v8 }
 0x2ae   : > { %v1339_v1 = vpop.eup %1338  ;;  %v871_v14 = vmul.f32 %v1337_v7, %v1929_v36  ;;  %v812_v33 = vpop.xlane.xlu0 %811 }
 0x2af   : > { %v767_v5 = vpop.xlane.xlu1 %766  ;;  %v841_v30 = vmul.f32 %v1339_v1, %v1927_v20  ;;  %1348 = vrcp.f32 %v812_v33 }
 0x2b0   : > { %910 = vst.msk [vmem:[%s1975_s17 + $0xc0] sm:$0xff] %vm533_vm0, %v871_v14  ;;  %1350 = vrcp.f32 %v767_v5 }
 0x2b1   : > { %v1341_v27 = vpop.eup %1340  ;;  %895 = vst.msk [vmem:[%s1975_s17 + $0x48] sm:$0xff] %vm533_vm0, %v841_v30 }
 0x2b2   : > { %v1343_v35 = vpop.eup %1342  ;;  %v851_v43 = vmul.f32 %v1341_v27, %v1939_v37  ;;  %v818_v46 = vpop.xlane.xlu0 %817 }
 0x2b3   : > { %v815_v21 = vpop.xlane.xlu1 %814  ;;  %v873_v36 = vmul.f32 %v1343_v35, %v1937_v38  ;;  %1352 = vrcp.f32 %v818_v46 }
 0x2b4   : > { %900 = vst.msk [vmem:[%s1975_s17 + $0x70] sm:$0xff] %vm533_vm0, %v851_v43  ;;  %1354 = vrcp.f32 %v815_v21 }
 0x2b5   : > { %v1345_v20 = vpop.eup %1344  ;;  %911 = vst.msk [vmem:[%s1975_s17 + $0xc8] sm:$0xff] %vm533_vm0, %v873_v36 }
 0x2b6   : > { %v1347_v28 = vpop.eup %1346  ;;  %v847_v52 = vmul.f32 %v1345_v20, %v1947_v58 }
 0x2b7   : > { %v821_v37 = vpop.xlane.xlu1 %820  ;;  %v853_v61 = vmul.f32 %v1347_v28, %v1945_v3 }
 0x2b8   : > { %1356 = vrcp.f32 %v821_v37  ;;  %898 = vst.msk [vmem:[%s1975_s17 + $0x60] sm:$0xff] %vm533_vm0, %v847_v52 }
 0x2b9   : > { %v1349_v38 = vpop.eup %1348  ;;  %901 = vst.msk [vmem:[%s1975_s17 + $0x78] sm:$0xff] %vm533_vm0, %v853_v61 }
 0x2ba   : > { %v1351_v47 = vpop.eup %1350  ;;  %v879_v57 = vmul.f32 %v1349_v38, %v1955_v40 }
 0x2bb   : > { %v849_v39 = vmul.f32 %v1351_v47, %v1953_v62 }
 0x2bc   : > { %914 = vst.msk [vmem:[%s1975_s17 + $0xe0] sm:$0xff] %vm533_vm0, %v879_v57 }
 0x2bd   : > { %v1353_v58 = vpop.eup %1352  ;;  %899 = vst.msk [vmem:[%s1975_s17 + $0x68] sm:$0xff] %vm533_vm0, %v849_v39 }
 0x2be   : > { %v1355_v3 = vpop.eup %1354  ;;  %v883_v48 = vmul.f32 %v1353_v58, %v1963_v59 }
 0x2bf   : > { %v881_v44 = vmul.f32 %v1355_v3, %v1961_v53 }
 0x2c0   : > { %916 = vst.msk [vmem:[%s1975_s17 + $0xf0] sm:$0xff] %vm533_vm0, %v883_v48 }
 0x2c1   : > { %915 = vst.msk [vmem:[%s1975_s17 + $0xe8] sm:$0xff] %vm533_vm0, %v881_v44 }
 0x2c2   : > { %v1357_v40 = vpop.eup %1356 }
 0x2c3   : > { %v885_v62 = vmul.f32 %v1357_v40, %v1969_v26 }
 0x2c5   : > { %917 = vst.msk [vmem:[%s1975_s17 + $0xf8] sm:$0xff] %vm533_vm0, %v885_v62 }
 0x2c6   : > { %1429 = shalt.err (!%p1426_p7)
}
 0x2c7   : > { %s1430_s18 = scalar_lea.hbm %s2074_s23, 4096  ;;  %s1434_s26 = scalar_lea.hbm %s2125_s2, 8192 }
 0x2c8   : > { %p1431_p9 = scmp.ne.s32.totalorder %s2074_s23, %s1430_s18  ;;  %p1435_p5 = scmp.lt.u32.totalorder %s2074_s23, %s2125_s2 }
 0x2c9   : > { %p1436_p11 = scmp.lt.u32.totalorder %s1434_s26, %s1430_s18  ;;  %p1438_p4 = scmp.lt.u32.totalorder %s1430_s18, %s2074_s23 }
 0x2ca   : > { %p1432_p1 = pnand %p1431_p9, %p1604_p12 }
 0x2cb   : > { %p1437_p2 = por %p1436_p11, %p1435_p5 }
 0x2cc   : > { %p1433_p0 = pneg %p1432_p1 }
 0x2cd   : > { %p1439_p6 = por %p1438_p4, %p1437_p2 }
 0x2cf   : > { %p1440_p8 = pnand %p1439_p6, %p1433_p0 }
 0x2d1   : > { %1443 = shalt.err (!%p1440_p8)
}
 0x2d2   : > { %s1493_s3 = smov 128   ;;  %s1494_s15 = smov 8  }
 0x2d3   : > { %1151 = dma.vmem_to_hbm [thread:$0]  (%p1604_p12), %s2076_s5, 4096, %s2074_s23, %s919_s13, %s1493_s3, %s1493_s3, %s1494_s15  }
 0x2d4 PF: > { %s947_s17 = sand.u32 1, %s1474_s9   ;;  %p2140_p10 = scmp.ne.s32.totalorder %s2130_s16, 0 }
 0x2d5   : > { %p2141_p13 = scmp.ge.s32.totalorder %s1486_s12, 2  ;;  %s948_s4 = scalar_lea.sflag [#allocation4], %s947_s17 }
 0x2d7   : > { %p1162_p3 = pnand %p2141_p13, %p2140_p10 }
 0x2d9   : > { %1469 = dma.done.wait (!%p1162_p3), %s948_s4, 4096  }
 0x2da   : > { %1471 = vsyncadd (!%p1162_p3), %s948_s4, 4294963200  ;;  %p16_p7 = scmp.ge.s32.totalorder %s1566_s21, 4   ;;  %s2142_s9 = smov %s1478_s10 }
 0x2db   : > { %s2143_s10 = smov %s1482_s11  ;;  %s2144_s11 = smov %s1600_s8 }
 0x2dc   : > { %s2145_s12 = smov %s1566_s21  ;;  %18 = sbr.rel (!%p16_p7) target bundleno = 6 (0x6), region = 77 }
 0x2e3   :  { %953 = vsyncpa [#allocation3], 1 }
 0x2e4   :  { %955 = vsyncpa [#allocation3 + $0x1], 1 }
 0x2e5   :  { %956 = vsyncpa [#allocation6], 1 }
 0x2e6   :  { %957 = vsyncpa [#allocation4], 1 }
 0x2e7   :  { %959 = vsyncpa [#allocation4 + $0x1], 1 }

// kernel: moe_forward_with_aux.3
= control target key start
LH: loop header
LB: loop body
LE: loop exit
PB: predicated region body
PF: predicated region fallthrough
CT: control target
= control target key end

     0   :  { %s4129_s0 = inlined_call_operand.hbm [shape: s32[8], index: 0, kind: input, shape index: {}]   ;;  %s4130_s3 = inlined_call_operand.hbm [shape: bf16[512,128], index: 3, kind: input, shape index: {}]   ;;  %s4131_s4 = inlined_call_operand.hbm [shape: f32[512,4], index: 4, kind: input, shape index: {}]   ;;  %s4132_s5 = inlined_call_operand.hbm [shape: bf16[4,128,256], index: 5, kind: input, shape index: {}]   ;;  %s4133_s6 = inlined_call_operand.hbm [shape: bf16[4,256,128], index: 6, kind: input, shape index: {}]   ;;  %s4134_s7 = inlined_call_operand.hbm [shape: bf16[512,128], index: 7, kind: output, shape index: {}]   ;;  %s4135_s1 = inlined_call_operand.hbm [shape: s32[16], index: 1, kind: input, shape index: {}]   ;;  %s4136_s2 = inlined_call_operand.hbm [shape: s32[16], index: 2, kind: input, shape index: {}]  }
   0x1   :  { %4164 = sst [smem:[#allocation46_spill]] %s4130_s3  ;;  %s2675_s26 = scalar_lea.hbm %s4129_s0, 16 }
   0x2   :  { %4165 = sst [smem:[#allocation47_spill]] %s4131_s4  ;;  %p2676_p0 = scmp.ne.s32.totalorder %s4129_s0, %s2675_s26 }
   0x3   :  { %4166 = sst [smem:[#allocation48_spill]] %s4132_s5  ;;  %p2679_p1 = scmp.lt.u32.totalorder %s2675_s26, %s4129_s0 }
   0x4   :  { %4167 = sst [smem:[#allocation49_spill]] %s4134_s7 }
   0x5   :  { %p2681_p2 = pnand %p2679_p1, %p2676_p0 }
   0x7   :  { %2684 = shalt.err (!%p2681_p2)  }
   0x8   :  { %s3003_s8 = smov [#allocation4]   ;;  %s2685_s13 = scalar_lea.hbm %s4135_s1, 16 }
   0x9   :  { %13 = dma.hbm_to_smem %s4129_s0, 16, %s3003_s8, [#allocation3] }
   0xa   :  { %p2686_p3 = scmp.ne.s32.totalorder %s4135_s1, %s2685_s13  ;;  %p2689_p4 = scmp.lt.u32.totalorder %s2685_s13, %s4135_s1 }
   0xc   :  { %p2691_p5 = pnand %p2689_p4, %p2686_p3 }
   0xe   :  { %2694 = shalt.err (!%p2691_p5)  }
   0xf   :  { %s3004_s18 = smov [#allocation5]   ;;  %s2695_s22 = scalar_lea.hbm %s4136_s2, 16 }
  0x10   :  { %15 = dma.hbm_to_smem %s4135_s1, 16, %s3004_s18, [#allocation3] }
  0x11   :  { %p2696_p6 = scmp.ne.s32.totalorder %s4136_s2, %s2695_s22  ;;  %p2699_p7 = scmp.lt.u32.totalorder %s2695_s22, %s4136_s2 }
  0x13   :  { %p2701_p8 = pnand %p2699_p7, %p2696_p6 }
  0x15   :  { %2704 = shalt.err (!%p2701_p8)  }
  0x16   :  { %s3005_s27 = smov [#allocation6]  }
  0x17   :  { %17 = dma.hbm_to_smem %s4136_s2, 16, %s3005_s27, [#allocation3] }
  0x18   :  { %2917 = dma.done.wait [#allocation3], 48 }
  0x19   :  { %2918 = vsyncadd [#allocation3], 4294967248 }
  0x1a   :  { %19 = sfence }
  0x1b   :  { %20 = vsyncpa [#allocation8], 0 }
  0x1c   :  { %22 = vsyncpa [#allocation8 + $0x1], 0 }
  0x1d   :  { %23 = vsyncpa [#allocation11], 0 }
  0x1e   :  { %25 = vsyncpa [#allocation11 + $0x1], 0 }
  0x1f   :  { %26 = vsyncpa [#allocation14], 0 }
  0x20   :  { %28 = vsyncpa [#allocation14 + $0x1], 0 }
  0x21   :  { %29 = vsyncpa [#allocation9], 0 }
  0x22   :  { %31 = vsyncpa [#allocation9 + $0x1], 0  ;;  %s3094_s1 = smov 0   ;;  %s3096_s30 = smov 0  }
  0x23   :  { %s3098_s8 = smov 0   ;;  %s3100_s9 = smov 0  }
  0x24   :  { %s3102_s2 = smov 0   ;;  %s3104_s10 = smov 0  }
  0x25   :  { %s3106_s11 = smov 0   ;;  %s3108_s12 = smov 0  }
  0x26   :  { %s3110_s13 = smov 0   ;;  %s3112_s14 = smov 0  }
  0x27   :  { %s3114_s15 = smov 0   ;;  %s3116_s16 = smov 0  }
  0x28   :  { %s3118_s17 = smov 0   ;;  %s3120_s18 = smov 0  }
  0x29   :  { %s3122_s19 = smov 0   ;;  %s3124_s20 = smov 0  }
  0x2a LB: > { %4168 = sst [smem:[#allocation30_spill]] %s2965_s11  ;;  %s3175_s0 = sadd.s32 4294967295, %s3001_s20   ;;  %s3001_s20 = sphi %s3124_s20, %s37_s20   ;;  %s2997_s19 = sphi %s3122_s19, %s4246_s19   ;;  %s2993_s18 = sphi %s3120_s18, %s4245_s18   ;;  %s2989_s17 = sphi %s3118_s17, %s4254_s17   ;;  %s2985_s16 = sphi %s3116_s16, %s4243_s16   ;;  %s2981_s15 = sphi %s3114_s15, %s4242_s15   ;;  %s2977_s14 = sphi %s3112_s14, %s4241_s14   ;;  %s2973_s13 = sphi %s3110_s13, %s4240_s13   ;;  %s2969_s12 = sphi %s3108_s12, %s4239_s12   ;;  %s2965_s11 = sphi %s3106_s11, %s4238_s11   ;;  %s2961_s10 = sphi %s3104_s10, %s4253_s10   ;;  %s2957_s2 = sphi %s3102_s2, %s4252_s2   ;;  %s2953_s9 = sphi %s3100_s9, %s4251_s9   ;;  %s2949_s8 = sphi %s3098_s8, %s4250_s8   ;;  %s2945_s30 = sphi %s3096_s30, %s4249_s30   ;;  %s2941_s1 = sphi %s3094_s1, %s4247_s1  }
  0x2b   : > { %4169 = sst [smem:[#allocation31_spill]] %s2969_s12  ;;  %s2017_s21 = sadd.s32 4294967294, %s3001_s20  }
  0x2c   : > { %4170 = sst [smem:[#allocation32_spill]] %s2973_s13  ;;  %s49_s22 = sadd.s32 1, %s2989_s17 }
  0x2d   : > { %4171 = sst [smem:[#allocation33_spill]] %s2977_s14  ;;  %s52_s23 = sadd.s32 1, %s2993_s18 }
  0x2e   : > { %4172 = sst [smem:[#allocation34_spill]] %s2981_s15  ;;  %p50_p9 = scmp.ge.s32.totalorder %s49_s22, 2 }
  0x2f   : > { %4173 = sst [smem:[#allocation35_spill]] %s2985_s16  ;;  %s56_s24 = sadd.s32 1, %s2997_s19 }
  0x30   : > { %4174 = sst [smem:[#allocation36_spill]] %s2989_s17  ;;  %s63_s25 = sadd.s32 1, %s2973_s13 }
  0x31   : > { %4175 = sst [smem:[#allocation37_spill]] %s2993_s18  ;;  %p70_p10 = scmp.ne.s32.totalorder %s2973_s13, %s2969_s12 }
  0x32   : > { %4176 = sst [smem:[#allocation38_spill]] %s2997_s19  ;;  %s4256_s22 = smov (%p50_p9, %s49_s22), 0 }
  0x33   : > { %4177 = sst [smem:[#allocation39_spill]] %s4256_s22  ;;  %s4258_s23 = smov (!%p50_p9, %s52_s23), %s2993_s18 }
  0x34   : > { %p4153_p11 = scmp.eq.s32.totalorder %s3001_s20, 0  ;;  %p76_p12 = scmp.ne.s32.totalorder %s2969_s12, %s2965_s11 }
  0x35   : > { %p54_p13 = scmp.ge.s32.totalorder %s4258_s23, 4  ;;  %p4152_p0 = scmp.eq.s32.totalorder %s3175_s0, 0 }
  0x36   : > { %p3196_p1 = por %p4153_p11, %p70_p10  ;;  %s2018_s27 = sshll.u32 %s2997_s19, 2 }
  0x37   : > { %s4260_s23 = smov (%p54_p13, %s4258_s23), 0  ;;  %s4262_s24 = smov (!%p54_p13, %s56_s24), %s2997_s19 }
  0x38   : > { %4179 = sst [smem:[#allocation40_spill]] %s4260_s23  ;;  %p3209_p2 = por %p4152_p0, %p76_p12 }
  0x39   : > { %s113_s29 = sadd.s32 %s2993_s18, %s2018_s27  ;;  %p58_p3 = scmp.ge.s32.totalorder %s4262_s24, 2 }
  0x3a   : > { %s4180_s28 = scalar_select %p3209_p2, 1, 0 }
  0x3b   : > { %s2019_s7 = sshll.u32 %s113_s29, 1  ;;  %p206_p4 = scmp.eq.s32.totalorder %s3175_s0, 15 }
  0x3c   : > { %4181 = sst [smem:[#allocation41_spill]] %s4180_s28  ;;  %s3215_s16 = sadd.s32 %s2989_s17, %s2019_s7 }
  0x3d   : > { %s4264_s24 = smov (%p58_p3, %s4262_s24), 0  ;;  %p3223_p5 = por %p206_p4, %p70_p10 }
  0x3e   : > { %4182 = sst [smem:[#allocation42_spill]] %s4264_s24  ;;  %p212_p6 = scmp.eq.s32.totalorder %s2017_s21, 15 }
  0x3f   : > { %s4183_s14 = scalar_select %p3223_p5, 1, 0 }
  0x40   : > { %s60_s27 = ssub.s32 %s2997_s19, %s4264_s24  ;;  %s2020_s29 = sshll.u32 %s4264_s24, 2 }
  0x41   : > { %4184 = sst [smem:[#allocation43_spill]] %s4183_s14  ;;  %p61_p7 = scmp.eq.s32.totalorder %s60_s27, 0 }
  0x42   : > { %s119_s7 = sadd.s32 %s2020_s29, %s4260_s23  ;;  %p3234_p8 = por %p212_p6, %p76_p12 }
  0x43   : > { %s2021_s18 = sshll.u32 %s119_s7, 1  ;;  %p4151_p9 = scmp.lt.s32.totalorder %s3001_s20, 16 }
  0x44   : > { %s4185_s17 = scalar_select %p3234_p8, 1, 0 }
  0x45   : > { %s3239_s15 = scalar_select %p61_p7, %s2973_s13, %s63_s25  }
  0x46   : > { %4186 = sst [smem:[#allocation44_spill]] %s4185_s17  ;;  %s3242_s28 = sadd.s32 %s2021_s18, %s4256_s22 }
  0x47   : > { %4187 = sst [smem:[#allocation45_spill]] %s3239_s15  ;;  %s3252_s24 = sand.u32 1, %s2973_s13  }
  0x48   : > { %s3245_s14 = sld [smem:[#allocation5 + %s3242_s28]]  ;;  %s253_s27 = sand.u32 1, %s3001_s20  }
  0x49   : > { %s3248_s21 = sld [smem:[#allocation6 + %s3242_s28]]  ;;  %s2031_s29 = sshll.u32 %s3252_s24, 8 }
  0x4a   : > { %p3260_p10 = pnand %p4151_p9, %p3196_p1  ;;  %s2123_s18 = sshll.u32 %s2997_s19, 12 }
  0x4b   : > { %s4189_s4 = sld [smem:[#allocation47_spill]]  ;;  %s257_s15 = scalar_lea.vmem [#allocation10], %s2031_s29 }
  0x4c   : > { %s264_s13 = sshll.u32 %s257_s15, 4  ;;  %s3272_s26 = scalar_lea.sflag [#allocation11], %s253_s27  ;;  %s3270_s13 = int_to_ptr.vmem [resolvable:$true] %s264_s13 }
  0x4d   : > { %p2707_p13 = pneg %p3260_p10 }
  0x51   : > { %s3268_s22 = scalar_lea.hbm %s4189_s4, %s2123_s18  ;;  %s2710_s25 = scalar_lea.hbm %s4189_s4, 8192 }
  0x52   : > { %s2705_s17 = scalar_lea.hbm %s3268_s22, 4096  ;;  %p2711_p4 = scmp.lt.u32.totalorder %s3268_s22, %s4189_s4 }
  0x53   : > { %p2706_p12 = scmp.ne.s32.totalorder %s3268_s22, %s2705_s17  ;;  %p2712_p6 = scmp.lt.u32.totalorder %s2710_s25, %s2705_s17 }
  0x54   : > { %p2714_p9 = scmp.lt.u32.totalorder %s2705_s17, %s3268_s22 }
  0x55   : > { %p2708_p1 = pnand %p2707_p13, %p2706_p12  ;;  %p2713_p7 = por %p2712_p6, %p2711_p4 }
  0x57   : > { %p2709_p3 = pneg %p2708_p1  ;;  %p2715_p0 = por %p2714_p9, %p2713_p7 }
  0x59   : > { %p2716_p11 = pnand %p2715_p0, %p2709_p3 }
  0x5b   : > { %2719 = shalt.err (!%p2716_p11)
}
  0x5c   : > { %s2720_s15 = scalar_lea.vmem %s3270_s13, 4096  ;;  %s3006_s27 = smov [#allocation10]  }
  0x5d   : > { %p2721_p12 = scmp.ne.s32.totalorder %s3270_s13, %s2720_s15  ;;  %s2725_s29 = sshll.u32 %s3006_s27, 4  ;;  %s2726_s29 = int_to_ptr.vmem [resolvable:$false] %s2725_s29 }
  0x5e   : > { %s2727_s11 = scalar_lea.vmem %s2726_s29, 8192  ;;  %p2728_p5 = scmp.lt.s32.totalorder %s3270_s13, %s2726_s29 }
  0x5f   : > { %p2723_p1 = pnand %p2721_p12, %p2707_p13  ;;  %p2729_p4 = scmp.lt.s32.totalorder %s2727_s11, %s2720_s15 }
  0x61   : > { %p2724_p8 = pneg %p2723_p1  ;;  %p2730_p6 = por %p2729_p4, %p2728_p5 }
  0x63   : > { %p2731_p9 = pnand %p2730_p6, %p2724_p8 }
  0x65   : > { %2734 = shalt.err (!%p2731_p9)
}
  0x66   : > { %s4155_s12 = smov 128   ;;  %s3008_s17 = smov 8  }
  0x67   : > { %2420 = dma.hbm_to_vmem [thread:$0]  (!%p3260_p10), %s3268_s22, 4096, %s3270_s13, %s3272_s26, %s4155_s12, %s4155_s12, %s3008_s17  }
  0x68   : > { %p2045_p11 = scmp.ge.s32.totalorder %s3001_s20, 1  ;;  %p329_p0 = scmp.lt.s32.totalorder %s3001_s20, 17 }
  0x69   : > { %s2028_s18 = sshll.u32 %s3252_s24, 7  ;;  %s2122_s25 = sshll.u32 %s2997_s19, 11 }
  0x6a   : > { %p3304_p5 = pnand %p2045_p11, %p329_p0  ;;  %s4191_s3 = sld [smem:[#allocation46_spill]] }
  0x6b   : > { %s236_s11 = scalar_lea.vmem [#allocation7], %s2028_s18  ;;  %s233_s13 = scalar_lea.sflag [#allocation8], %s3252_s24 }
  0x6c   : > { %s243_s4 = sshll.u32 %s236_s11, 4  ;;  %s3315_s4 = int_to_ptr.vmem [resolvable:$true] %s243_s4 }
  0x70   : > { %s3313_s29 = scalar_lea.hbm %s4191_s3, %s2122_s25  ;;  %s2740_s25 = scalar_lea.hbm %s4191_s3, 4096 }
  0x71   : > { %s2735_s22 = scalar_lea.hbm %s3313_s29, 2048  ;;  %p2741_p12 = scmp.lt.u32.totalorder %s3313_s29, %s4191_s3 }
  0x72   : > { %p2736_p8 = scmp.ne.s32.totalorder %s3313_s29, %s2735_s22  ;;  %p2742_p1 = scmp.lt.u32.totalorder %s2740_s25, %s2735_s22 }
  0x73   : > { %p2744_p6 = scmp.lt.u32.totalorder %s2735_s22, %s3313_s29 }
  0x74   : > { %p2738_p3 = pnand %p2736_p8, %p2707_p13  ;;  %p2743_p4 = por %p2742_p1, %p2741_p12 }
  0x76   : > { %p2739_p7 = pneg %p2738_p3  ;;  %p2745_p9 = por %p2744_p6, %p2743_p4 }
  0x78   : > { %p2746_p11 = pnand %p2745_p9, %p2739_p7 }
  0x7a   : > { %2749 = shalt.err (!%p2746_p11)
}
  0x7b   : > { %s2750_s18 = scalar_lea.vmem %s3315_s4, 2048  ;;  %s3009_s12 = smov [#allocation7]  }
  0x7c   : > { %p2751_p0 = scmp.ne.s32.totalorder %s3315_s4, %s2750_s18  ;;  %s2755_s11 = sshll.u32 %s3009_s12, 4  ;;  %s2756_s11 = int_to_ptr.vmem [resolvable:$false] %s2755_s11 }
  0x7d   : > { %s2757_s17 = scalar_lea.vmem %s2756_s11, 4096  ;;  %p2758_p2 = scmp.lt.s32.totalorder %s3315_s4, %s2756_s11 }
  0x7e   : > { %p2753_p8 = pnand %p2751_p0, %p2707_p13  ;;  %p2759_p12 = scmp.lt.s32.totalorder %s2757_s17, %s2750_s18 }
  0x80   : > { %p2754_p3 = pneg %p2753_p8  ;;  %p2760_p1 = por %p2759_p12, %p2758_p2 }
  0x82   : > { %p2761_p4 = pnand %p2760_p1, %p2754_p3 }
  0x84   : > { %2764 = shalt.err (!%p2761_p4)
}
  0x85   : > { %s4157_s22 = smov 64   ;;  %s4159_s25 = smov 4  }
  0x86   : > { %2417 = dma.hbm_to_vmem [thread:$0]  (!%p3260_p10), %s3313_s29, 2048, %s3315_s4, %s233_s13, %s4157_s22, %s4157_s22, %s4159_s25  }
  0x87   : > { %s116_s15 = sld [smem:[#allocation5 + %s3215_s16]]  ;;  %p136_p2 = scmp.ne.s32.totalorder %s2961_s10, %s2957_s2 }
  0x88   : > { %s117_s27 = sld [smem:[#allocation6 + %s3215_s16]]  ;;  %p142_p13 = scmp.ne.s32.totalorder %s2957_s2, %s2953_s9 }
  0x89   : > { %s276_s18 = sand.u32 1, %s2961_s10   ;;  %p4192_p7 = scmp.eq.s32.totalorder %s3001_s20, 0 }
  0x8a   : > { %p4194_p9 = scmp.eq.s32.totalorder %s3175_s0, 0  ;;  %s2034_s24 = sshll.u32 %s276_s18, 6 }
  0x8b   : > { %p3355_p6 = por %p136_p2, %p4192_p7  ;;  %s129_s11 = sadd.s32 1, %s2961_s10 }
  0x8c   : > { %p3361_p10 = por %p142_p13, %p4194_p9  ;;  %p4196_p0 = scmp.lt.s32.totalorder %s3001_s20, 16 }
  0x8d   : > { %s2398_s9 = scalar_select %p3355_p6, [#allocation5], [#allocation16] }
  0x8e   : > { %s4195_s4 = scalar_select %p3361_p10, 1, 0 }
  0x8f   : > { %s124_s7 = ssub.s32 %s116_s15, %s3245_s14  ;;  %s125_s29 = ssub.s32 %s117_s27, %s3248_s21 }
  0x90   : > { %s126_s13 = sor.u32 %s125_s29, %s124_s7  ;;  %s4266_s9 = smov (!%p4196_p0, %s2398_s9), [#allocation20] }
  0x91   : > { %p127_p11 = scmp.eq.s32.totalorder %s126_s13, 0  ;;  %p4197_p8 = pmov %p4196_p0 }
  0x92   : > { %s2399_s17 = scalar_select %p3355_p6, %s3215_s16, 0 }
  0x93   : > { %s3374_s22 = scalar_select %p127_p11, %s2961_s10, %s129_s11  }
  0x94   : > { %s4268_s17 = smov (!%p4197_p8, %s2399_s17), 0  ;;  %p4198_p3 = pmov %p4196_p0 }
  0x95   : > { %s2400_s14 = scalar_select %p3355_p6, [#allocation6], [#allocation17] }
  0x96   : > { %s283_s21 = sld [smem:[%s4266_s9 + %s4268_s17]]  ;;  %p3386_p12 = pnand %p4198_p3, %p3355_p6 }
  0x97   : > { %p4200_p1 = pmov %p4196_p0  ;;  %s278_s18 = scalar_lea.vmem [#allocation12], %s2034_s24 }
  0x98   : > { %s292_s7 = sshll.u32 %s278_s18, 4  ;;  %s3393_s13 = sld [smem:[#allocation5 + %s3215_s16]]  ;;  %s3404_s7 = int_to_ptr.vmem [resolvable:$true] %s292_s7 }
  0x99   : > { %s4270_s14 = smov (!%p4200_p1, %s2400_s14), [#allocation21]  ;;  %s3396_s11 = sld [smem:[#allocation6 + %s3215_s16]] }
  0x9a   : > { %s284_s27 = sld [smem:[%s4270_s14 + %s4268_s17]]  ;;  %p2767_p7 = pneg %p3386_p12 }
  0x9b   : > { %s3399_s12 = sld [smem:[#allocation5 + %s3242_s28]] }
  0x9c   : > { %s2037_s29 = sshll.u32 %s283_s21, 5  ;;  %s3402_s9 = sld [smem:[#allocation6 + %s3242_s28]] }
  0x9d   : > { %s4201_s5 = sld [smem:[#allocation48_spill]] }
  0xa0   : > { %s289_s25 = sadd.s32 %s2037_s29, %s284_s27 }
  0xa1   : > { %s2038_s3 = sshll.u32 %s289_s25, 6 }
  0xa3   : > { %s3411_s24 = scalar_lea.hbm %s4201_s5, %s2038_s3  ;;  %s2770_s21 = scalar_lea.hbm %s4201_s5, 8192 }
  0xa4   : > { %s2765_s14 = scalar_lea.hbm %s3411_s24, 1024  ;;  %p2771_p11 = scmp.lt.u32.totalorder %s3411_s24, %s4201_s5 }
  0xa5   : > { %p2766_p13 = scmp.ne.s32.totalorder %s3411_s24, %s2765_s14  ;;  %p2772_p0 = scmp.lt.u32.totalorder %s2770_s21, %s2765_s14 }
  0xa6   : > { %p2774_p3 = scmp.lt.u32.totalorder %s2765_s14, %s3411_s24 }
  0xa7   : > { %p2768_p6 = pnand %p2767_p7, %p2766_p13  ;;  %p2773_p8 = por %p2772_p0, %p2771_p11 }
  0xa9   : > { %p2769_p9 = pneg %p2768_p6  ;;  %p2775_p1 = por %p2774_p3, %p2773_p8 }
  0xab   : > { %p2776_p2 = pnand %p2775_p1, %p2769_p9 }
  0xad   : > { %2779 = shalt.err (!%p2776_p2)
}
  0xae   : > { %s2780_s27 = scalar_lea.vmem %s3404_s7, 1024  ;;  %s3012_s18 = smov [#allocation12]  }
  0xaf   : > { %p2781_p13 = scmp.ne.s32.totalorder %s3404_s7, %s2780_s27  ;;  %s2785_s29 = sshll.u32 %s3012_s18, 4  ;;  %s2786_s29 = int_to_ptr.vmem [resolvable:$false] %s2785_s29 }
  0xb0   : > { %s2787_s17 = scalar_lea.vmem %s2786_s29, 2048  ;;  %p2788_p10 = scmp.lt.s32.totalorder %s3404_s7, %s2786_s29 }
  0xb1   : > { %p2783_p6 = pnand %p2781_p13, %p2767_p7  ;;  %p2789_p11 = scmp.lt.s32.totalorder %s2787_s17, %s2780_s27 }
  0xb3   : > { %p2784_p4 = pneg %p2783_p6  ;;  %p2790_p0 = por %p2789_p11, %p2788_p10 }
  0xb5   : > { %p2791_p8 = pnand %p2790_p0, %p2784_p4 }
  0xb7   : > { %2794 = shalt.err (!%p2791_p8)
}
  0xb8   : > { %s4202_s14 = smov 4   ;;  %s4203_s28 = smov 64  }
  0xb9   : > { %s4204_s25 = smov 128   ;;  %s164_s15 = ssub.s32 %s3393_s13, %s3399_s12 }
  0xba   : > { %2427 = dma.hbm_to_vmem [thread:$0]  (!%p3386_p12), %s3411_s24, 1024, %s3404_s7, %s3272_s26, %s4204_s25, %s4203_s28, %s4202_s14  }
  0xbb   : > { %p4205_p10 = scmp.eq.s32.totalorder %s3175_s0, 0  ;;  %p4206_p4 = scmp.ne.s32.totalorder %s2945_s30, %s2941_s1 }
  0xbc   : > { %s165_s19 = ssub.s32 %s3396_s11, %s3402_s9  ;;  %s169_s3 = sadd.s32 1, %s2949_s8 }
  0xbd   : > { %p3451_p2 = por %p4206_p4, %p4205_p10  ;;  %s166_s27 = sor.u32 %s165_s19, %s164_s15 }
  0xbe   : > { %p4208_p7 = scmp.eq.s32.totalorder %s3001_s20, 0  ;;  %p4209_p9 = scmp.ne.s32.totalorder %s2949_s8, %s2945_s30 }
  0xbf   : > { %s4207_s21 = scalar_select %p3451_p2, 1, 0 }
  0xc0   : > { %p178_p3 = por %p4209_p9, %p4208_p7  ;;  %p167_p1 = scmp.eq.s32.totalorder %s166_s27, 0 }
  0xc1   : > { %s302_s18 = sand.u32 1, %s2949_s8   ;;  %p4210_p13 = scmp.lt.s32.totalorder %s3001_s20, 16 }
  0xc2   : > { %s3471_s26 = scalar_select %p167_p1, %s2949_s8, %s169_s3  }
  0xc3   : > { %p3466_p6 = pnand %p4210_p13, %p178_p3  ;;  %s4272_s16 = smov (!%p178_p3, %s3215_s16), 0 }
  0xc4   : > { %s2403_s1 = scalar_select %p178_p3, [#allocation5], [#allocation18] }
  0xc5   : > { %p4212_p12 = pmov %p4210_p13  ;;  %s2039_s13 = sshll.u32 %s302_s18, 6 }
  0xc6   : > { %s2405_s7 = scalar_select %p178_p3, [#allocation6], [#allocation19] }
  0xc7   : > { %s4274_s1 = smov (!%p4212_p12, %s2403_s1), [#allocation22]  ;;  %p4213_p11 = pmov %p4212_p12 }
  0xc8   : > { %s306_s24 = scalar_lea.vmem [#allocation13], %s2039_s13  ;;  %p2797_p10 = pneg %p3466_p6 }
  0xc9   : > { %s4276_s16 = smov (!%p4213_p11, %s4272_s16), 0  ;;  %p4214_p0 = pmov %p4213_p11 }
  0xca   : > { %s311_s11 = sld [smem:[%s4274_s1 + %s4276_s16]]  ;;  %s321_s17 = sshll.u32 %s306_s24, 4  ;;  %s3480_s17 = int_to_ptr.vmem [resolvable:$true] %s321_s17 }
  0xcb   : > { %s4278_s7 = smov (!%p4214_p0, %s2405_s7), [#allocation23]  ;;  %s3487_s1 = scalar_lea.sflag [#allocation14], %s302_s18 }
  0xcc   : > { %s312_s12 = sld [smem:[%s4278_s7 + %s4276_s16]] }
  0xd0   : > { %s2043_s9 = sshll.u32 %s311_s11, 5  ;;  %s2800_s11 = scalar_lea.hbm %s4133_s6, 8192 }
  0xd2   : > { %s2042_s25 = sshll.u32 %s312_s12, 4 }
  0xd3   : > { %s318_s15 = sadd.s32 %s2043_s9, %s2042_s25 }
  0xd4   : > { %s2044_s19 = sshll.u32 %s318_s15, 6 }
  0xd5   : > { %s3485_s5 = scalar_lea.hbm %s4133_s6, %s2044_s19 }
  0xd6   : > { %s2795_s16 = scalar_lea.hbm %s3485_s5, 1024  ;;  %p2801_p9 = scmp.lt.u32.totalorder %s3485_s5, %s4133_s6 }
  0xd7   : > { %p2796_p8 = scmp.ne.s32.totalorder %s3485_s5, %s2795_s16  ;;  %p2802_p3 = scmp.lt.u32.totalorder %s2800_s11, %s2795_s16 }
  0xd8   : > { %p2804_p13 = scmp.lt.u32.totalorder %s2795_s16, %s3485_s5 }
  0xd9   : > { %p2798_p4 = pnand %p2797_p10, %p2796_p8  ;;  %p2803_p1 = por %p2802_p3, %p2801_p9 }
  0xdb   : > { %p2799_p7 = pneg %p2798_p4  ;;  %p2805_p12 = por %p2804_p13, %p2803_p1 }
  0xdd   : > { %p2806_p11 = pnand %p2805_p12, %p2799_p7 }
  0xdf   : > { %2809 = shalt.err (!%p2806_p11)
}
  0xe0   : > { %s2810_s18 = scalar_lea.vmem %s3480_s17, 1024  ;;  %s3013_s24 = smov [#allocation13]  }
  0xe1   : > { %p2811_p0 = scmp.ne.s32.totalorder %s3480_s17, %s2810_s18  ;;  %s2815_s25 = sshll.u32 %s3013_s24, 4  ;;  %s2816_s25 = int_to_ptr.vmem [resolvable:$false] %s2815_s25 }
  0xe2   : > { %s2817_s15 = scalar_lea.vmem %s2816_s25, 2048  ;;  %p2818_p2 = scmp.lt.s32.totalorder %s3480_s17, %s2816_s25 }
  0xe3   : > { %p2813_p8 = pnand %p2811_p0, %p2797_p10  ;;  %p2819_p9 = scmp.lt.s32.totalorder %s2817_s15, %s2810_s18 }
  0xe5   : > { %p2814_p4 = pneg %p2813_p8  ;;  %p2820_p3 = por %p2819_p9, %p2818_p2 }
  0xe7   : > { %p2821_p1 = pnand %p2820_p3, %p2814_p4 }
  0xe9   : > { %2824 = shalt.err (!%p2821_p1)
}
  0xea   : > { %2434 = dma.hbm_to_vmem [thread:$0]  (!%p3466_p6), %s3485_s5, 1024, %s3480_s17, %s3487_s1, %s4203_s28, %s4203_s28, %s4202_s14  }
  0xeb   : > { %333 = sbr.rel (%p3304_p5) target bundleno = 917 (0x395), region = 36  ;;  %s4215_s19 = sld [smem:[#allocation31_spill]] (!%p3304_p5) }
  0xec   : > { %s4216_s3 = sld [smem:[#allocation41_spill]] (!%p3304_p5) }
  0xf1   : > { %s3521_s27 = sand.u32 (!%p3304_p5), 1, %s4215_s19  }
  0xf2   : > { %s2046_s16 = sshll.u32 %s3521_s27, 7  ;;  %s336_s7 = scalar_lea.sflag [#allocation8], %s3521_s27 }
  0xf3   : > { %s3525_s13 = scalar_lea.vmem [#allocation7], %s2046_s16  ;;  %p4217_p2 = scmp.ne.s32.totalorder %s4216_s3, 0 }
  0xf5   : > { %2920 = dma.done.wait (%p4217_p2), %s336_s7, 2048  }
  0xf6   : > { %2922 = vsyncadd (%p4217_p2), %s336_s7, 4294965248  ;;  %s344_s5 = sand.u32 1, %s3175_s0   ;;  %s2047_s23 = sshll.u32 %s3521_s27, 8 }
  0xf7   : > { %s345_s14 = scalar_lea.sflag [#allocation11], %s344_s5  ;;  %s3533_s28 = scalar_lea.vmem [#allocation10], %s2047_s23 }
  0xf8   : > { %2924 = dma.done.wait (%p4217_p2), %s345_s14, 4096  }
  0xf9   : > { %2926 = vsyncadd (%p4217_p2), %s345_s14, 4294963200  ;;  %s355_s29 = sand.u32 1, %s2957_s2   ;;  %p4218_p5 = scmp.ne.s32.totalorder %s4195_s4, 0 }
  0xfa   : > { %s2048_s17 = sshll.u32 %s355_s29, 6 }
  0xfb   : > { %s3540_s1 = scalar_lea.vmem [#allocation12], %s2048_s17 }
  0xfc   : > { %2928 = dma.done.wait (%p4218_p5), %s345_s14, 1024  }
  0xfd   : > { %2930 = vsyncadd (%p4218_p5), %s345_s14, 4294966272  ;;  %s362_s0 = sand.u32 1, %s2945_s30   ;;  %p4219_p6 = scmp.ne.s32.totalorder %s4207_s21, 0 }
  0xfe   : > { %s2049_s11 = sshll.u32 %s362_s0, 6  ;;  %s363_s12 = scalar_lea.sflag [#allocation14], %s362_s0 }
  0xff   : > { %s3547_s9 = scalar_lea.vmem [#allocation13], %s2049_s11 }
 0x100   : > { %2932 = dma.done.wait (%p4219_p6), %s363_s12, 1024  }
 0x101   : > { %2934 = vsyncadd (%p4219_p6), %s363_s12, 4294966272  ;;  %s4220_s18 = sld [smem:[#allocation34_spill]]  ;;  %s4221_s24 = sld [smem:[#allocation33_spill]] }
 0x102   : > { %s3555_s25 = scalar_lea.vmem [#allocation15], %s2046_s16 }
 0x107   : > { %p423_p10 = scmp.eq.s32.totalorder %s4220_s18, 0  ;;  %p424_p7 = scmp.eq.s32.totalorder %s4221_s24, 0 }
 0x109   : > { %p425_p13 = pnand %p424_p7, %p423_p10 }
 0x10a   : > { %v3014_v0 = vmov (!%p425_p13), 0.0  }
 0x10b   : > { %428 = sbr.rel (%p425_p13) target bundleno = 283 (0x11b), region = 56  ;;  %429 = vst [vmem:[#allocation2] sm:$0xff] (!%p425_p13), %v3014_v0  ;;  %430 = vst [vmem:[#allocation2 + $0x8] sm:$0xff] (!%p425_p13), %v3014_v0 }
 0x10c   : > { %431 = vst [vmem:[#allocation2 + $0x10] sm:$0xff] (!%p425_p13), %v3014_v0  ;;  %432 = vst [vmem:[#allocation2 + $0x18] sm:$0xff] (!%p425_p13), %v3014_v0 }
 0x10d   : > { %433 = vst [vmem:[#allocation2 + $0x20] sm:$0xff] (!%p425_p13), %v3014_v0  ;;  %434 = vst [vmem:[#allocation2 + $0x28] sm:$0xff] (!%p425_p13), %v3014_v0 }
 0x10e   : > { %435 = vst [vmem:[#allocation2 + $0x30] sm:$0xff] (!%p425_p13), %v3014_v0  ;;  %436 = vst [vmem:[#allocation2 + $0x38] sm:$0xff] (!%p425_p13), %v3014_v0 }
 0x10f   : > { %437 = vst [vmem:[#allocation2 + $0x40] sm:$0xff] (!%p425_p13), %v3014_v0  ;;  %438 = vst [vmem:[#allocation2 + $0x48] sm:$0xff] (!%p425_p13), %v3014_v0 }
 0x110   : > { %439 = vst [vmem:[#allocation2 + $0x50] sm:$0xff] (!%p425_p13), %v3014_v0  ;;  %440 = vst [vmem:[#allocation2 + $0x58] sm:$0xff] (!%p425_p13), %v3014_v0 }
 0x111   : > { %441 = vst [vmem:[#allocation2 + $0x60] sm:$0xff] (!%p425_p13), %v3014_v0  ;;  %442 = vst [vmem:[#allocation2 + $0x68] sm:$0xff] (!%p425_p13), %v3014_v0 }
 0x112   : > { %443 = vst [vmem:[#allocation2 + $0x70] sm:$0xff] %v3014_v0  ;;  %444 = vst [vmem:[#allocation2 + $0x78] sm:$0xff] %v3014_v0 }
 0x113   : > { %445 = vst [vmem:[#allocation2 + $0x80] sm:$0xff] %v3014_v0  ;;  %446 = vst [vmem:[#allocation2 + $0x88] sm:$0xff] %v3014_v0 }
 0x114   : > { %447 = vst [vmem:[#allocation2 + $0x90] sm:$0xff] %v3014_v0  ;;  %448 = vst [vmem:[#allocation2 + $0x98] sm:$0xff] %v3014_v0 }
 0x115   : > { %449 = vst [vmem:[#allocation2 + $0xa0] sm:$0xff] %v3014_v0  ;;  %450 = vst [vmem:[#allocation2 + $0xa8] sm:$0xff] %v3014_v0 }
 0x116   : > { %451 = vst [vmem:[#allocation2 + $0xb0] sm:$0xff] %v3014_v0  ;;  %452 = vst [vmem:[#allocation2 + $0xb8] sm:$0xff] %v3014_v0 }
 0x117   : > { %453 = vst [vmem:[#allocation2 + $0xc0] sm:$0xff] %v3014_v0  ;;  %454 = vst [vmem:[#allocation2 + $0xc8] sm:$0xff] %v3014_v0 }
 0x118   : > { %455 = vst [vmem:[#allocation2 + $0xd0] sm:$0xff] %v3014_v0  ;;  %456 = vst [vmem:[#allocation2 + $0xd8] sm:$0xff] %v3014_v0 }
 0x119   : > { %457 = vst [vmem:[#allocation2 + $0xe0] sm:$0xff] %v3014_v0  ;;  %458 = vst [vmem:[#allocation2 + $0xe8] sm:$0xff] %v3014_v0 }
 0x11a   : > { %459 = vst [vmem:[#allocation2 + $0xf0] sm:$0xff] %v3014_v0  ;;  %460 = vst [vmem:[#allocation2 + $0xf8] sm:$0xff] %v3014_v0 }
 0x11b PF: > { %s4222_s4 = sld [smem:[#allocation35_spill]]  ;;  %s4223_s21 = sld [smem:[#allocation34_spill]] }
 0x121   : > { %s2051_s15 = sshll.u32 %s4222_s4, 2 }
 0x122   : > { %s462_s19 = sadd.s32 %s4223_s21, %s2051_s15 }
 0x123   : > { %s463_s3 = sld [smem:[#allocation4 + %s462_s19]] }
 0x129   : > { %p2052_p12 = scmp.le.s32.totalorder %s463_s3, 0 }
 0x12a   : > { %v2579_v1 = vld [vmem:[%s3540_s1] sm:$0xff] (!%p2052_p12)   ;;  %v2580_v2 = vld [vmem:[%s3540_s1 + $0x8] sm:$0xff] (!%p2052_p12)   ;;  %v2581_v3 = vld [vmem:[%s3540_s1 + $0x10] sm:$0xff] (!%p2052_p12)   ;;  %s4224_s16 = sld [smem:[#allocation34_spill]] (!%p2052_p12)  ;;  %v1382_v33 = vlaneseq (!%p2052_p12)  ;;  %vm1418_vm0 = vcmask (!%p2052_p12), 31744  }
 0x12b   : > { %467 = sbr.rel (%p2052_p12) target bundleno = 865 (0x361), region = 60  ;;  %2300 = vmatprep.subr.bf16.mxu0 (!%p2052_p12), %v2579_v1  ;;  %v2582_v4 = vld [vmem:[%s3540_s1 + $0x18] sm:$0xff] (!%p2052_p12)   ;;  %v2587_v5 = vld [vmem:[%s3525_s13] sm:$0xff] (!%p2052_p12)   ;;  %v2584_v7 = vld [vmem:[%s3540_s1 + $0x28] sm:$0xff] (!%p2052_p12)  }
 0x12c   : > { %2301 = vmatpush3.bf16.msra.mxu0 (!%p2052_p12), %v2579_v1  ;;  %2316 = vmatprep.mubr.bf16.mxu0 (!%p2052_p12), %v2587_v5  ;;  %v2583_v6 = vld [vmem:[%s3540_s1 + $0x20] sm:$0xff] (!%p2052_p12)   ;;  %v2585_v8 = vld [vmem:[%s3540_s1 + $0x30] sm:$0xff] (!%p2052_p12)   ;;  %v2586_v9 = vld [vmem:[%s3540_s1 + $0x38] sm:$0xff] (!%p2052_p12)   ;;  %v1383_v36 = vand.u32 (!%p2052_p12), 127, %v1382_v33 }
 0x12d   : > { %2302 = vmatprep.subr.bf16.mxu0 (!%p2052_p12), %v2580_v2  ;;  %v2588_v10 = vld [vmem:[%s3525_s13 + $0x8] sm:$0xff] (!%p2052_p12)   ;;  %v2589_v11 = vld [vmem:[%s3525_s13 + $0x10] sm:$0xff] (!%p2052_p12)   ;;  %v2590_v12 = vld [vmem:[%s3525_s13 + $0x18] sm:$0xff] (!%p2052_p12)  }
 0x12e   : > { %v2591_v13 = vld [vmem:[%s3525_s13 + $0x20] sm:$0xff] (!%p2052_p12)   ;;  %v2592_v14 = vld [vmem:[%s3525_s13 + $0x28] sm:$0xff] (!%p2052_p12)   ;;  %v2593_v15 = vld [vmem:[%s3525_s13 + $0x30] sm:$0xff] (!%p2052_p12)  }
 0x12f   : > { %v2594_v16 = vld [vmem:[%s3525_s13 + $0x38] sm:$0xff] (!%p2052_p12)   ;;  %v2595_v17 = vld [vmem:[%s3525_s13 + $0x40] sm:$0xff] (!%p2052_p12)   ;;  %v2596_v18 = vld [vmem:[%s3525_s13 + $0x48] sm:$0xff] (!%p2052_p12)  }
 0x130   : > { %2303 = vmatpush3.bf16.msra.mxu0 (!%p2052_p12), %v2580_v2  ;;  %v2597_v19 = vld [vmem:[%s3525_s13 + $0x50] sm:$0xff] (!%p2052_p12)   ;;  %v2598_v20 = vld [vmem:[%s3525_s13 + $0x58] sm:$0xff] (!%p2052_p12)   ;;  %v2599_v21 = vld [vmem:[%s3525_s13 + $0x60] sm:$0xff] (!%p2052_p12)   ;;  %v1384_v35 = vstv (!%p2052_p12), %s4224_s16 }
 0x131   : > { %2304 = vmatprep.subr.bf16.mxu0 (!%p2052_p12), %v2581_v3  ;;  %v2600_v22 = vld [vmem:[%s3525_s13 + $0x68] sm:$0xff] (!%p2052_p12)   ;;  %v2601_v23 = vld [vmem:[%s3525_s13 + $0x70] sm:$0xff] (!%p2052_p12)   ;;  %v2602_v24 = vld [vmem:[%s3525_s13 + $0x78] sm:$0xff] (!%p2052_p12)   ;;  %vm3596_vm1 = vcmp.eq.s32.totalorder (!%p2052_p12), %v1383_v36, %v1384_v35 }
 0x132   : > { %v2603_v25 = vld [vmem:[%s3547_s9] sm:$0xff]   ;;  %v2604_v26 = vld [vmem:[%s3547_s9 + $0x8] sm:$0xff]   ;;  %v2605_v27 = vld [vmem:[%s3547_s9 + $0x10] sm:$0xff]  }
 0x133   : > { %2348 = vmatprep.subr.bf16.mxu1 %v2603_v25  ;;  %v2606_v28 = vld [vmem:[%s3547_s9 + $0x18] sm:$0xff]   ;;  %v2607_v29 = vld [vmem:[%s3547_s9 + $0x20] sm:$0xff]   ;;  %v2608_v30 = vld [vmem:[%s3547_s9 + $0x28] sm:$0xff]  }
 0x134   : > { %2305 = vmatpush3.bf16.msra.mxu0 %v2581_v3  ;;  %2349 = vmatpush3.bf16.msra.mxu1 %v2603_v25  ;;  %v2609_v31 = vld [vmem:[%s3547_s9 + $0x30] sm:$0xff]   ;;  %v2610_v32 = vld [vmem:[%s3547_s9 + $0x38] sm:$0xff]   ;;  %v1350_v34 = vld [vmem:[%s3533_s28] sm:$0xff] }
 0x135   : > { %2306 = vmatprep.subr.bf16.mxu0 %v2582_v4  ;;  %2350 = vmatprep.subr.bf16.mxu1 %v2604_v26  ;;  %v1352_v37 = vld [vmem:[%s3533_s28 + $0x10] sm:$0xff]  ;;  %v1351_v38 = vld [vmem:[%s3533_s28 + $0x8] sm:$0xff]  ;;  %v1353_v39 = vld [vmem:[%s3533_s28 + $0x18] sm:$0xff]  ;;  %v1386_v41 = vsel %vm3596_vm1, %v1350_v34, 0.0 }
 0x136   : > { %v1388_v42 = vsel %vm3596_vm1, %v1352_v37, 0.0  ;;  %v1387_v43 = vsel %vm3596_vm1, %v1351_v38, 0.0  ;;  %v1389_v44 = vsel %vm3596_vm1, %v1353_v39, 0.0  ;;  %v1419_v45 = vsel %vm1418_vm0, %v1386_v41, 0.0  ;;  %v1354_v47 = vld [vmem:[%s3533_s28 + $0x20] sm:$0xff]  ;;  %v1355_v48 = vld [vmem:[%s3533_s28 + $0x28] sm:$0xff] }
 0x137   : > { %v1425_v46 = vsel %vm1418_vm0, %v1388_v42, 0.0  ;;  %1420 = vadd.xlane.f32.xlu0 %v1419_v45  ;;  %v1422_v49 = vsel %vm1418_vm0, %v1387_v43, 0.0  ;;  %v1428_v50 = vsel %vm1418_vm0, %v1389_v44, 0.0  ;;  %v1390_v51 = vsel %vm3596_vm1, %v1354_v47, 0.0  ;;  %v1356_v53 = vld [vmem:[%s3533_s28 + $0x30] sm:$0xff]  ;;  %v1357_v54 = vld [vmem:[%s3533_s28 + $0x38] sm:$0xff] }
 0x138   : > { %2307 = vmatpush3.bf16.msra.mxu0 %v2582_v4  ;;  %2351 = vmatpush3.bf16.msra.mxu1 %v2604_v26  ;;  %v1391_v52 = vsel %vm3596_vm1, %v1355_v48, 0.0  ;;  %v1431_v55 = vsel %vm1418_vm0, %v1390_v51, 0.0  ;;  %v1392_v57 = vsel %vm3596_vm1, %v1356_v53, 0.0  ;;  %v1393_v58 = vsel %vm3596_vm1, %v1357_v54, 0.0  ;;  %v1358_v59 = vld [vmem:[%s3533_s28 + $0x40] sm:$0xff]  ;;  %v1359_v60 = vld [vmem:[%s3533_s28 + $0x48] sm:$0xff] }
 0x139   : > { %2308 = vmatprep.subr.bf16.mxu0 %v2583_v6  ;;  %2352 = vmatprep.subr.bf16.mxu1 %v2605_v27  ;;  %v1434_v56 = vsel %vm1418_vm0, %v1391_v52, 0.0  ;;  %v1437_v61 = vsel %vm1418_vm0, %v1392_v57, 0.0  ;;  %v1440_v62 = vsel %vm1418_vm0, %v1393_v58, 0.0  ;;  %v1394_v63 = vsel %vm3596_vm1, %v1358_v59, 0.0  ;;  %v1360_v1 = vld [vmem:[%s3533_s28 + $0x50] sm:$0xff]  ;;  %v1361_v2 = vld [vmem:[%s3533_s28 + $0x58] sm:$0xff] }
 0x13a   : > { %1426 = vadd.xlane.f32.xlu1 %v1425_v46  ;;  %v1395_v0 = vsel %vm3596_vm1, %v1359_v60, 0.0  ;;  %v1362_v3 = vld [vmem:[%s3533_s28 + $0x60] sm:$0xff]  ;;  %v1363_v4 = vld [vmem:[%s3533_s28 + $0x68] sm:$0xff]  ;;  %v1364_v5 = vld [vmem:[%s3533_s28 + $0x70] sm:$0xff] }
 0x13b   : > { %1423 = vadd.xlane.f32.xlu0 %v1422_v49  ;;  %v1370_v25 = vld [vmem:[%s3533_s28 + $0xa0] sm:$0xff]  ;;  %v1373_v38 = vld [vmem:[%s3533_s28 + $0xb8] sm:$0xff]  ;;  %v1375_v58 = vld [vmem:[%s3533_s28 + $0xc8] sm:$0xff] }
 0x13c   : > { %2309 = vmatpush3.bf16.msra.mxu0 %v2583_v6  ;;  %2353 = vmatpush3.bf16.msra.mxu1 %v2605_v27  ;;  %v1365_v6 = vld [vmem:[%s3533_s28 + $0x78] sm:$0xff]  ;;  %v1406_v44 = vsel %vm3596_vm1, %v1370_v25, 0.0  ;;  %v1409_v52 = vsel %vm3596_vm1, %v1373_v38, 0.0  ;;  %v1374_v53 = vld [vmem:[%s3533_s28 + $0xc0] sm:$0xff] }
 0x13d   : > { %2310 = vmatprep.subr.bf16.mxu0 %v2584_v7  ;;  %2354 = vmatprep.subr.bf16.mxu1 %v2606_v28  ;;  %v3718_v57 = vsel %vm1418_vm0, %v1406_v44, 0.0 }
 0x13e   : > { %1429 = vadd.xlane.f32.xlu1 %v1428_v50 }
 0x13f   : > { %1432 = vadd.xlane.f32.xlu0 %v1431_v55 }
 0x140   : > { %2311 = vmatpush3.bf16.msra.mxu0 %v2584_v7  ;;  %2355 = vmatpush3.bf16.msra.mxu1 %v2606_v28  ;;  %v1443_v7 = vsel %vm1418_vm0, %v1394_v63, 0.0  ;;  %v1376_v63 = vld [vmem:[%s3533_s28 + $0xd0] sm:$0xff] }
 0x141   : > { %2312 = vmatprep.subr.bf16.mxu0 %v2585_v8  ;;  %2356 = vmatprep.subr.bf16.mxu1 %v2607_v29 }
 0x142   : > { %1435 = vadd.xlane.f32.xlu1 %v1434_v56 }
 0x143   : > { %1438 = vadd.xlane.f32.xlu0 %v1437_v61 }
 0x144   : > { %2313 = vmatpush3.bf16.msra.mxu0 %v2585_v8  ;;  %2357 = vmatpush3.bf16.msra.mxu1 %v2607_v29  ;;  %v1446_v8 = vsel %vm1418_vm0, %v1395_v0, 0.0 }
 0x145   : > { %2314 = vmatprep.subr.bf16.mxu0 %v2586_v9  ;;  %2358 = vmatprep.subr.bf16.mxu1 %v2608_v30 }
 0x146   : > { %1441 = vadd.xlane.f32.xlu1 %v1440_v62 }
 0x147   : > { %1444 = vadd.xlane.f32.xlu0 %v1443_v7 }
 0x148   : > { %2315 = vmatpush3.bf16.msra.mxu0 %v2586_v9  ;;  %2359 = vmatpush3.bf16.msra.mxu1 %v2608_v30  ;;  %v1366_v9 = vld [vmem:[%s3533_s28 + $0x80] sm:$0xff] }
 0x149   : > { %2360 = vmatprep.subr.bf16.mxu1 %v2609_v31 }
 0x14a   : > { %1447 = vadd.xlane.f32.xlu1 %v1446_v8 }
 0x14b   : > { %2317 = vmatmul.mubr.bf16.vlgmr.msra.gmra.mrb[0].mxu0 %v2588_v10  ;;  %v1396_v10 = vsel %vm3596_vm1, %v1360_v1, 0.0 }
 0x14c   : > { %2320 = vmatprep.mubr.bf16.mxu0 %v2589_v11  ;;  %2361 = vmatpush3.bf16.msra.mxu1 %v2609_v31  ;;  %v1397_v11 = vsel %vm3596_vm1, %v1361_v2, 0.0  ;;  %v1371_v31 = vld [vmem:[%s3533_s28 + $0xa8] sm:$0xff] }
 0x14d   : > { %2362 = vmatprep.subr.bf16.mxu1 %v2610_v32  ;;  %v1407_v47 = vsel %vm3596_vm1, %v1371_v31, 0.0 }
 0x14e   : > { %v3723_v61 = vsel %vm1418_vm0, %v1407_v47, 0.0 }
 0x150   : > { %2363 = vmatpush3.bf16.msra.mxu1 %v2610_v32  ;;  %v1372_v32 = vld [vmem:[%s3533_s28 + $0xb0] sm:$0xff] }
 0x151   : > { %v1408_v48 = vsel %vm3596_vm1, %v1372_v32, 0.0 }
 0x152   : > { %v3726_v62 = vsel %vm1418_vm0, %v1408_v48, 0.0 }
 0x153   : > { %2321 = vmatmul.mubr.bf16.gmra.mrb[4].mxu0 %v2590_v12  ;;  %v1398_v12 = vsel %vm3596_vm1, %v1362_v3, 0.0  ;;  %v3733_v3 = vsel %vm1418_vm0, %v1409_v52, 0.0 }
 0x154   : > { %2324 = vmatprep.mubr.bf16.mxu0 %v2591_v13  ;;  %v1367_v13 = vld [vmem:[%s3533_s28 + $0x88] sm:$0xff] }
 0x15b   : > { %2325 = vmatmul.mubr.bf16.gmra.mrb[8].mxu0 %v2592_v14  ;;  %v1399_v14 = vsel %vm3596_vm1, %v1363_v4, 0.0  ;;  %v1410_v4 = vsel %vm3596_vm1, %v1374_v53, 0.0 }
 0x15c   : > { %2328 = vmatprep.mubr.bf16.mxu0 %v2593_v15  ;;  %v1400_v15 = vsel %vm3596_vm1, %v1364_v5, 0.0  ;;  %v1458_v28 = vsel %vm1418_vm0, %v1399_v14, 0.0  ;;  %v1412_v14 = vsel %vm3596_vm1, %v1376_v63, 0.0 }
 0x15d   : > { %v1461_v29 = vsel %vm1418_vm0, %v1400_v15, 0.0  ;;  %v1377_v15 = vld [vmem:[%s3533_s28 + $0xd8] sm:$0xff]  ;;  %v3776_v38 = vsel %vm1418_vm0, %v1412_v14, 0.0 }
 0x163   : > { %2329 = vmatmul.mubr.bf16.gmra.mrb[12].mxu0 %v2594_v16  ;;  %v1401_v16 = vsel %vm3596_vm1, %v1365_v6, 0.0 }
 0x164   : > { %2332 = vmatprep.mubr.bf16.mxu0 %v2595_v17  ;;  %v1402_v17 = vsel %vm3596_vm1, %v1366_v9, 0.0  ;;  %v1464_v30 = vsel %vm1418_vm0, %v1401_v16, 0.0  ;;  %v1411_v9 = vsel %vm3596_vm1, %v1375_v58, 0.0 }
 0x165   : > { %v3682_v35 = vsel %vm1418_vm0, %v1402_v17, 0.0  ;;  %v3769_v32 = vsel %vm1418_vm0, %v1411_v9, 0.0 }
 0x16b   : > { %2333 = vmatmul.mubr.bf16.gmra.mrb[16].mxu0 %v2596_v18  ;;  %v1368_v18 = vld [vmem:[%s3533_s28 + $0x90] sm:$0xff] }
 0x16c   : > { %2336 = vmatprep.mubr.bf16.mxu0 %v2597_v19  ;;  %v1369_v19 = vld [vmem:[%s3533_s28 + $0x98] sm:$0xff]  ;;  %v1404_v36 = vsel %vm3596_vm1, %v1368_v18, 0.0 }
 0x16d   : > { %v1405_v37 = vsel %vm3596_vm1, %v1369_v19, 0.0  ;;  %v3708_v51 = vsel %vm1418_vm0, %v1404_v36, 0.0 }
 0x16e   : > { %v3715_v56 = vsel %vm1418_vm0, %v1405_v37, 0.0 }
 0x173   : > { %2337 = vmatmul.mubr.bf16.gmra.mrb[20].mxu0 %v2598_v20 }
 0x174   : > { %2340 = vmatprep.mubr.bf16.mxu0 %v2599_v21  ;;  %v1449_v21 = vsel %vm1418_vm0, %v1396_v10, 0.0 }
 0x175   : > { %1450 = vadd.xlane.f32.xlu0 %v1449_v21 }
 0x17b   : > { %2341 = vmatmul.mubr.bf16.gmra.mrb[24].mxu0 %v2600_v22  ;;  %v1452_v22 = vsel %vm1418_vm0, %v1397_v11, 0.0 }
 0x17c   : > { %2344 = vmatprep.mubr.bf16.mxu0 %v2601_v23  ;;  %v1455_v23 = vsel %vm1418_vm0, %v1398_v12, 0.0  ;;  %1453 = vadd.xlane.f32.xlu1 %v1452_v22 }
 0x17d   : > { %1456 = vadd.xlane.f32.xlu0 %v1455_v23 }
 0x180   : > { %1459 = vadd.xlane.f32.xlu1 %v1458_v28  ;;  %v1378_v28 = vld [vmem:[%s3533_s28 + $0xe0] sm:$0xff] }
 0x181   : > { %1462 = vadd.xlane.f32.xlu0 %v1461_v29  ;;  %v1414_v47 = vsel %vm3596_vm1, %v1378_v28, 0.0 }
 0x183   : > { %2345 = vmatmul.mubr.bf16.gmra.mrb[28].mxu0 %v2602_v24  ;;  %v1403_v24 = vsel %vm3596_vm1, %v1367_v13, 0.0 }
 0x184   : > { %v3695_v43 = vsel %vm1418_vm0, %v1403_v24, 0.0  ;;  %1465 = vadd.xlane.f32.xlu1 %v1464_v30  ;;  %v3766_v30 = vsel %vm1418_vm0, %v1410_v4, 0.0 }
 0x185   : > { %1468 = vadd.xlane.f32.xlu0 %v3682_v35 }
 0x188   : > { %1471 = vadd.xlane.f32.xlu1 %v3695_v43 }
 0x189   : > { %1474 = vadd.xlane.f32.xlu0 %v3708_v51 }
 0x18c   : > { %1477 = vadd.xlane.f32.xlu1 %v3715_v56 }
 0x18d   : > { %1480 = vadd.xlane.f32.xlu0 %v3718_v57 }
 0x190   : > { %1483 = vadd.xlane.f32.xlu1 %v3723_v61 }
 0x191   : > { %1486 = vadd.xlane.f32.xlu0 %v3726_v62 }
 0x194   : > { %1489 = vadd.xlane.f32.xlu1 %v3733_v3 }
 0x195   : > { %1492 = vadd.xlane.f32.xlu0 %v3766_v30 }
 0x198   : > { %1495 = vadd.xlane.f32.xlu1 %v3769_v32 }
 0x199   : > { %1498 = vadd.xlane.f32.xlu0 %v3776_v38 }
 0x21e   : > { %v3660_v20 = vpop.f32.mrb[0].mxu0 }
 0x21f   : > { %v823_v26 = vmul.f32 %v3660_v20, %v3660_v20  ;;  %v3670_v27 = vpop.f32.mrb[1].mxu0 }
 0x220   : > { %v821_v33 = vmul.f32 %v3670_v27, %v3670_v27  ;;  %v3679_v34 = vpop.f32.mrb[2].mxu0 }
 0x221   : > { %v855_v39 = vmul.f32 %v3660_v20, %v823_v26  ;;  %v824_v41 = vmul.f32 %v3679_v34, %v3679_v34  ;;  %v3692_v42 = vpop.f32.mrb[3].mxu0  ;;  %v1413_v26 = vsel %vm3596_vm1, %v1377_v15, 0.0 }
 0x222   : > { %v853_v45 = vmul.f32 %v821_v33, %v3670_v27  ;;  %v822_v46 = vmul.f32 %v3692_v42, %v3692_v42  ;;  %v1379_v33 = vld [vmem:[%s3533_s28 + $0xe8] sm:$0xff] }
 0x223   : > { %v887_v49 = vmul.f32 0.044715, %v855_v39  ;;  %v856_v50 = vmul.f32 %v3679_v34, %v824_v41  ;;  %v1380_v39 = vld [vmem:[%s3533_s28 + $0xf0] sm:$0xff] }
 0x224   : > { %v885_v54 = vmul.f32 0.044715, %v853_v45  ;;  %v854_v55 = vmul.f32 %v822_v46, %v3692_v42  ;;  %v3783_v46 = vsel %vm1418_vm0, %v1413_v26, 0.0  ;;  %v1416_v58 = vsel %vm3596_vm1, %v1380_v39, 0.0 }
 0x225   : > { %v919_v59 = vadd.f32 %v3660_v20, %v887_v49  ;;  %v888_v60 = vmul.f32 0.044715, %v856_v50  ;;  %v1415_v50 = vsel %vm3596_vm1, %v1379_v33, 0.0  ;;  %1501 = vadd.xlane.f32.xlu1 %v3783_v46 }
 0x226   : > { %v917_v0 = vadd.f32 %v885_v54, %v3670_v27  ;;  %v886_v1 = vmul.f32 0.044715, %v854_v55  ;;  %v3730_v2 = vpop.f32.mrb[4].mxu0  ;;  %v3823_v40 = vsel %vm1418_vm0, %v1415_v50, 0.0 }
 0x227   : > { %v951_v5 = vmul.f32 0.7978846, %v919_v59  ;;  %v920_v6 = vadd.f32 %v3679_v34, %v888_v60  ;;  %v827_v7 = vmul.f32 %v3730_v2, %v3730_v2  ;;  %v3740_v8 = vpop.f32.mrb[5].mxu0  ;;  %v1381_v59 = vld [vmem:[%s3533_s28 + $0xf8] sm:$0xff] }
 0x228   : > { %v949_v10 = vmul.f32 0.7978846, %v917_v0  ;;  %v918_v11 = vadd.f32 %v886_v1, %v3692_v42  ;;  %v825_v12 = vmul.f32 %v3740_v8, %v3740_v8  ;;  %v3747_v13 = vpop.f32.mrb[6].mxu0 }
 0x229   : > { %2611 = vtanh.f32 %v951_v5  ;;  %v952_v16 = vmul.f32 0.7978846, %v920_v6  ;;  %v859_v17 = vmul.f32 %v3730_v2, %v827_v7  ;;  %v828_v18 = vmul.f32 %v3747_v13, %v3747_v13  ;;  %v3755_v19 = vpop.f32.mrb[7].mxu0  ;;  %1507 = vadd.xlane.f32.xlu1 %v3823_v40 }
 0x22a   : > { %2613 = vtanh.f32 %v949_v10  ;;  %v950_v21 = vmul.f32 0.7978846, %v918_v11  ;;  %v857_v22 = vmul.f32 %v825_v12, %v3740_v8  ;;  %v826_v23 = vmul.f32 %v3755_v19, %v3755_v19 }
 0x22b   : > { %2615 = vtanh.f32 %v952_v16  ;;  %v891_v24 = vmul.f32 0.044715, %v859_v17  ;;  %v860_v25 = vmul.f32 %v3747_v13, %v828_v18  ;;  %v1417_v11 = vsel %vm3596_vm1, %v1381_v59, 0.0 }
 0x22c   : > { %v889_v31 = vmul.f32 0.044715, %v857_v22  ;;  %v858_v29 = vmul.f32 %v826_v23, %v3755_v19  ;;  %2617 = vtanh.f32 %v950_v21  ;;  %v3820_v18 = vsel %vm1418_vm0, %v1414_v47, 0.0 }
 0x22d   : > { %v923_v36 = vadd.f32 %v3730_v2, %v891_v24  ;;  %v892_v37 = vmul.f32 0.044715, %v860_v25  ;;  %v3829_v24 = vsel %vm1418_vm0, %v1416_v58, 0.0  ;;  %v3832_v25 = vsel %vm1418_vm0, %v1417_v11, 0.0  ;;  %1504 = vadd.xlane.f32.xlu0 %v3820_v18 }
 0x22e   : > { %v921_v41 = vadd.f32 %v889_v31, %v3740_v8  ;;  %v890_v44 = vmul.f32 0.044715, %v858_v29  ;;  %v3780_v45 = vpop.f32.mrb[8].mxu0  ;;  %1513 = vadd.xlane.f32.xlu1 %v3832_v25 }
 0x22f   : > { %v955_v48 = vmul.f32 0.7978846, %v923_v36  ;;  %v924_v35 = vadd.f32 %v3747_v13, %v892_v37  ;;  %v831_v43 = vmul.f32 %v3780_v45, %v3780_v45  ;;  %v3790_v49 = vpop.f32.mrb[9].mxu0 }
 0x230   : > { %v953_v52 = vmul.f32 0.7978846, %v921_v41  ;;  %v922_v53 = vadd.f32 %v890_v44, %v3755_v19  ;;  %v829_v54 = vmul.f32 %v3790_v49, %v3790_v49  ;;  %v3797_v55 = vpop.f32.mrb[10].mxu0 }
 0x231   : > { %2619 = vtanh.f32 %v955_v48  ;;  %v956_v60 = vmul.f32 0.7978846, %v924_v35  ;;  %v863_v63 = vmul.f32 %v3780_v45, %v831_v43  ;;  %v832_v0 = vmul.f32 %v3797_v55, %v3797_v55  ;;  %v3805_v1 = vpop.f32.mrb[11].mxu0  ;;  %1510 = vadd.xlane.f32.xlu0 %v3829_v24 }
 0x232   : > { %2621 = vtanh.f32 %v953_v52  ;;  %v954_v4 = vmul.f32 0.7978846, %v922_v53  ;;  %v861_v5 = vmul.f32 %v829_v54, %v3790_v49  ;;  %v830_v6 = vmul.f32 %v3805_v1, %v3805_v1 }
 0x233   : > { %v2612_v7 = vpop.eup %2611  ;;  %2623 = vtanh.f32 %v956_v60  ;;  %v895_v9 = vmul.f32 0.044715, %v863_v63  ;;  %v864_v10 = vmul.f32 %v3797_v55, %v832_v0 }
 0x234   : > { %v2614_v12 = vpop.eup %2613  ;;  %v1015_v14 = vadd.f32 1.0, %v2612_v7  ;;  %2625 = vtanh.f32 %v954_v4  ;;  %v893_v51 = vmul.f32 0.044715, %v861_v5  ;;  %v862_v56 = vmul.f32 %v830_v6, %v3805_v1 }
 0x235   : > { %v2616_v15 = vpop.eup %2615  ;;  %v927_v16 = vadd.f32 %v3780_v45, %v895_v9  ;;  %v896_v17 = vmul.f32 0.044715, %v864_v10  ;;  %v1013_v29 = vadd.f32 1.0, %v2614_v12 }
 0x236   : > { %v925_v21 = vadd.f32 %v893_v51, %v3790_v49  ;;  %v894_v22 = vmul.f32 0.044715, %v862_v56  ;;  %v3826_v23 = vpop.f32.mrb[12].mxu0  ;;  %v2618_v57 = vpop.eup %2617  ;;  %v1047_v33 = vmul.f32 0.5, %v1015_v14  ;;  %v1016_v36 = vadd.f32 1.0, %v2616_v15 }
 0x237   : > { %v959_v26 = vmul.f32 0.7978846, %v927_v16  ;;  %v928_v61 = vadd.f32 %v3797_v55, %v896_v17  ;;  %v835_v28 = vmul.f32 %v3826_v23, %v3826_v23  ;;  %v3837_v31 = vpop.f32.mrb[13].mxu0  ;;  %v1014_v52 = vadd.f32 1.0, %v2618_v57 }
 0x238   : > { %v957_v37 = vmul.f32 0.7978846, %v925_v21  ;;  %v926_v39 = vadd.f32 %v894_v22, %v3805_v1  ;;  %v3840_v41 = vpop.f32.mrb[14].mxu0  ;;  %v833_v48 = vmul.f32 %v3837_v31, %v3837_v31  ;;  %v1048_v63 = vmul.f32 0.5, %v1016_v36 }
 0x239   : > { %2627 = vtanh.f32 %v959_v26  ;;  %v960_v44 = vmul.f32 0.7978846, %v928_v61  ;;  %v867_v47 = vmul.f32 %v3826_v23, %v835_v28  ;;  %v3845_v35 = vpop.f32.mrb[15].mxu0  ;;  %v836_v50 = vmul.f32 %v3840_v41, %v3840_v41 }
 0x23a   : > { %2629 = vtanh.f32 %v957_v37  ;;  %v958_v43 = vmul.f32 0.7978846, %v926_v39  ;;  %v865_v58 = vmul.f32 %v833_v48, %v3837_v31  ;;  %v834_v59 = vmul.f32 %v3845_v35, %v3845_v35 }
 0x23b   : > { %v2620_v53 = vpop.eup %2619  ;;  %2631 = vtanh.f32 %v960_v44  ;;  %v899_v54 = vmul.f32 0.044715, %v867_v47  ;;  %v868_v62 = vmul.f32 %v3840_v41, %v836_v50  ;;  %v3860_v10 = vmul.f32 %v3660_v20, %v1047_v33 }
 0x23c   : > { %v2622_v60 = vpop.eup %2621  ;;  %v1019_v0 = vadd.f32 1.0, %v2620_v53  ;;  %2633 = vtanh.f32 %v958_v43  ;;  %v897_v6 = vmul.f32 0.044715, %v865_v58  ;;  %v866_v7 = vmul.f32 %v834_v59, %v3845_v35 }
 0x23d   : > { %v2624_v3 = vpop.eup %2623  ;;  %v1017_v4 = vadd.f32 1.0, %v2622_v60  ;;  %v931_v5 = vadd.f32 %v3826_v23, %v899_v54  ;;  %v900_v14 = vmul.f32 0.044715, %v868_v62  ;;  %v1045_v21 = vmul.f32 0.5, %v1013_v29 }
 0x23e   : > { %v2626_v9 = vpop.eup %2625  ;;  %v1051_v11 = vmul.f32 0.5, %v1019_v0  ;;  %v1020_v12 = vadd.f32 1.0, %v2624_v3  ;;  %v3862_v51 = vpop.f32.mrb[16].mxu0  ;;  %v929_v16 = vadd.f32 %v897_v6, %v3837_v31  ;;  %v3868_v30 = vmul.f32 %v3679_v34, %v1048_v63 }
 0x23f   : > { %v1018_v56 = vadd.f32 1.0, %v2626_v9  ;;  %v963_v15 = vmul.f32 0.7978846, %v931_v5  ;;  %v3865_v17 = vpop.f32.mrb[17].mxu0  ;;  %v932_v32 = vadd.f32 %v3840_v41, %v900_v14  ;;  %v898_v22 = vmul.f32 0.044715, %v866_v7 }
 0x240   : > { %v1046_v20 = vmul.f32 0.5, %v1014_v52  ;;  %v3871_v57 = vpop.f32.mrb[18].mxu0  ;;  %v3874_v26 = vmul.f32 %v3730_v2, %v1051_v11  ;;  %v1049_v61 = vmul.f32 0.5, %v1017_v4  ;;  %v961_v28 = vmul.f32 0.7978846, %v929_v16 }
 0x241   : > { %2635 = vtanh.f32 %v963_v15  ;;  %v3876_v33 = vpop.f32.mrb[19].mxu0  ;;  %v1052_v34 = vmul.f32 0.5, %v1020_v12  ;;  %v964_v29 = vmul.f32 0.7978846, %v932_v32  ;;  %v930_v36 = vadd.f32 %v898_v22, %v3845_v35 }
 0x242   : > { %v839_v37 = vmul.f32 %v3862_v51, %v3862_v51  ;;  %v1050_v44 = vmul.f32 0.5, %v1018_v56  ;;  %2637 = vtanh.f32 %v961_v28  ;;  %v837_v2 = vmul.f32 %v3865_v17, %v3865_v17 }
 0x243   : > { %v2628_v39 = vpop.eup %2627  ;;  %v1077_v47 = vmul.f32 %v1045_v21, %v3670_v27  ;;  %2639 = vtanh.f32 %v964_v29  ;;  %v962_v38 = vmul.f32 0.7978846, %v930_v36  ;;  %v1078_v54 = vmul.f32 %v1046_v20, %v3692_v42 }
 0x244   : > { %v2630_v48 = vpop.eup %2629  ;;  %v1023_v43 = vadd.f32 1.0, %v2628_v39  ;;  %v871_v46 = vmul.f32 %v3862_v51, %v839_v37  ;;  %v869_v53 = vmul.f32 %v837_v2, %v3865_v17  ;;  %v840_v58 = vmul.f32 %v3871_v57, %v3871_v57 }
 0x245   : > { %v2632_v50 = vpop.eup %2631  ;;  %v1021_v52 = vadd.f32 1.0, %v2630_v48  ;;  %2641 = vtanh.f32 %v962_v38  ;;  %v1081_v62 = vmul.f32 %v1049_v61, %v3740_v8  ;;  %v1109_v5 = vpack.c.bf16 %v1078_v54, %v1077_v47 }
 0x246   : > { %v2634_v27 = vpop.eup %2633  ;;  %v1055_v59 = vmul.f32 0.5, %v1023_v43  ;;  %v1024_v60 = vadd.f32 1.0, %v2632_v50  ;;  %v903_v63 = vmul.f32 0.044715, %v871_v46  ;;  %v3893_v0 = vpop.f32.mrb[20].mxu0  ;;  %v3899_v6 = vmul.f32 %v3747_v13, %v1052_v34 }
 0x247   : > { %v1022_v3 = vadd.f32 1.0, %v2634_v27  ;;  %v901_v4 = vmul.f32 0.044715, %v869_v53  ;;  %v3896_v42 = vpop.f32.mrb[21].mxu0  ;;  %v1082_v18 = vmul.f32 %v1050_v44, %v3755_v19  ;;  %v872_v7 = vmul.f32 %v3871_v57, %v840_v58  ;;  %2364 = vmatprep.mubr.bf16.mxu1 %v1109_v5 }
 0x248   : > { %v935_v40 = vadd.f32 %v3862_v51, %v903_v63  ;;  %v3904_v9 = vpop.f32.mrb[22].mxu0  ;;  %v3907_v11 = vmul.f32 %v3780_v45, %v1055_v59  ;;  %v1053_v8 = vmul.f32 0.5, %v1021_v52  ;;  %v1110_v14 = vpack.c.bf16 %v3868_v30, %v3860_v10 }
 0x249   : > { %v933_v12 = vadd.f32 %v901_v4, %v3865_v17  ;;  %v3912_v13 = vpop.f32.mrb[23].mxu0  ;;  %v1056_v19 = vmul.f32 0.5, %v1024_v60  ;;  %v904_v15 = vmul.f32 0.044715, %v872_v7  ;;  %v838_v16 = vmul.f32 %v3876_v33, %v3876_v33 }
 0x24a   : > { %v967_v56 = vmul.f32 0.7978846, %v935_v40  ;;  %v1054_v21 = vmul.f32 0.5, %v1022_v3  ;;  %2365 = vmatmul.mubr.bf16.vlgmr.msra.gmra.mrb[0].mxu1 %v1110_v14  ;;  %v843_v22 = vmul.f32 %v3893_v0, %v3893_v0  ;;  %v841_v10 = vmul.f32 %v3896_v42, %v3896_v42 }
 0x24b   : > { %v2636_v45 = vpop.eup %2635  ;;  %v965_v32 = vmul.f32 0.7978846, %v933_v12  ;;  %v936_v24 = vadd.f32 %v3871_v57, %v904_v15  ;;  %v870_v20 = vmul.f32 %v838_v16, %v3876_v33  ;;  %v1111_v34 = vpack.c.bf16 %v1082_v18, %v1081_v62 }
 0x24c   : > { %v1027_v30 = vadd.f32 1.0, %v2636_v45  ;;  %2643 = vtanh.f32 %v967_v56  ;;  %v2638_v61 = vpop.eup %2637  ;;  %v875_v25 = vmul.f32 %v3893_v0, %v843_v22  ;;  %v873_v28 = vmul.f32 %v841_v10, %v3896_v42 }
 0x24d   : > { %2645 = vtanh.f32 %v965_v32  ;;  %v2640_v29 = vpop.eup %2639  ;;  %v1025_v37 = vadd.f32 1.0, %v2638_v61  ;;  %v968_v39 = vmul.f32 0.7978846, %v936_v24  ;;  %v902_v44 = vmul.f32 0.044715, %v870_v20  ;;  %2368 = vmatprep.mubr.bf16.mxu1 %v1111_v34 }
 0x24e   : > { %v1059_v36 = vmul.f32 0.5, %v1027_v30  ;;  %v1028_v2 = vadd.f32 1.0, %v2640_v29  ;;  %v907_v47 = vmul.f32 0.044715, %v875_v25  ;;  %v905_v48 = vmul.f32 0.044715, %v873_v28 }
 0x24f   : > { %v844_v43 = vmul.f32 %v3904_v9, %v3904_v9  ;;  %v3928_v38 = vpop.f32.mrb[24].mxu0  ;;  %v2642_v46 = vpop.eup %2641  ;;  %v1085_v50 = vmul.f32 %v1053_v8, %v3790_v49  ;;  %v1088_v52 = vmul.f32 %v3797_v55, %v1056_v19  ;;  %2647 = vtanh.f32 %v968_v39 }
 0x250   : > { %v934_v53 = vadd.f32 %v902_v44, %v3876_v33  ;;  %v3933_v54 = vpop.f32.mrb[25].mxu0  ;;  %v1086_v58 = vmul.f32 %v1054_v21, %v3805_v1  ;;  %v1057_v27 = vmul.f32 0.5, %v1025_v37  ;;  %v939_v59 = vadd.f32 %v3893_v0, %v907_v47 }
 0x251   : > { %v937_v60 = vadd.f32 %v905_v48, %v3896_v42  ;;  %v3938_v63 = vpop.f32.mrb[26].mxu0  ;;  %v3941_v62 = vmul.f32 %v3826_v23, %v1059_v36  ;;  %v876_v55 = vmul.f32 %v3904_v9, %v844_v43  ;;  %v1112_v3 = vpack.c.bf16 %v3899_v6, %v3874_v26 }
 0x252   : > { %v966_v49 = vmul.f32 0.7978846, %v934_v53  ;;  %v3946_v4 = vpop.f32.mrb[27].mxu0  ;;  %v1060_v5 = vmul.f32 0.5, %v1028_v2  ;;  %v1026_v1 = vadd.f32 1.0, %v2642_v46  ;;  %v842_v8 = vmul.f32 %v3912_v13, %v3912_v13 }
 0x253   : > { %v971_v18 = vmul.f32 0.7978846, %v939_v59  ;;  %v969_v40 = vmul.f32 0.7978846, %v937_v60  ;;  %v908_v7 = vmul.f32 0.044715, %v876_v55  ;;  %2369 = vmatmul.mubr.bf16.gmra.mrb[4].mxu1 %v1112_v3  ;;  %v847_v23 = vmul.f32 %v3928_v38, %v3928_v38 }
 0x254   : > { %2649 = vtanh.f32 %v966_v49  ;;  %v3953_v12 = vmul.f32 %v1057_v27, %v3837_v31  ;;  %v845_v26 = vmul.f32 %v3933_v54, %v3933_v54  ;;  %v1113_v6 = vpack.c.bf16 %v1086_v58, %v1085_v50 }
 0x255   : > { %2651 = vtanh.f32 %v971_v18  ;;  %v940_v19 = vadd.f32 %v3904_v9, %v908_v7  ;;  %v874_v56 = vmul.f32 %v842_v8, %v3912_v13  ;;  %v879_v15 = vmul.f32 %v3928_v38, %v847_v23 }
 0x256   : > { %v2644_v14 = vpop.eup %2643  ;;  %2653 = vtanh.f32 %v969_v40  ;;  %v3960_v16 = vpop.f32.mrb[28].mxu0  ;;  %v877_v31 = vmul.f32 %v845_v26, %v3933_v54  ;;  %2372 = vmatprep.mubr.bf16.mxu1 %v1113_v6  ;;  %v848_v32 = vmul.f32 %v3938_v63, %v3938_v63  ;;  %v1114_v22 = vpack.c.bf16 %v1088_v52, %v3907_v11 }
 0x257   : > { %v2646_v45 = vpop.eup %2645  ;;  %v1031_v21 = vadd.f32 1.0, %v2644_v14  ;;  %v3966_v10 = vpop.f32.mrb[29].mxu0  ;;  %v1058_v30 = vmul.f32 0.5, %v1026_v1  ;;  %v972_v24 = vmul.f32 0.7978846, %v940_v19  ;;  %v846_v61 = vmul.f32 %v3946_v4, %v3946_v4 }
 0x258   : > { %v906_v20 = vmul.f32 0.044715, %v874_v56  ;;  %v3970_v25 = vpop.f32.mrb[30].mxu0  ;;  %v1092_v28 = vmul.f32 %v3840_v41, %v1060_v5  ;;  %v911_v34 = vmul.f32 0.044715, %v879_v15  ;;  %v880_v36 = vmul.f32 %v3938_v63, %v848_v32 }
 0x259   : > { %v909_v29 = vmul.f32 0.044715, %v877_v31  ;;  %v3974_v37 = vpop.f32.mrb[31].mxu0  ;;  %v2648_v39 = vpop.eup %2647  ;;  %v1029_v11 = vadd.f32 1.0, %v2646_v45  ;;  %2655 = vtanh.f32 %v972_v24  ;;  %v878_v2 = vmul.f32 %v846_v61, %v3946_v4 }
 0x25a   : > { %v938_v44 = vadd.f32 %v906_v20, %v3912_v13  ;;  %v1063_v47 = vmul.f32 0.5, %v1031_v21  ;;  %v1032_v48 = vadd.f32 1.0, %v2648_v39  ;;  %v943_v43 = vadd.f32 %v3928_v38, %v911_v34 }
 0x25b   : > { %v941_v46 = vadd.f32 %v909_v29, %v3933_v54  ;;  %v1090_v41 = vmul.f32 %v1058_v30, %v3845_v35  ;;  %v912_v52 = vmul.f32 0.044715, %v880_v36  ;;  %2373 = vmatmul.mubr.bf16.gmra.mrb[8].mxu1 %v1114_v22  ;;  %v910_v53 = vmul.f32 0.044715, %v878_v2 }
 0x25c   : > { %v970_v50 = vmul.f32 0.7978846, %v938_v44  ;;  %v1064_v58 = vmul.f32 0.5, %v1032_v48  ;;  %v975_v27 = vmul.f32 0.7978846, %v943_v43  ;;  %v851_v60 = vmul.f32 %v3960_v16, %v3960_v16 }
 0x25d   : > { %v973_v59 = vmul.f32 0.7978846, %v941_v46  ;;  %v944_v55 = vadd.f32 %v3938_v63, %v912_v52  ;;  %v942_v3 = vadd.f32 %v910_v53, %v3946_v4  ;;  %v849_v5 = vmul.f32 %v3966_v10, %v3966_v10 }
 0x25e   : > { %v2650_v49 = vpop.eup %2649  ;;  %2657 = vtanh.f32 %v970_v50  ;;  %v1061_v1 = vmul.f32 0.5, %v1029_v11  ;;  %v883_v40 = vmul.f32 %v3960_v16, %v851_v60  ;;  %v1095_v8 = vmul.f32 %v3862_v51, %v1063_v47 }
 0x25f   : > { %v2652_v35 = vpop.eup %2651  ;;  %v1030_v18 = vadd.f32 1.0, %v2650_v49  ;;  %2659 = vtanh.f32 %v975_v27  ;;  %v976_v23 = vmul.f32 0.7978846, %v944_v55  ;;  %v974_v26 = vmul.f32 0.7978846, %v942_v3 }
 0x260   : > { %v2654_v7 = vpop.eup %2653  ;;  %2661 = vtanh.f32 %v973_v59  ;;  %v1035_v14 = vadd.f32 1.0, %v2652_v35  ;;  %v915_v19 = vmul.f32 0.044715, %v883_v40  ;;  %v881_v56 = vmul.f32 %v849_v5, %v3966_v10 }
 0x261   : > { %v1062_v6 = vmul.f32 0.5, %v1030_v18  ;;  %v1096_v15 = vmul.f32 %v3871_v57, %v1064_v58  ;;  %2663 = vtanh.f32 %v976_v23  ;;  %v1115_v45 = vpack.c.bf16 %v1090_v41, %v3953_v12 }
 0x262   : > { %v852_v21 = vmul.f32 %v3970_v25, %v3970_v25  ;;  %v1093_v31 = vmul.f32 %v1061_v1, %v3865_v17  ;;  %2665 = vtanh.f32 %v974_v26  ;;  %v947_v32 = vadd.f32 %v3960_v16, %v915_v19 }
 0x263   : > { %v1094_v51 = vmul.f32 %v1062_v6, %v3876_v33  ;;  %v2656_v22 = vpop.eup %2655  ;;  %v1033_v30 = vadd.f32 1.0, %v2654_v7  ;;  %v913_v24 = vmul.f32 0.044715, %v881_v56  ;;  %2376 = vmatprep.mubr.bf16.mxu1 %v1115_v45  ;;  %v1116_v57 = vpack.c.bf16 %v1092_v28, %v3941_v62 }
 0x264   : > { %v884_v20 = vmul.f32 %v3970_v25, %v852_v21  ;;  %v1067_v61 = vmul.f32 0.5, %v1035_v14  ;;  %v1036_v12 = vadd.f32 1.0, %v2656_v22  ;;  %v979_v34 = vmul.f32 0.7978846, %v947_v32 }
 0x265   : > { %v850_v29 = vmul.f32 %v3974_v37, %v3974_v37  ;;  %v945_v17 = vadd.f32 %v913_v24, %v3966_v10  ;;  %2377 = vmatmul.mubr.bf16.gmra.mrb[12].mxu1 %v1116_v57  ;;  %v1117_v36 = vpack.c.bf16 %v1094_v51, %v1093_v31  ;;  %v1118_v39 = vpack.c.bf16 %v1096_v15, %v1095_v8 }
 0x266   : > { %v916_v33 = vmul.f32 0.044715, %v884_v20  ;;  %v1068_v11 = vmul.f32 0.5, %v1036_v12  ;;  %2667 = vtanh.f32 %v979_v34  ;;  %v1065_v47 = vmul.f32 0.5, %v1033_v30  ;;  %v1421_v34 = vpop.xlane.xlu0 %1420 }
 0x267   : > { %v882_v44 = vmul.f32 %v850_v29, %v3974_v37  ;;  %v977_v48 = vmul.f32 0.7978846, %v945_v17  ;;  %2380 = vmatprep.mubr.bf16.mxu1 %v1117_v36  ;;  %v1099_v43 = vmul.f32 %v3893_v0, %v1067_v61  ;;  %v1427_v29 = vpop.xlane.xlu1 %1426 }
 0x268   : > { %v2658_v2 = vpop.eup %2657  ;;  %v948_v62 = vadd.f32 %v3970_v25, %v916_v33  ;;  %v1100_v46 = vmul.f32 %v3904_v9, %v1068_v11  ;;  %v1097_v3 = vmul.f32 %v1065_v47, %v3896_v42 }
 0x269   : > { %v2660_v28 = vpop.eup %2659  ;;  %v1034_v41 = vadd.f32 1.0, %v2658_v2  ;;  %v914_v50 = vmul.f32 0.044715, %v882_v44  ;;  %2669 = vtanh.f32 %v977_v48 }
 0x26a   : > { %v2662_v52 = vpop.eup %2661  ;;  %v1039_v53 = vadd.f32 1.0, %v2660_v28  ;;  %v980_v58 = vmul.f32 0.7978846, %v948_v62  ;;  %v1120_v49 = vpack.c.bf16 %v1100_v46, %v1099_v43  ;;  %v1424_v17 = vpop.xlane.xlu0 %1423  ;;  %v1515_v28 = vld [vmem:[#allocation2] sm:$0xff] }
 0x26b   : > { %v1066_v27 = vmul.f32 0.5, %v1034_v41  ;;  %v1037_v59 = vadd.f32 1.0, %v2662_v52  ;;  %v946_v60 = vadd.f32 %v914_v50, %v3974_v37  ;;  %v2664_v55 = vpop.eup %2663  ;;  %v1430_v33 = vpop.xlane.xlu1 %1429  ;;  %v1518_v41 = vld [vmem:[#allocation2 + $0x18] sm:$0xff] }
 0x26c   : > { %2671 = vtanh.f32 %v980_v58  ;;  %v2666_v5 = vpop.eup %2665  ;;  %v1071_v35 = vmul.f32 0.5, %v1039_v53  ;;  %v1040_v9 = vadd.f32 1.0, %v2664_v55  ;;  %v1516_v58 = vld [vmem:[#allocation2 + $0x8] sm:$0xff] }
 0x26d   : > { %v1098_v0 = vmul.f32 %v1066_v27, %v3912_v13  ;;  %v978_v1 = vmul.f32 0.7978846, %v946_v60  ;;  %v1069_v18 = vmul.f32 0.5, %v1037_v59  ;;  %v1038_v40 = vadd.f32 1.0, %v2666_v5  ;;  %2381 = vmatmul.mubr.bf16.gmra.mrb[16].mxu1 %v1118_v39 }
 0x26e   : > { %v1072_v7 = vmul.f32 0.5, %v1040_v9  ;;  %v1103_v6 = vmul.f32 %v3928_v38, %v1071_v35  ;;  %v1433_v36 = vpop.xlane.xlu0 %1432 }
 0x26f   : > { %2673 = vtanh.f32 %v978_v1  ;;  %v1119_v8 = vpack.c.bf16 %v1098_v0, %v1097_v3  ;;  %v1070_v23 = vmul.f32 0.5, %v1038_v40  ;;  %v1101_v42 = vmul.f32 %v1069_v18, %v3933_v54  ;;  %v1436_v39 = vpop.xlane.xlu1 %1435  ;;  %v1521_v0 = vld [vmem:[#allocation2 + $0x30] sm:$0xff]  ;;  %v1519_v18 = vld [vmem:[#allocation2 + $0x20] sm:$0xff] }
 0x270   : > { %v2668_v26 = vpop.eup %2667  ;;  %v1104_v14 = vmul.f32 %v3938_v63, %v1072_v7 }
 0x271   : > { %2384 = vmatprep.mubr.bf16.mxu1 %v1119_v8  ;;  %v1102_v13 = vmul.f32 %v1070_v23, %v3946_v4  ;;  %v1043_v19 = vadd.f32 1.0, %v2668_v26  ;;  %v1522_v8 = vld [vmem:[#allocation2 + $0x38] sm:$0xff] }
 0x272   : > { %v1122_v56 = vpack.c.bf16 %v1104_v14, %v1103_v6  ;;  %v1439_v11 = vpop.xlane.xlu0 %1438 }
 0x273   : > { %v2670_v15 = vpop.eup %2669  ;;  %v1121_v45 = vpack.c.bf16 %v1102_v13, %v1101_v42  ;;  %v1075_v51 = vmul.f32 0.5, %v1043_v19  ;;  %v1520_v42 = vld [vmem:[#allocation2 + $0x28] sm:$0xff] }
 0x274   : > { %v1041_v31 = vadd.f32 1.0, %v2670_v15 }
 0x275   : > { %2385 = vmatmul.mubr.bf16.gmra.mrb[20].mxu1 %v1120_v49  ;;  %v1107_v63 = vmul.f32 %v3960_v16, %v1075_v51  ;;  %v1442_v16 = vpop.xlane.xlu1 %1441 }
 0x276   : > { %v2672_v21 = vpop.eup %2671  ;;  %2388 = vmatprep.mubr.bf16.mxu1 %v1121_v45  ;;  %v1073_v38 = vmul.f32 0.5, %v1041_v31  ;;  %v1445_v44 = vpop.xlane.xlu0 %1444  ;;  %v1525_v31 = vld [vmem:[#allocation2 + $0x50] sm:$0xff] }
 0x277   : > { %v1044_v32 = vadd.f32 1.0, %v2672_v21 }
 0x278   : > { %v1105_v57 = vmul.f32 %v1073_v38, %v3966_v10  ;;  %v1517_v10 = vld [vmem:[#allocation2 + $0x10] sm:$0xff] }
 0x279   : > { %v2674_v22 = vpop.eup %2673  ;;  %v1076_v30 = vmul.f32 0.5, %v1044_v32 }
 0x27a   : > { %v1042_v24 = vadd.f32 1.0, %v2674_v22  ;;  %v1451_v2 = vpop.xlane.xlu0 %1450 }
 0x27b   : > { %v1108_v54 = vmul.f32 %v3970_v25, %v1076_v30  ;;  %v1448_v25 = vpop.xlane.xlu1 %1447  ;;  %v1523_v30 = vld [vmem:[#allocation2 + $0x40] sm:$0xff] }
 0x27c   : > { %v1074_v20 = vmul.f32 0.5, %v1042_v24 }
 0x27d   : > { %v1124_v4 = vpack.c.bf16 %v1108_v54, %v1107_v63  ;;  %2389 = vmatmul.mubr.bf16.gmra.mrb[24].mxu1 %v1122_v56  ;;  %v1526_v63 = vld [vmem:[#allocation2 + $0x58] sm:$0xff] }
 0x27e   : > { %v1106_v61 = vmul.f32 %v1074_v20, %v3974_v37  ;;  %v1457_v27 = vpop.xlane.xlu0 %1456 }
 0x27f   : > { %v1454_v47 = vpop.xlane.xlu1 %1453 }
 0x280   : > { %v1123_v12 = vpack.c.bf16 %v1106_v61, %v1105_v57  ;;  %v1524_v57 = vld [vmem:[#allocation2 + $0x48] sm:$0xff] }
 0x282   : > { %2392 = vmatprep.mubr.bf16.mxu1 %v1123_v12  ;;  %v1463_v35 = vpop.xlane.xlu0 %1462 }
 0x283   : > { %v4017_v55 = vpop.xlane.xlu1 %1459 }
 0x285   : > { %2393 = vmatmul.mubr.bf16.gmra.mrb[28].mxu1 %v1124_v4 }
 0x286   : > { %v1469_v45 = vpop.xlane.xlu0 %1468 }
 0x287   : > { %v1466_v23 = vpop.xlane.xlu1 %1465 }
 0x28b   : > { %v1472_v51 = vpop.xlane.xlu1 %1471 }
 0x31d   : > { %v2366_v48 = vpop.f32.mrb[0].mxu1 }
 0x31e   : > { %v1549_v62 = vmul.f32 %v2366_v48, %v1427_v29  ;;  %v1223_v37 = vpop.f32.mrb[1].mxu1 }
 0x31f   : > { %v1547_v43 = vmul.f32 %v1421_v34, %v1223_v37  ;;  %v2367_v46 = vpop.f32.mrb[2].mxu1  ;;  %v1475_v34 = vpop.xlane.xlu0 %1474 }
 0x320   : > { %v1581_v50 = vadd.f32 %v1549_v62, %v1517_v10  ;;  %v1550_v52 = vmul.f32 %v2367_v46, %v1430_v33  ;;  %v1226_v53 = vpop.f32.mrb[3].mxu1  ;;  %v1478_v33 = vpop.xlane.xlu1 %1477  ;;  %v1530_v10 = vld [vmem:[#allocation2 + $0x78] sm:$0xff] }
 0x321   : > { %v1579_v59 = vadd.f32 %v1547_v43, %v1515_v28  ;;  %v1548_v60 = vmul.f32 %v1424_v17, %v1226_v53  ;;  %v1528_v43 = vld [vmem:[#allocation2 + $0x68] sm:$0xff] }
 0x322   : > { %1613 = vst [vmem:[#allocation2 + $0x10] sm:$0xff] %v1581_v50  ;;  %v1582_v49 = vadd.f32 %v1550_v52, %v1518_v41 }
 0x323   : > { %1611 = vst [vmem:[#allocation2] sm:$0xff] %v1579_v59  ;;  %v1580_v3 = vadd.f32 %v1548_v60, %v1516_v58  ;;  %v1533_v59 = vld [vmem:[#allocation2 + $0x90] sm:$0xff] }
 0x324   : > { %1614 = vst [vmem:[#allocation2 + $0x18] sm:$0xff] %v1582_v49  ;;  %v1484_v62 = vpop.xlane.xlu1 %1483 }
 0x325   : > { %1612 = vst [vmem:[#allocation2 + $0x8] sm:$0xff] %v1580_v3  ;;  %v1531_v3 = vld [vmem:[#allocation2 + $0x80] sm:$0xff] }
 0x326   : > { %v2370_v5 = vpop.f32.mrb[4].mxu1 }
 0x327   : > { %v1553_v9 = vmul.f32 %v2370_v5, %v1439_v11  ;;  %v1239_v1 = vpop.f32.mrb[5].mxu1  ;;  %v1481_v11 = vpop.xlane.xlu0 %1480 }
 0x328   : > { %v1551_v40 = vmul.f32 %v1433_v36, %v1239_v1  ;;  %v2371_v7 = vpop.f32.mrb[6].mxu1 }
 0x329   : > { %v1585_v26 = vadd.f32 %v1553_v9, %v1521_v0  ;;  %v1554_v6 = vmul.f32 %v2371_v7, %v1442_v16  ;;  %v1242_v14 = vpop.f32.mrb[7].mxu1 }
 0x32a   : > { %v1583_v13 = vadd.f32 %v1551_v40, %v1519_v18  ;;  %v1552_v19 = vmul.f32 %v1436_v39, %v1242_v14  ;;  %v1529_v39 = vld [vmem:[#allocation2 + $0x70] sm:$0xff] }
 0x32b   : > { %1617 = vst [vmem:[#allocation2 + $0x30] sm:$0xff] %v1585_v26  ;;  %v1586_v56 = vadd.f32 %v1554_v6, %v1522_v8  ;;  %v1487_v53 = vpop.xlane.xlu0 %1486 }
 0x32c   : > { %1615 = vst [vmem:[#allocation2 + $0x20] sm:$0xff] %v1583_v13  ;;  %v1584_v15 = vadd.f32 %v1552_v19, %v1520_v42  ;;  %v1537_v42 = vld [vmem:[#allocation2 + $0xb0] sm:$0xff] }
 0x32d   : > { %1618 = vst [vmem:[#allocation2 + $0x38] sm:$0xff] %v1586_v56  ;;  %v1535_v56 = vld [vmem:[#allocation2 + $0xa0] sm:$0xff] }
 0x32e   : > { %1616 = vst [vmem:[#allocation2 + $0x28] sm:$0xff] %v1584_v15  ;;  %v2374_v21 = vpop.f32.mrb[8].mxu1 }
 0x32f   : > { %v1557_v32 = vmul.f32 %v2374_v21, %v1451_v2  ;;  %v1255_v22 = vpop.f32.mrb[9].mxu1  ;;  %v1527_v2 = vld [vmem:[#allocation2 + $0x60] sm:$0xff]  ;;  %v1493_v8 = vpop.xlane.xlu0 %1492  ;;  %v1538_v21 = vld [vmem:[#allocation2 + $0xb8] sm:$0xff] }
 0x330   : > { %v1555_v38 = vmul.f32 %v1445_v44, %v1255_v22  ;;  %v2375_v24 = vpop.f32.mrb[10].mxu1 }
 0x331   : > { %v1589_v54 = vadd.f32 %v1557_v32, %v1525_v31  ;;  %v1558_v20 = vmul.f32 %v2375_v24, %v1454_v47  ;;  %v1258_v4 = vpop.f32.mrb[11].mxu1 }
 0x332   : > { %v1587_v61 = vadd.f32 %v1555_v38, %v1523_v30  ;;  %v1556_v12 = vmul.f32 %v1448_v25, %v1258_v4  ;;  %v1536_v30 = vld [vmem:[#allocation2 + $0xa8] sm:$0xff] }
 0x333   : > { %1621 = vst [vmem:[#allocation2 + $0x50] sm:$0xff] %v1589_v54  ;;  %v1590_v29 = vadd.f32 %v1558_v20, %v1526_v63  ;;  %v1499_v31 = vpop.xlane.xlu0 %1498 }
 0x334   : > { %1619 = vst [vmem:[#allocation2 + $0x40] sm:$0xff] %v1587_v61  ;;  %v1588_v17 = vadd.f32 %v1556_v12, %v1524_v57  ;;  %v1541_v57 = vld [vmem:[#allocation2 + $0xd0] sm:$0xff] }
 0x335   : > { %1622 = vst [vmem:[#allocation2 + $0x58] sm:$0xff] %v1590_v29  ;;  %v1539_v29 = vld [vmem:[#allocation2 + $0xc0] sm:$0xff] }
 0x336   : > { %1620 = vst [vmem:[#allocation2 + $0x48] sm:$0xff] %v1588_v17 }
 0x337   : > { %v1505_v61 = vpop.xlane.xlu0 %1504 }
 0x338   : > { %v2378_v36 = vpop.f32.mrb[12].mxu1 }
 0x339   : > { %v1561_v16 = vmul.f32 %v2378_v36, %v1463_v35  ;;  %v1271_v44 = vpop.f32.mrb[13].mxu1  ;;  %v1534_v35 = vld [vmem:[#allocation2 + $0x98] sm:$0xff] }
 0x33a   : > { %v1559_v48 = vmul.f32 %v1457_v27, %v1271_v44  ;;  %v2379_v47 = vpop.f32.mrb[14].mxu1  ;;  %v1490_v27 = vpop.xlane.xlu1 %1489  ;;  %v1542_v36 = vld [vmem:[#allocation2 + $0xd8] sm:$0xff] }
 0x33b   : > { %v1593_v37 = vadd.f32 %v1561_v16, %v1529_v39  ;;  %v1562_v25 = vmul.f32 %v2379_v47, %v1466_v23  ;;  %v1274_v28 = vpop.f32.mrb[15].mxu1 }
 0x33c   : > { %v1591_v46 = vadd.f32 %v1559_v48, %v1527_v2  ;;  %v1560_v41 = vmul.f32 %v4017_v55, %v1274_v28  ;;  %v1532_v55 = vld [vmem:[#allocation2 + $0x88] sm:$0xff]  ;;  %v1545_v28 = vld [vmem:[#allocation2 + $0xf0] sm:$0xff] }
 0x33d   : > { %1625 = vst [vmem:[#allocation2 + $0x70] sm:$0xff] %v1593_v37  ;;  %v1594_v50 = vadd.f32 %v1562_v25, %v1530_v10  ;;  %v1540_v2 = vld [vmem:[#allocation2 + $0xc8] sm:$0xff]  ;;  %v1511_v37 = vpop.xlane.xlu0 %1510 }
 0x33e   : > { %1623 = vst [vmem:[#allocation2 + $0x60] sm:$0xff] %v1591_v46  ;;  %v1592_v52 = vadd.f32 %v1560_v41, %v1528_v43  ;;  %v1496_v6 = vpop.xlane.xlu1 %1495 }
 0x33f   : > { %1626 = vst [vmem:[#allocation2 + $0x78] sm:$0xff] %v1594_v50  ;;  %v1543_v50 = vld [vmem:[#allocation2 + $0xe0] sm:$0xff] }
 0x340   : > { %1624 = vst [vmem:[#allocation2 + $0x68] sm:$0xff] %v1592_v52  ;;  %v2382_v58 = vpop.f32.mrb[16].mxu1 }
 0x341   : > { %v1565_v60 = vmul.f32 %v2382_v58, %v1475_v34  ;;  %v1287_v49 = vpop.f32.mrb[17].mxu1  ;;  %v1546_v58 = vld [vmem:[#allocation2 + $0xf8] sm:$0xff] }
 0x342   : > { %v1563_v5 = vmul.f32 %v1469_v45, %v1287_v49  ;;  %v2383_v0 = vpop.f32.mrb[18].mxu1  ;;  %v1502_v63 = vpop.xlane.xlu1 %1501  ;;  %v1544_v49 = vld [vmem:[#allocation2 + $0xe8] sm:$0xff] }
 0x343   : > { %v1597_v9 = vadd.f32 %v1565_v60, %v1533_v59  ;;  %v1566_v1 = vmul.f32 %v2383_v0, %v1478_v33  ;;  %v1290_v18 = vpop.f32.mrb[19].mxu1 }
 0x344   : > { %v1595_v40 = vadd.f32 %v1563_v5, %v1531_v3  ;;  %v1564_v7 = vmul.f32 %v1472_v51, %v1290_v18 }
 0x345   : > { %1629 = vst [vmem:[#allocation2 + $0x90] sm:$0xff] %v1597_v9  ;;  %v1598_v23 = vadd.f32 %v1566_v1, %v1534_v35 }
 0x346   : > { %1627 = vst [vmem:[#allocation2 + $0x80] sm:$0xff] %v1595_v40  ;;  %v1596_v26 = vadd.f32 %v1564_v7, %v1532_v55  ;;  %v1508_v39 = vpop.xlane.xlu1 %1507 }
 0x347   : > { %1630 = vst [vmem:[#allocation2 + $0x98] sm:$0xff] %v1598_v23 }
 0x348   : > { %1628 = vst [vmem:[#allocation2 + $0x88] sm:$0xff] %v1596_v26  ;;  %v2386_v14 = vpop.f32.mrb[20].mxu1 }
 0x349   : > { %v1569_v13 = vmul.f32 %v2386_v14, %v1487_v53  ;;  %v1303_v19 = vpop.f32.mrb[21].mxu1 }
 0x34a   : > { %v1567_v15 = vmul.f32 %v1481_v11, %v1303_v19  ;;  %v2387_v45 = vpop.f32.mrb[22].mxu1  ;;  %v1514_v43 = vpop.xlane.xlu1 %1513 }
 0x34b   : > { %v1601_v32 = vadd.f32 %v1569_v13, %v1537_v42  ;;  %v1570_v22 = vmul.f32 %v2387_v45, %v1490_v27  ;;  %v1306_v51 = vpop.f32.mrb[23].mxu1 }
 0x34c   : > { %v1599_v38 = vadd.f32 %v1567_v15, %v1535_v56  ;;  %v1568_v24 = vmul.f32 %v1484_v62, %v1306_v51 }
 0x34d   : > { %1633 = vst [vmem:[#allocation2 + $0xb0] sm:$0xff] %v1601_v32  ;;  %v1602_v54 = vadd.f32 %v1570_v22, %v1538_v21 }
 0x34e   : > { %1631 = vst [vmem:[#allocation2 + $0xa0] sm:$0xff] %v1599_v38  ;;  %v1600_v20 = vadd.f32 %v1568_v24, %v1536_v30 }
 0x34f   : > { %1634 = vst [vmem:[#allocation2 + $0xb8] sm:$0xff] %v1602_v54 }
 0x350   : > { %1632 = vst [vmem:[#allocation2 + $0xa8] sm:$0xff] %v1600_v20  ;;  %v2390_v4 = vpop.f32.mrb[24].mxu1 }
 0x351   : > { %v1573_v12 = vmul.f32 %v2390_v4, %v1499_v31  ;;  %v1319_v34 = vpop.f32.mrb[25].mxu1 }
 0x352   : > { %v1571_v17 = vmul.f32 %v1493_v8, %v1319_v34  ;;  %v2391_v33 = vpop.f32.mrb[26].mxu1 }
 0x353   : > { %v1605_v11 = vadd.f32 %v1573_v12, %v1541_v57  ;;  %v1574_v16 = vmul.f32 %v2391_v33, %v1502_v63  ;;  %v1322_v44 = vpop.f32.mrb[27].mxu1 }
 0x354   : > { %v1603_v48 = vadd.f32 %v1571_v17, %v1539_v29  ;;  %v1572_v47 = vmul.f32 %v1496_v6, %v1322_v44 }
 0x355   : > { %1637 = vst [vmem:[#allocation2 + $0xd0] sm:$0xff] %v1605_v11  ;;  %v1606_v10 = vadd.f32 %v1574_v16, %v1542_v36 }
 0x356   : > { %1635 = vst [vmem:[#allocation2 + $0xc0] sm:$0xff] %v1603_v48  ;;  %v1604_v62 = vadd.f32 %v1572_v47, %v1540_v2 }
 0x357   : > { %1638 = vst [vmem:[#allocation2 + $0xd8] sm:$0xff] %v1606_v10 }
 0x358   : > { %1636 = vst [vmem:[#allocation2 + $0xc8] sm:$0xff] %v1604_v62  ;;  %v2394_v25 = vpop.f32.mrb[28].mxu1 }
 0x359   : > { %v1577_v46 = vmul.f32 %v2394_v25, %v1511_v37  ;;  %v1335_v41 = vpop.f32.mrb[29].mxu1 }
 0x35a   : > { %v1575_v52 = vmul.f32 %v1505_v61, %v1335_v41  ;;  %v2395_v53 = vpop.f32.mrb[30].mxu1 }
 0x35b   : > { %v1609_v59 = vadd.f32 %v1577_v46, %v1545_v28  ;;  %v1578_v27 = vmul.f32 %v2395_v53, %v1514_v43  ;;  %v1338_v60 = vpop.f32.mrb[31].mxu1 }
 0x35c   : > { %v1607_v3 = vadd.f32 %v1575_v52, %v1543_v50  ;;  %v1576_v5 = vmul.f32 %v1508_v39, %v1338_v60 }
 0x35d   : > { %1641 = vst [vmem:[#allocation2 + $0xf0] sm:$0xff] %v1609_v59  ;;  %v1610_v0 = vadd.f32 %v1578_v27, %v1546_v58 }
 0x35e   : > { %1639 = vst [vmem:[#allocation2 + $0xe0] sm:$0xff] %v1607_v3  ;;  %v1608_v35 = vadd.f32 %v1576_v5, %v1544_v49 }
 0x35f   : > { %1642 = vst [vmem:[#allocation2 + $0xf8] sm:$0xff] %v1610_v0 }
 0x360   : > { %1640 = vst [vmem:[#allocation2 + $0xe8] sm:$0xff] %v1608_v35 }
 0x361 PF: > { %s4227_s7 = sld [smem:[#allocation34_spill]]  ;;  %s4228_s13 = sld [smem:[#allocation33_spill]] }
 0x367   : > { %p1643_p11 = scmp.eq.s32.totalorder %s4227_s7, 3  ;;  %p1644_p0 = scmp.eq.s32.totalorder %s4228_s13, 1 }
 0x369   : > { %p1645_p8 = pnand %p1644_p0, %p1643_p11 }
 0x36a   : > { %v1649_v9 = vld [vmem:[#allocation2] sm:$0xff] (!%p1645_p8)  ;;  %v1650_v1 = vld [vmem:[#allocation2 + $0x8] sm:$0xff] (!%p1645_p8)  ;;  %v1651_v18 = vld [vmem:[#allocation2 + $0x10] sm:$0xff] (!%p1645_p8) }
 0x36b   : > { %1648 = sbr.rel (%p1645_p8) target bundleno = 889 (0x379), region = 64  ;;  %v2160_v55 = vpack.c.bf16 (!%p1645_p8), %v1650_v1, %v1649_v9  ;;  %v1652_v40 = vld [vmem:[#allocation2 + $0x18] sm:$0xff] (!%p1645_p8)  ;;  %v1653_v7 = vld [vmem:[#allocation2 + $0x20] sm:$0xff] (!%p1645_p8)  ;;  %v1654_v8 = vld [vmem:[#allocation2 + $0x28] sm:$0xff] (!%p1645_p8) }
 0x36c   : > { %v2165_v23 = vpack.c.bf16 (!%p1645_p8), %v1652_v40, %v1651_v18  ;;  %v2170_v26 = vpack.c.bf16 (!%p1645_p8), %v1654_v8, %v1653_v7  ;;  %v1655_v6 = vld [vmem:[#allocation2 + $0x30] sm:$0xff] (!%p1645_p8)  ;;  %v1656_v14 = vld [vmem:[#allocation2 + $0x38] sm:$0xff] (!%p1645_p8)  ;;  %v1657_v42 = vld [vmem:[#allocation2 + $0x40] sm:$0xff] (!%p1645_p8) }
 0x36d   : > { %2161 = vst [vmem:[%s3555_s25] sm:$0xff] (!%p1645_p8), %v2160_v55   ;;  %v2175_v13 = vpack.c.bf16 (!%p1645_p8), %v1656_v14, %v1655_v6  ;;  %v1658_v19 = vld [vmem:[#allocation2 + $0x48] sm:$0xff] (!%p1645_p8)  ;;  %v1659_v56 = vld [vmem:[#allocation2 + $0x50] sm:$0xff] (!%p1645_p8)  ;;  %v1660_v15 = vld [vmem:[#allocation2 + $0x58] sm:$0xff] (!%p1645_p8) }
 0x36e   : > { %2237 = vst [vmem:[%s3555_s25 + $0x8] sm:$0xff] (!%p1645_p8), %v2165_v23   ;;  %2238 = vst [vmem:[%s3555_s25 + $0x10] sm:$0xff] (!%p1645_p8), %v2170_v26   ;;  %v2180_v45 = vpack.c.bf16 (!%p1645_p8), %v1658_v19, %v1657_v42  ;;  %v2185_v21 = vpack.c.bf16 (!%p1645_p8), %v1660_v15, %v1659_v56  ;;  %v1661_v31 = vld [vmem:[#allocation2 + $0x60] sm:$0xff] (!%p1645_p8)  ;;  %v1662_v32 = vld [vmem:[#allocation2 + $0x68] sm:$0xff] (!%p1645_p8) }
 0x36f   : > { %v1663_v22 = vld [vmem:[#allocation2 + $0x70] sm:$0xff] (!%p1645_p8)  ;;  %2239 = vst [vmem:[%s3555_s25 + $0x18] sm:$0xff] (!%p1645_p8), %v2175_v13   ;;  %v2190_v51 = vpack.c.bf16 (!%p1645_p8), %v1662_v32, %v1661_v31  ;;  %v1664_v30 = vld [vmem:[#allocation2 + $0x78] sm:$0xff] (!%p1645_p8)  ;;  %v1665_v38 = vld [vmem:[#allocation2 + $0x80] sm:$0xff] (!%p1645_p8) }
 0x370   : > { %v1666_v24 = vld [vmem:[#allocation2 + $0x88] sm:$0xff] (!%p1645_p8)  ;;  %2240 = vst [vmem:[%s3555_s25 + $0x20] sm:$0xff] (!%p1645_p8), %v2180_v45   ;;  %2241 = vst [vmem:[%s3555_s25 + $0x28] sm:$0xff] (!%p1645_p8), %v2185_v21   ;;  %v2195_v63 = vpack.c.bf16 (!%p1645_p8), %v1664_v30, %v1663_v22  ;;  %v1667_v20 = vld [vmem:[#allocation2 + $0x90] sm:$0xff] (!%p1645_p8) }
 0x371   : > { %v2200_v54 = vpack.c.bf16 (!%p1645_p8), %v1666_v24, %v1665_v38  ;;  %v1668_v4 = vld [vmem:[#allocation2 + $0x98] sm:$0xff] (!%p1645_p8)  ;;  %v1669_v57 = vld [vmem:[#allocation2 + $0xa0] sm:$0xff] (!%p1645_p8)  ;;  %2242 = vst [vmem:[%s3555_s25 + $0x30] sm:$0xff] (!%p1645_p8), %v2190_v51   ;;  %v1670_v12 = vld [vmem:[#allocation2 + $0xa8] sm:$0xff] (!%p1645_p8) }
 0x372   : > { %v2205_v61 = vpack.c.bf16 %v1668_v4, %v1667_v20  ;;  %v1671_v34 = vld [vmem:[#allocation2 + $0xb0] sm:$0xff]  ;;  %v1672_v29 = vld [vmem:[#allocation2 + $0xb8] sm:$0xff]  ;;  %2243 = vst [vmem:[%s3555_s25 + $0x38] sm:$0xff] %v2195_v63   ;;  %v2210_v17 = vpack.c.bf16 %v1670_v12, %v1669_v57  ;;  %v1673_v36 = vld [vmem:[#allocation2 + $0xc0] sm:$0xff] }
 0x373   : > { %2244 = vst [vmem:[%s3555_s25 + $0x40] sm:$0xff] %v2200_v54   ;;  %v2215_v33 = vpack.c.bf16 %v1672_v29, %v1671_v34  ;;  %v1674_v39 = vld [vmem:[#allocation2 + $0xc8] sm:$0xff]  ;;  %v1675_v11 = vld [vmem:[#allocation2 + $0xd0] sm:$0xff]  ;;  %v1676_v44 = vld [vmem:[#allocation2 + $0xd8] sm:$0xff] }
 0x374   : > { %2245 = vst [vmem:[%s3555_s25 + $0x48] sm:$0xff] %v2205_v61   ;;  %v2220_v16 = vpack.c.bf16 %v1674_v39, %v1673_v36  ;;  %v1677_v2 = vld [vmem:[#allocation2 + $0xe0] sm:$0xff]  ;;  %v1678_v48 = vld [vmem:[#allocation2 + $0xe8] sm:$0xff]  ;;  %2246 = vst [vmem:[%s3555_s25 + $0x50] sm:$0xff] %v2210_v17   ;;  %v2225_v47 = vpack.c.bf16 %v1676_v44, %v1675_v11 }
 0x375   : > { %2247 = vst [vmem:[%s3555_s25 + $0x58] sm:$0xff] %v2215_v33   ;;  %v2230_v10 = vpack.c.bf16 %v1678_v48, %v1677_v2  ;;  %v1679_v62 = vld [vmem:[#allocation2 + $0xf0] sm:$0xff]  ;;  %v1680_v37 = vld [vmem:[#allocation2 + $0xf8] sm:$0xff] }
 0x376   : > { %2248 = vst [vmem:[%s3555_s25 + $0x60] sm:$0xff] %v2220_v16   ;;  %v2235_v25 = vpack.c.bf16 %v1680_v37, %v1679_v62  ;;  %2249 = vst [vmem:[%s3555_s25 + $0x68] sm:$0xff] %v2225_v47  }
 0x377   : > { %2250 = vst [vmem:[%s3555_s25 + $0x70] sm:$0xff] %v2230_v10  }
 0x378   : > { %2251 = vst [vmem:[%s3555_s25 + $0x78] sm:$0xff] %v2235_v25  }
 0x379 PF: > { %s4229_s5 = sld [smem:[#allocation35_spill]]  ;;  %s4230_s23 = sld [smem:[#allocation43_spill]] }
 0x37a   : > { %s4231_s17 = sld [smem:[#allocation49_spill]]  ;;  %s1855_s11 = sshll.u32 %s3555_s25, 4  ;;  %s4045_s11 = int_to_ptr.vmem [resolvable:$true] %s1855_s11 }
 0x37b   : > { %s1842_s12 = scalar_lea.sflag [#allocation9], %s3521_s27  ;;  %s2825_s9 = scalar_lea.vmem %s4045_s11, 2048 }
 0x37c   : > { %p2826_p4 = scmp.ne.s32.totalorder %s4045_s11, %s2825_s9  ;;  %s3015_s18 = smov [#allocation15]  }
 0x37d   : > { %s2829_s24 = sshll.u32 %s3015_s18, 4  ;;  %s2830_s24 = int_to_ptr.vmem [resolvable:$false] %s2829_s24 }
 0x37e   : > { %s2831_s4 = scalar_lea.vmem %s2830_s24, 4096  ;;  %p2832_p2 = scmp.lt.s32.totalorder %s4045_s11, %s2830_s24 }
 0x37f   : > { %s2156_s14 = sshll.u32 %s4229_s5, 11  ;;  %p4233_p9 = scmp.ne.s32.totalorder %s4230_s23, 0 }
 0x380   : > { %s4232_s0 = smov %s4231_s17  ;;  %s4042_s1 = scalar_lea.hbm %s4231_s17, %s2156_s14 }
 0x381   : > { %p2827_p3 = pnand %p2826_p4, %p4233_p9  ;;  %p2833_p5 = scmp.lt.s32.totalorder %s2831_s4, %s2825_s9 }
 0x383   : > { %p2828_p1 = pneg %p2827_p3  ;;  %p2834_p6 = por %p2833_p5, %p2832_p2 }
 0x385   : > { %p2835_p10 = pnand %p2834_p6, %p2828_p1 }
 0x387   : > { %2838 = shalt.err (!%p2835_p10)
}
 0x388   : > { %s2839_s25 = scalar_lea.hbm %s4042_s1, 2048  ;;  %s2843_s19 = scalar_lea.hbm %s4232_s0, 4096 }
 0x389   : > { %p2840_p7 = scmp.ne.s32.totalorder %s4042_s1, %s2839_s25  ;;  %p2844_p11 = scmp.lt.u32.totalorder %s4042_s1, %s4232_s0 }
 0x38a   : > { %p2845_p0 = scmp.lt.u32.totalorder %s2843_s19, %s2839_s25  ;;  %p2847_p4 = scmp.lt.u32.totalorder %s2839_s25, %s4042_s1 }
 0x38b   : > { %p2841_p13 = pnand %p2840_p7, %p4233_p9 }
 0x38c   : > { %p2846_p8 = por %p2845_p0, %p2844_p11 }
 0x38d   : > { %p2842_p12 = pneg %p2841_p13 }
 0x38e   : > { %p2848_p3 = por %p2847_p4, %p2846_p8 }
 0x390   : > { %p2849_p1 = pnand %p2848_p3, %p2842_p12 }
 0x392   : > { %2852 = shalt.err (!%p2849_p1)
}
 0x393   : > { %s3016_s7 = smov 64   ;;  %s3017_s13 = smov 4  }
 0x394   : > { %2412 = dma.vmem_to_hbm [thread:$0]  (%p4233_p9), %s4045_s11, 2048, %s4042_s1, %s1842_s12, %s3016_s7, %s3016_s7, %s3017_s13  }
 0x395 PF: > { %s4234_s5 = sld [smem:[#allocation30_spill]]  ;;  %s4235_s14 = sld [smem:[#allocation44_spill]] }
 0x396   : > { %p2440_p2 = scmp.ge.s32.totalorder %s3001_s20, 2 }
 0x39b   : > { %s1870_s28 = sand.u32 1, %s4234_s5   ;;  %p4236_p5 = scmp.ne.s32.totalorder %s4235_s14, 0 }
 0x39c   : > { %s1871_s29 = scalar_lea.sflag [#allocation9], %s1870_s28 }
 0x39d   : > { %p2436_p6 = pnand %p2440_p2, %p4236_p5 }
 0x39f   : > { %2936 = dma.done.wait (!%p2436_p6), %s1871_s29, 2048  }
 0x3a0   : > { %2938 = vsyncadd (!%p2436_p6), %s1871_s29, 4294965248  ;;  %s37_s20 = sadd.s32 1, %s3001_s20   ;;  %s4238_s11 = sld [smem:[#allocation31_spill]] }
 0x3a1   : > { %p4076_p10 = scmp.ge.s32.totalorder %s37_s20, 18   ;;  %s4239_s12 = sld [smem:[#allocation32_spill]] }
 0x3a2   : > { %s4240_s13 = sld [smem:[#allocation45_spill]]  ;;  %s4241_s14 = sld [smem:[#allocation36_spill]] }
 0x3a3   : > { %s4242_s15 = sld [smem:[#allocation37_spill]]  ;;  %s4243_s16 = sld [smem:[#allocation38_spill]] }
 0x3a4   : > { %s4244_s27 = sld [smem:[#allocation39_spill]]  ;;  %s4245_s18 = sld [smem:[#allocation40_spill]] }
 0x3a5   : > { %s4246_s19 = sld [smem:[#allocation42_spill]]  ;;  %s4247_s1 = smov %s2945_s30 }
 0x3a6   : > { %s4249_s30 = smov %s2949_s8  ;;  %s4250_s8 = smov %s3471_s26 }
 0x3a7   : > { %s4251_s9 = smov %s2957_s2  ;;  %s4252_s2 = smov %s2961_s10 }
 0x3a8   : > { %s4253_s10 = smov %s3374_s22  ;;  %36 = sbr.rel (!%p4076_p10) target bundleno = 42 (0x2a), region = 130 }
 0x3aa   : > { %s4254_s17 = smov %s4244_s27 }
 0x3af   :  { %1876 = vsyncpa [#allocation8], 1 }
 0x3b0   :  { %1878 = vsyncpa [#allocation8 + $0x1], 1 }
 0x3b1   :  { %1879 = vsyncpa [#allocation11], 1 }
 0x3b2   :  { %1881 = vsyncpa [#allocation11 + $0x1], 1 }
 0x3b3   :  { %1882 = vsyncpa [#allocation14], 1 }
 0x3b4   :  { %1884 = vsyncpa [#allocation14 + $0x1], 1 }
 0x3b5   :  { %1885 = vsyncpa [#allocation9], 1 }
 0x3b6   :  { %1887 = vsyncpa [#allocation9 + $0x1], 1 }

</bundles_post_ra>
